<compile_context>
chip_gen: v7x
topology: tpu7x:2x2x1
jax: 0.10.0
libtpu: 0.0.40
codegen_flags: <defaults>
</compile_context>

<pallas_src>
import jax
import jax.numpy as jnp
import numpy as np
from jax.experimental import pallas as pl
from jax.experimental.pallas import tpu as pltpu

BN_EPS = 1e-5


# --------------------------------- kernel ---------------------------------- #

def _bottleneck_kernel(x_ref, xt_ref, xb_ref,
                       w1_ref, s1_ref, b1_ref,
                       w2_ref, s2_ref, b2_ref,
                       w3_ref, s3_ref, b3_ref,
                       o_ref, t1_ref, acc_ref):
    """Fused ResNeSt bottleneck for TILE_H output rows of one image.

    x_ref  : (1, TILE_H, W, Cin) f32  centre rows (also the residual)
    xt_ref : (1, 1, W, Cin)      f32  row above the tile (clamped, masked if h==0)
    xb_ref : (1, 1, W, Cin)      f32  row below the tile (clamped, masked if last)
    w*_ref : bf16 weights (1x1 convs as (Cin,Cout); 3x3 as (9,Cin,Cout), taps (ky,kx))
    s*/b*  : (1, C) f32 folded-BN scale / bias
    o_ref  : (1, TILE_H, W, Cout) f32
    t1_ref : (3, TILE_H+2, W, GW) bf16  conv1 output, one copy per kx shift
    acc_ref: (TILE_H, W, GW)      f32   conv2 accumulator
    """
    tile_h = x_ref.shape[1]
    gw = w1_ref.shape[1]

    hi = pl.program_id(1)
    nh = pl.num_programs(1)

    w1 = w1_ref[...]
    s1 = s1_ref[0]
    b1 = b1_ref[0]

    def conv1(a):  # (..., Cin) f32 -> (..., GW) f32 with bn1 + relu applied
        z = jax.lax.dot_general(
            a.astype(jnp.bfloat16), w1,
            (((a.ndim - 1,), (0,)), ((), ())),
            preferred_element_type=jnp.float32)
        return jnp.maximum(z * s1 + b1, 0.0)

    xc = x_ref[0]                                   # (TILE_H, W, Cin) f32 (residual)
    y1c = conv1(xc)                                 # (TILE_H, W, GW)
    y1t = conv1(xt_ref[0, 0])                       # (W, GW)
    y1b = conv1(xb_ref[0, 0])                       # (W, GW)
    # conv2's pad=1 zero-pads the *activation*: halo rows outside the image are 0.
    y1t = y1t * (hi > 0).astype(jnp.float32)
    y1b = y1b * (hi < nh - 1).astype(jnp.float32)

    # Rows [h*TILE_H-1, h*TILE_H+TILE_H] of the conv1 output, in f32.
    mid = jnp.concatenate([y1t[None], y1c, y1b[None]], axis=0)   # (TILE_H+2, W, GW)
    zcol = jnp.zeros((tile_h + 2, 1, gw), jnp.float32)
    # Materialize the three kx-shifted copies once; the tap loop below only slices
    # along the leading row axis (free stride, no per-tap sublane shifts).
    t1_ref[1] = mid.astype(jnp.bfloat16)                                            # kx=1
    t1_ref[0] = jnp.concatenate([zcol, mid[:, :-1, :]], axis=1).astype(jnp.bfloat16)  # kx=0
    t1_ref[2] = jnp.concatenate([mid[:, 1:, :], zcol], axis=1).astype(jnp.bfloat16)   # kx=2

    # conv2: 9 tap matmuls accumulated into the VMEM f32 scratch.
    acc_ref[...] = jnp.zeros_like(acc_ref)
    for ky in range(3):
        for kx in range(3):
            patch = t1_ref[kx, ky:ky + tile_h]      # (TILE_H, W, GW) bf16
            acc_ref[...] += jax.lax.dot_general(
                patch, w2_ref[ky * 3 + kx],
                (((2,), (0,)), ((), ())),
                preferred_element_type=jnp.float32)

    y2 = jnp.maximum(acc_ref[...] * s2_ref[0] + b2_ref[0], 0.0)   # (TILE_H, W, GW)

    # conv3 (1x1) + bn3 + residual + relu.
    y3 = jax.lax.dot_general(
        y2.astype(jnp.bfloat16), w3_ref[...],
        (((2,), (0,)), ((), ())),
        preferred_element_type=jnp.float32)                       # (TILE_H, W, Cout)
    y3 = y3 * s3_ref[0] + b3_ref[0] + xc                          # Cin == Cout (no downsample)
    o_ref[0] = jnp.maximum(y3, 0.0).astype(o_ref.dtype)


# --------------------------------- wrapper --------------------------------- #

def bottleneck_forward_nhwc(x_nhwc, params, *, tile_h=None):
    """Fused ResNeSt Bottleneck (radix=1, stride=1, downsample=None). NHWC in/out."""
    x = x_nhwc.astype(jnp.float32)
    n, h, w, cin = x.shape
    gw = params["w1"].shape[1]
    cout = params["w3"].shape[1]
    assert cin == cout, "downsample=None requires inplanes == planes * 4"

    if tile_h is None:
        tile_h = 8 if h % 8 == 0 else h
    assert h % tile_h == 0, "H must be divisible by the row tile"
    nh = h // tile_h

    # bf16 MXU operands; folded-BN scale/bias stay f32 (epilogue in f32).
    w1 = params["w1"].astype(jnp.bfloat16)
    w2 = params["w2"].astype(jnp.bfloat16)
    w3 = params["w3"].astype(jnp.bfloat16)

    flops = 2 * n * h * w * (cin * gw + 9 * gw * gw + gw * cout)
    bytes_accessed = (x.size + n * h * w * cout) * 4 \
        + (w1.size + w2.size + w3.size) * 2 \
        + 2 * n * nh * w * cin * 4            # halo row re-reads

    out = pl.pallas_call(
        _bottleneck_kernel,
        out_shape=jax.ShapeDtypeStruct((n, h, w, cout), jnp.float32),
        grid_spec=pltpu.PrefetchScalarGridSpec(
            num_scalar_prefetch=0,
            grid=(n, nh),
            in_specs=[
                # activation: centre tile + 1-row halos (clamped, masked in-kernel)
                pl.BlockSpec((1, tile_h, w, cin), lambda ni, hi: (ni, hi, 0, 0)),
                pl.BlockSpec((1, 1, w, cin),
                             lambda ni, hi: (ni, jnp.maximum(hi * tile_h - 1, 0), 0, 0)),
                pl.BlockSpec((1, 1, w, cin),
                             lambda ni, hi: (ni, jnp.minimum((hi + 1) * tile_h, h - 1), 0, 0)),
                # VMEM-resident weights / folded BN (constant index maps -> fetched once)
                pl.BlockSpec((cin, gw), lambda ni, hi: (0, 0)),
                pl.BlockSpec((1, gw), lambda ni, hi: (0, 0)),
                pl.BlockSpec((1, gw), lambda ni, hi: (0, 0)),
                pl.BlockSpec((9, gw, gw), lambda ni, hi: (0, 0, 0)),
                pl.BlockSpec((1, gw), lambda ni, hi: (0, 0)),
                pl.BlockSpec((1, gw), lambda ni, hi: (0, 0)),
                pl.BlockSpec((gw, cout), lambda ni, hi: (0, 0)),
                pl.BlockSpec((1, cout), lambda ni, hi: (0, 0)),
                pl.BlockSpec((1, cout), lambda ni, hi: (0, 0)),
            ],
            out_specs=pl.BlockSpec((1, tile_h, w, cout), lambda ni, hi: (ni, hi, 0, 0)),
            scratch_shapes=[
                pltpu.VMEM((3, tile_h + 2, w, gw), jnp.bfloat16),  # shifted conv1 output
                pltpu.VMEM((tile_h, w, gw), jnp.float32),          # conv2 accumulator
            ],
        ),
        compiler_params=pltpu.CompilerParams(
            dimension_semantics=("parallel", "parallel")),
        cost_estimate=pl.CostEstimate(
            flops=flops, transcendentals=0, bytes_accessed=bytes_accessed),
    )(x, x, x,
      w1, params["s1"], params["b1"],
      w2, params["s2"], params["b2"],
      w3, params["s3"], params["b3"])
    return out


def bottleneck_forward(x_nchw, params):
    # NCHW <-> NHWC only at the model edge; a stack of blocks should stay NHWC.
    x = jnp.transpose(x_nchw, (0, 2, 3, 1))
    y = bottleneck_forward_nhwc(x, params)
    return jnp.transpose(y, (0, 3, 1, 2))


# ---------------------------- params / reference ---------------------------- #

def fold_bn(gamma, beta, mean, var):
    scale = gamma / jnp.sqrt(var + BN_EPS)
    bias = beta - mean * scale
    return scale[None, :], bias[None, :]


def make_params(key, inplanes, planes, bottleneck_width=64, cardinality=1):
    group_width = int(planes * (bottleneck_width / 64.0)) * cardinality
    out_ch = planes * 4
    ks = jax.random.split(key, 12)

    def bn(kg, kb, km, kv, c):
        gamma = 0.5 + jax.random.uniform(kg, (c,))
        beta = 0.1 * jax.random.normal(kb, (c,))
        mean = 0.1 * jax.random.normal(km, (c,))
        var = 0.5 + jax.random.uniform(kv, (c,))
        return fold_bn(gamma, beta, mean, var)

    # 1x1 convs stored as (Cin, Cout); 3x3 as (3,3,Cin,Cout) -> (9, Cin, Cout).
    w1 = 0.3 * jax.random.normal(ks[0], (inplanes, group_width), jnp.float32)
    w2 = 0.2 * jax.random.normal(ks[1], (3, 3, group_width, group_width), jnp.float32)
    w3 = 0.3 * jax.random.normal(ks[2], (group_width, out_ch), jnp.float32)
    s1, b1 = bn(ks[3], ks[4], ks[5], ks[6], group_width)
    s2, b2 = bn(ks[7], ks[8], ks[9], ks[10], group_width)
    s3, b3 = bn(ks[11], ks[4], ks[7], ks[10], out_ch)
    return {
        "w1": w1, "s1": s1, "b1": b1,
        "w2": w2.reshape(9, group_width, group_width), "s2": s2, "b2": b2,
        "w3": w3, "s3": s3, "b3": b3,
    }


def reference_forward(x_nchw, params):
    """Pure-XLA reference with the same math (bf16 conv operands, f32 accumulation)."""
    x = jnp.transpose(x_nchw, (0, 2, 3, 1)).astype(jnp.float32)
    dn = ("NHWC", "HWIO", "NHWC")

    def conv(a, wt, padding):
        return jax.lax.conv_general_dilated(
            a.astype(jnp.bfloat16), wt.astype(jnp.bfloat16), (1, 1), padding,
            dimension_numbers=dn, preferred_element_type=jnp.float32)

    out = conv(x, params["w1"][None, None], "VALID")
    out = jnp.maximum(out * params["s1"] + params["b1"], 0.0)

    gw = out.shape[-1]
    out = conv(out, params["w2"].reshape(3, 3, gw, gw), ((1, 1), (1, 1)))
    out = jnp.maximum(out * params["s2"] + params["b2"], 0.0)

    out = conv(out, params["w3"][None, None], "VALID")
    out = out * params["s3"] + params["b3"] + x
    out = jnp.maximum(out, 0.0)
    return jnp.transpose(out, (0, 3, 1, 2))


if __name__ == "__main__":
    # Smallest config where the residual path is valid (inplanes == planes*4) and
    # the output channel dim is lane-dense (Cout = 128): spatial 16x16, batch 2.
    N, inplanes, planes, H, W = 2, 128, 32, 16, 16
    key = jax.random.PRNGKey(0)
    k_in, k_par = jax.random.split(key)
    x = jax.random.normal(k_in, (N, inplanes, H, W), jnp.float32)   # NCHW like PyTorch
    params = make_params(k_par, inplanes, planes)

    out = jax.block_until_ready(jax.jit(bottleneck_forward)(x, params))
    ref = jax.block_until_ready(reference_forward(x, params))

    np.testing.assert_allclose(np.asarray(out), np.asarray(ref), rtol=1e-2, atol=1e-2)
    assert out.shape == (N, planes * 4, H, W)
    print("KERNEL_OK")
</pallas_src>

<mosaic_0001>
module attributes {stable_mosaic.version = 11 : i64} {
  func.func @_bottleneck_kernel(%arg0: i32, %arg1: i32, %arg2: memref<1x8x16x128xf32, #tpu.memory_space<vmem>>, %arg3: memref<1x1x16x128xf32, #tpu.memory_space<vmem>>, %arg4: memref<1x1x16x128xf32, #tpu.memory_space<vmem>>, %arg5: memref<128x32xbf16, #tpu.memory_space<vmem>>, %arg6: memref<1x32xf32, #tpu.memory_space<vmem>>, %arg7: memref<1x32xf32, #tpu.memory_space<vmem>>, %arg8: memref<9x32x32xbf16, #tpu.memory_space<vmem>>, %arg9: memref<1x32xf32, #tpu.memory_space<vmem>>, %arg10: memref<1x32xf32, #tpu.memory_space<vmem>>, %arg11: memref<32x128xbf16, #tpu.memory_space<vmem>>, %arg12: memref<1x128xf32, #tpu.memory_space<vmem>>, %arg13: memref<1x128xf32, #tpu.memory_space<vmem>>, %arg14: memref<1x8x16x128xf32, #tpu.memory_space<vmem>>, %arg15: memref<3x10x16x32xbf16, #tpu.memory_space<vmem>>, %arg16: memref<8x16x32xf32, #tpu.memory_space<vmem>>) attributes {dimension_semantics = [#tpu.dimension_semantics<parallel>, #tpu.dimension_semantics<parallel>], iteration_bounds = array<i64: 2, 2>, scalar_prefetch = 0 : i64, scratch_operands = 2 : i64, tpu.core_type = #tpu.core_type<tc>, window_params = [{transform_indices = @transform_0, window_bounds = array<i64: 1, 8, 16, 128>}, {transform_indices = @transform_1, window_bounds = array<i64: 1, 1, 16, 128>}, {transform_indices = @transform_2, window_bounds = array<i64: 1, 1, 16, 128>}, {pipeline_mode = #tpu.pipeline_mode<synchronous>, transform_indices = @transform_3, window_bounds = array<i64: 128, 32>}, {pipeline_mode = #tpu.pipeline_mode<synchronous>, transform_indices = @transform_4, window_bounds = array<i64: 1, 32>}, {pipeline_mode = #tpu.pipeline_mode<synchronous>, transform_indices = @transform_5, window_bounds = array<i64: 1, 32>}, {pipeline_mode = #tpu.pipeline_mode<synchronous>, transform_indices = @transform_6, window_bounds = array<i64: 9, 32, 32>}, {pipeline_mode = #tpu.pipeline_mode<synchronous>, transform_indices = @transform_7, window_bounds = array<i64: 1, 32>}, {pipeline_mode = #tpu.pipeline_mode<synchronous>, transform_indices = @transform_8, window_bounds = array<i64: 1, 32>}, {pipeline_mode = #tpu.pipeline_mode<synchronous>, transform_indices = @transform_9, window_bounds = array<i64: 32, 128>}, {pipeline_mode = #tpu.pipeline_mode<synchronous>, transform_indices = @transform_10, window_bounds = array<i64: 1, 128>}, {pipeline_mode = #tpu.pipeline_mode<synchronous>, transform_indices = @transform_11, window_bounds = array<i64: 1, 128>}, {transform_indices = @transform_12, window_bounds = array<i64: 1, 8, 16, 128>}]} {
    %c0 = arith.constant 0 : index
    %c0_0 = arith.constant 0 : index
    %0 = vector.load %arg5[%c0, %c0_0] : memref<128x32xbf16, #tpu.memory_space<vmem>>, vector<128x32xbf16>
    %c0_1 = arith.constant 0 : index
    %c0_2 = arith.constant 0 : index
    %1 = vector.load %arg6[%c0_1, %c0_2] : memref<1x32xf32, #tpu.memory_space<vmem>>, vector<1x32xf32>
    %2 = vector.shape_cast %1 : vector<1x32xf32> to vector<32xf32>
    %c0_3 = arith.constant 0 : index
    %c0_4 = arith.constant 0 : index
    %3 = vector.load %arg7[%c0_3, %c0_4] : memref<1x32xf32, #tpu.memory_space<vmem>>, vector<1x32xf32>
    %4 = vector.shape_cast %3 : vector<1x32xf32> to vector<32xf32>
    %c0_5 = arith.constant 0 : index
    %c0_6 = arith.constant 0 : index
    %c0_7 = arith.constant 0 : index
    %c0_8 = arith.constant 0 : index
    %5 = vector.load %arg2[%c0_5, %c0_6, %c0_7, %c0_8] : memref<1x8x16x128xf32, #tpu.memory_space<vmem>>, vector<1x8x16x128xf32>
    %6 = vector.shape_cast %5 : vector<1x8x16x128xf32> to vector<8x16x128xf32>
    %7 = arith.truncf %6 : vector<8x16x128xf32> to vector<8x16x128xbf16>
    %cst = arith.constant dense<0.000000e+00> : vector<8x16x32xf32>
    %8 = tpu.matmul %7, %0, %cst {dimension_numbers = #tpu.dot_dimension_numbers<[2], [0], [0, 1], [1], [0, 0, 0, 1, 1, 1], [], []>} : vector<8x16x128xbf16>, vector<128x32xbf16>, vector<8x16x32xf32> -> vector<8x16x32xf32>
    %9 = vector.shape_cast %2 : vector<32xf32> to vector<1x1x32xf32>
    %10 = vector.broadcast %9 : vector<1x1x32xf32> to vector<8x16x32xf32>
    %11 = arith.mulf %8, %10 : vector<8x16x32xf32>
    %12 = vector.shape_cast %4 : vector<32xf32> to vector<1x1x32xf32>
    %13 = vector.broadcast %12 : vector<1x1x32xf32> to vector<8x16x32xf32>
    %14 = arith.addf %11, %13 : vector<8x16x32xf32>
    %cst_9 = arith.constant 0.000000e+00 : f32
    %15 = vector.broadcast %cst_9 : f32 to vector<8x16x32xf32>
    %16 = arith.maximumf %14, %15 : vector<8x16x32xf32>
    %c0_10 = arith.constant 0 : index
    %c0_11 = arith.constant 0 : index
    %c0_12 = arith.constant 0 : index
    %c0_13 = arith.constant 0 : index
    %17 = vector.load %arg3[%c0_10, %c0_11, %c0_12, %c0_13] : memref<1x1x16x128xf32, #tpu.memory_space<vmem>>, vector<1x1x16x128xf32>
    %18 = vector.shape_cast %17 : vector<1x1x16x128xf32> to vector<16x128xf32>
    %19 = arith.truncf %18 : vector<16x128xf32> to vector<16x128xbf16>
    %cst_14 = arith.constant dense<0.000000e+00> : vector<16x32xf32>
    %20 = tpu.matmul %19, %0, %cst_14 {dimension_numbers = #tpu.dot_dimension_numbers<[1], [0], [0], [1], [0, 0, 1, 1], [], []>} : vector<16x128xbf16>, vector<128x32xbf16>, vector<16x32xf32> -> vector<16x32xf32>
    %21 = vector.shape_cast %2 : vector<32xf32> to vector<1x32xf32>
    %22 = vector.broadcast %21 : vector<1x32xf32> to vector<16x32xf32>
    %23 = arith.mulf %20, %22 : vector<16x32xf32>
    %24 = vector.shape_cast %4 : vector<32xf32> to vector<1x32xf32>
    %25 = vector.broadcast %24 : vector<1x32xf32> to vector<16x32xf32>
    %26 = arith.addf %23, %25 : vector<16x32xf32>
    %cst_15 = arith.constant 0.000000e+00 : f32
    %27 = vector.broadcast %cst_15 : f32 to vector<16x32xf32>
    %28 = arith.maximumf %26, %27 : vector<16x32xf32>
    %c0_16 = arith.constant 0 : index
    %c0_17 = arith.constant 0 : index
    %c0_18 = arith.constant 0 : index
    %c0_19 = arith.constant 0 : index
    %29 = vector.load %arg4[%c0_16, %c0_17, %c0_18, %c0_19] : memref<1x1x16x128xf32, #tpu.memory_space<vmem>>, vector<1x1x16x128xf32>
    %30 = vector.shape_cast %29 : vector<1x1x16x128xf32> to vector<16x128xf32>
    %31 = arith.truncf %30 : vector<16x128xf32> to vector<16x128xbf16>
    %cst_20 = arith.constant dense<0.000000e+00> : vector<16x32xf32>
    %32 = tpu.matmul %31, %0, %cst_20 {dimension_numbers = #tpu.dot_dimension_numbers<[1], [0], [0], [1], [0, 0, 1, 1], [], []>} : vector<16x128xbf16>, vector<128x32xbf16>, vector<16x32xf32> -> vector<16x32xf32>
    %33 = vector.shape_cast %2 : vector<32xf32> to vector<1x32xf32>
    %34 = vector.broadcast %33 : vector<1x32xf32> to vector<16x32xf32>
    %35 = arith.mulf %32, %34 : vector<16x32xf32>
    %36 = vector.shape_cast %4 : vector<32xf32> to vector<1x32xf32>
    %37 = vector.broadcast %36 : vector<1x32xf32> to vector<16x32xf32>
    %38 = arith.addf %35, %37 : vector<16x32xf32>
    %cst_21 = arith.constant 0.000000e+00 : f32
    %39 = vector.broadcast %cst_21 : f32 to vector<16x32xf32>
    %40 = arith.maximumf %38, %39 : vector<16x32xf32>
    %c0_i32 = arith.constant 0 : i32
    %41 = arith.cmpi sgt, %arg1, %c0_i32 : i32
    %42 = arith.extui %41 : i1 to i32
    %43 = arith.sitofp %42 : i32 to f32
    %44 = vector.broadcast %43 : f32 to vector<16x32xf32>
    %45 = arith.mulf %28, %44 : vector<16x32xf32>
    %c1_i32 = arith.constant 1 : i32
    %46 = arith.cmpi slt, %arg1, %c1_i32 : i32
    %47 = arith.extui %46 : i1 to i32
    %48 = arith.sitofp %47 : i32 to f32
    %49 = vector.broadcast %48 : f32 to vector<16x32xf32>
    %50 = arith.mulf %40, %49 : vector<16x32xf32>
    %51 = vector.shape_cast %45 : vector<16x32xf32> to vector<1x16x32xf32>
    %52 = vector.shape_cast %50 : vector<16x32xf32> to vector<1x16x32xf32>
    %53 = tpu.concatenate %51, %16, %52 in 0 : vector<1x16x32xf32>, vector<8x16x32xf32>, vector<1x16x32xf32> -> vector<10x16x32xf32>
    %cst_22 = arith.constant 0.000000e+00 : f32
    %54 = vector.broadcast %cst_22 : f32 to vector<10x1x32xf32>
    %55 = arith.truncf %53 : vector<10x16x32xf32> to vector<10x16x32xbf16>
    %c1 = arith.constant 1 : index
    %c0_23 = arith.constant 0 : index
    %c0_24 = arith.constant 0 : index
    %c0_25 = arith.constant 0 : index
    %56 = vector.load %arg15[%c1, %c0_23, %c0_24, %c0_25] : memref<3x10x16x32xbf16, #tpu.memory_space<vmem>>, vector<1x10x16x32xbf16>
    %57 = vector.shape_cast %56 : vector<1x10x16x32xbf16> to vector<10x16x32xbf16>
    %58 = vector.shape_cast %55 : vector<10x16x32xbf16> to vector<1x10x16x32xbf16>
    tpu.vector_store %arg15[%c1, %c0_23, %c0_24, %c0_25], %58 {strides = array<i32>} : memref<3x10x16x32xbf16, #tpu.memory_space<vmem>>, vector<1x10x16x32xbf16>,
    %59 = vector.extract_strided_slice %53 {offsets = [0, 0, 0], sizes = [10, 15, 32], strides = [1, 1, 1]} : vector<10x16x32xf32> to vector<10x15x32xf32>
    %60 = tpu.concatenate %54, %59 in 1 : vector<10x1x32xf32>, vector<10x15x32xf32> -> vector<10x16x32xf32>
    %61 = arith.truncf %60 : vector<10x16x32xf32> to vector<10x16x32xbf16>
    %c0_26 = arith.constant 0 : index
    %c0_27 = arith.constant 0 : index
    %c0_28 = arith.constant 0 : index
    %c0_29 = arith.constant 0 : index
    %62 = vector.load %arg15[%c0_26, %c0_27, %c0_28, %c0_29] : memref<3x10x16x32xbf16, #tpu.memory_space<vmem>>, vector<1x10x16x32xbf16>
    %63 = vector.shape_cast %62 : vector<1x10x16x32xbf16> to vector<10x16x32xbf16>
    %64 = vector.shape_cast %61 : vector<10x16x32xbf16> to vector<1x10x16x32xbf16>
    tpu.vector_store %arg15[%c0_26, %c0_27, %c0_28, %c0_29], %64 {strides = array<i32>} : memref<3x10x16x32xbf16, #tpu.memory_space<vmem>>, vector<1x10x16x32xbf16>,
    %65 = vector.extract_strided_slice %53 {offsets = [0, 1, 0], sizes = [10, 15, 32], strides = [1, 1, 1]} : vector<10x16x32xf32> to vector<10x15x32xf32>
    %66 = tpu.concatenate %65, %54 in 1 : vector<10x15x32xf32>, vector<10x1x32xf32> -> vector<10x16x32xf32>
    %67 = arith.truncf %66 : vector<10x16x32xf32> to vector<10x16x32xbf16>
    %c2 = arith.constant 2 : index
    %c0_30 = arith.constant 0 : index
    %c0_31 = arith.constant 0 : index
    %c0_32 = arith.constant 0 : index
    %68 = vector.load %arg15[%c2, %c0_30, %c0_31, %c0_32] : memref<3x10x16x32xbf16, #tpu.memory_space<vmem>>, vector<1x10x16x32xbf16>
    %69 = vector.shape_cast %68 : vector<1x10x16x32xbf16> to vector<10x16x32xbf16>
    %70 = vector.shape_cast %67 : vector<10x16x32xbf16> to vector<1x10x16x32xbf16>
    tpu.vector_store %arg15[%c2, %c0_30, %c0_31, %c0_32], %70 {strides = array<i32>} : memref<3x10x16x32xbf16, #tpu.memory_space<vmem>>, vector<1x10x16x32xbf16>,
    %cst_33 = arith.constant 0.000000e+00 : f32
    %71 = vector.broadcast %cst_33 : f32 to vector<8x16x32xf32>
    %c0_34 = arith.constant 0 : index
    %c0_35 = arith.constant 0 : index
    %c0_36 = arith.constant 0 : index
    %72 = vector.load %arg16[%c0_34, %c0_35, %c0_36] : memref<8x16x32xf32, #tpu.memory_space<vmem>>, vector<8x16x32xf32>
    tpu.vector_store %arg16[%c0_34, %c0_35, %c0_36], %71 {strides = array<i32>} : memref<8x16x32xf32, #tpu.memory_space<vmem>>, vector<8x16x32xf32>,
    %c0_37 = arith.constant 0 : index
    %c0_38 = arith.constant 0 : index
    %c0_39 = arith.constant 0 : index
    %c0_40 = arith.constant 0 : index
    %73 = vector.load %arg15[%c0_37, %c0_38, %c0_39, %c0_40] : memref<3x10x16x32xbf16, #tpu.memory_space<vmem>>, vector<1x8x16x32xbf16>
    %74 = vector.shape_cast %73 : vector<1x8x16x32xbf16> to vector<8x16x32xbf16>
    %c0_41 = arith.constant 0 : index
    %c0_42 = arith.constant 0 : index
    %c0_43 = arith.constant 0 : index
    %75 = vector.load %arg16[%c0_41, %c0_42, %c0_43] : memref<8x16x32xf32, #tpu.memory_space<vmem>>, vector<8x16x32xf32>
    %c0_44 = arith.constant 0 : index
    %c0_45 = arith.constant 0 : index
    %c0_46 = arith.constant 0 : index
    %76 = vector.load %arg8[%c0_44, %c0_45, %c0_46] : memref<9x32x32xbf16, #tpu.memory_space<vmem>>, vector<1x32x32xbf16>
    %77 = vector.shape_cast %76 : vector<1x32x32xbf16> to vector<32x32xbf16>
    %cst_47 = arith.constant dense<0.000000e+00> : vector<8x16x32xf32>
    %78 = tpu.matmul %74, %77, %cst_47 {dimension_numbers = #tpu.dot_dimension_numbers<[2], [0], [0, 1], [1], [0, 0, 0, 1, 1, 1], [], []>} : vector<8x16x32xbf16>, vector<32x32xbf16>, vector<8x16x32xf32> -> vector<8x16x32xf32>
    %79 = arith.addf %75, %78 : vector<8x16x32xf32>
    %c0_48 = arith.constant 0 : index
    %c0_49 = arith.constant 0 : index
    %c0_50 = arith.constant 0 : index
    %80 = vector.load %arg16[%c0_48, %c0_49, %c0_50] : memref<8x16x32xf32, #tpu.memory_space<vmem>>, vector<8x16x32xf32>
    tpu.vector_store %arg16[%c0_48, %c0_49, %c0_50], %79 {strides = array<i32>} : memref<8x16x32xf32, #tpu.memory_space<vmem>>, vector<8x16x32xf32>,
    %c1_51 = arith.constant 1 : index
    %c0_52 = arith.constant 0 : index
    %c0_53 = arith.constant 0 : index
    %c0_54 = arith.constant 0 : index
    %81 = vector.load %arg15[%c1_51, %c0_52, %c0_53, %c0_54] : memref<3x10x16x32xbf16, #tpu.memory_space<vmem>>, vector<1x8x16x32xbf16>
    %82 = vector.shape_cast %81 : vector<1x8x16x32xbf16> to vector<8x16x32xbf16>
    %c0_55 = arith.constant 0 : index
    %c0_56 = arith.constant 0 : index
    %c0_57 = arith.constant 0 : index
    %83 = vector.load %arg16[%c0_55, %c0_56, %c0_57] : memref<8x16x32xf32, #tpu.memory_space<vmem>>, vector<8x16x32xf32>
    %c1_58 = arith.constant 1 : index
    %c0_59 = arith.constant 0 : index
    %c0_60 = arith.constant 0 : index
    %84 = vector.load %arg8[%c1_58, %c0_59, %c0_60] : memref<9x32x32xbf16, #tpu.memory_space<vmem>>, vector<1x32x32xbf16>
    %85 = vector.shape_cast %84 : vector<1x32x32xbf16> to vector<32x32xbf16>
    %cst_61 = arith.constant dense<0.000000e+00> : vector<8x16x32xf32>
    %86 = tpu.matmul %82, %85, %cst_61 {dimension_numbers = #tpu.dot_dimension_numbers<[2], [0], [0, 1], [1], [0, 0, 0, 1, 1, 1], [], []>} : vector<8x16x32xbf16>, vector<32x32xbf16>, vector<8x16x32xf32> -> vector<8x16x32xf32>
    %87 = arith.addf %83, %86 : vector<8x16x32xf32>
    %c0_62 = arith.constant 0 : index
    %c0_63 = arith.constant 0 : index
    %c0_64 = arith.constant 0 : index
    %88 = vector.load %arg16[%c0_62, %c0_63, %c0_64] : memref<8x16x32xf32, #tpu.memory_space<vmem>>, vector<8x16x32xf32>
    tpu.vector_store %arg16[%c0_62, %c0_63, %c0_64], %87 {strides = array<i32>} : memref<8x16x32xf32, #tpu.memory_space<vmem>>, vector<8x16x32xf32>,
    %c2_65 = arith.constant 2 : index
    %c0_66 = arith.constant 0 : index
    %c0_67 = arith.constant 0 : index
    %c0_68 = arith.constant 0 : index
    %89 = vector.load %arg15[%c2_65, %c0_66, %c0_67, %c0_68] : memref<3x10x16x32xbf16, #tpu.memory_space<vmem>>, vector<1x8x16x32xbf16>
    %90 = vector.shape_cast %89 : vector<1x8x16x32xbf16> to vector<8x16x32xbf16>
    %c0_69 = arith.constant 0 : index
    %c0_70 = arith.constant 0 : index
    %c0_71 = arith.constant 0 : index
    %91 = vector.load %arg16[%c0_69, %c0_70, %c0_71] : memref<8x16x32xf32, #tpu.memory_space<vmem>>, vector<8x16x32xf32>
    %c2_72 = arith.constant 2 : index
    %c0_73 = arith.constant 0 : index
    %c0_74 = arith.constant 0 : index
    %92 = vector.load %arg8[%c2_72, %c0_73, %c0_74] : memref<9x32x32xbf16, #tpu.memory_space<vmem>>, vector<1x32x32xbf16>
    %93 = vector.shape_cast %92 : vector<1x32x32xbf16> to vector<32x32xbf16>
    %cst_75 = arith.constant dense<0.000000e+00> : vector<8x16x32xf32>
    %94 = tpu.matmul %90, %93, %cst_75 {dimension_numbers = #tpu.dot_dimension_numbers<[2], [0], [0, 1], [1], [0, 0, 0, 1, 1, 1], [], []>} : vector<8x16x32xbf16>, vector<32x32xbf16>, vector<8x16x32xf32> -> vector<8x16x32xf32>
    %95 = arith.addf %91, %94 : vector<8x16x32xf32>
    %c0_76 = arith.constant 0 : index
    %c0_77 = arith.constant 0 : index
    %c0_78 = arith.constant 0 : index
    %96 = vector.load %arg16[%c0_76, %c0_77, %c0_78] : memref<8x16x32xf32, #tpu.memory_space<vmem>>, vector<8x16x32xf32>
    tpu.vector_store %arg16[%c0_76, %c0_77, %c0_78], %95 {strides = array<i32>} : memref<8x16x32xf32, #tpu.memory_space<vmem>>, vector<8x16x32xf32>,
    %c0_79 = arith.constant 0 : index
    %c1_80 = arith.constant 1 : index
    %c0_81 = arith.constant 0 : index
    %c0_82 = arith.constant 0 : index
    %97 = vector.load %arg15[%c0_79, %c1_80, %c0_81, %c0_82] : memref<3x10x16x32xbf16, #tpu.memory_space<vmem>>, vector<1x8x16x32xbf16>
    %98 = vector.shape_cast %97 : vector<1x8x16x32xbf16> to vector<8x16x32xbf16>
    %c0_83 = arith.constant 0 : index
    %c0_84 = arith.constant 0 : index
    %c0_85 = arith.constant 0 : index
    %99 = vector.load %arg16[%c0_83, %c0_84, %c0_85] : memref<8x16x32xf32, #tpu.memory_space<vmem>>, vector<8x16x32xf32>
    %c3 = arith.constant 3 : index
    %c0_86 = arith.constant 0 : index
    %c0_87 = arith.constant 0 : index
    %100 = vector.load %arg8[%c3, %c0_86, %c0_87] : memref<9x32x32xbf16, #tpu.memory_space<vmem>>, vector<1x32x32xbf16>
    %101 = vector.shape_cast %100 : vector<1x32x32xbf16> to vector<32x32xbf16>
    %cst_88 = arith.constant dense<0.000000e+00> : vector<8x16x32xf32>
    %102 = tpu.matmul %98, %101, %cst_88 {dimension_numbers = #tpu.dot_dimension_numbers<[2], [0], [0, 1], [1], [0, 0, 0, 1, 1, 1], [], []>} : vector<8x16x32xbf16>, vector<32x32xbf16>, vector<8x16x32xf32> -> vector<8x16x32xf32>
    %103 = arith.addf %99, %102 : vector<8x16x32xf32>
    %c0_89 = arith.constant 0 : index
    %c0_90 = arith.constant 0 : index
    %c0_91 = arith.constant 0 : index
    %104 = vector.load %arg16[%c0_89, %c0_90, %c0_91] : memref<8x16x32xf32, #tpu.memory_space<vmem>>, vector<8x16x32xf32>
    tpu.vector_store %arg16[%c0_89, %c0_90, %c0_91], %103 {strides = array<i32>} : memref<8x16x32xf32, #tpu.memory_space<vmem>>, vector<8x16x32xf32>,
    %c1_92 = arith.constant 1 : index
    %c1_93 = arith.constant 1 : index
    %c0_94 = arith.constant 0 : index
    %c0_95 = arith.constant 0 : index
    %105 = vector.load %arg15[%c1_92, %c1_93, %c0_94, %c0_95] : memref<3x10x16x32xbf16, #tpu.memory_space<vmem>>, vector<1x8x16x32xbf16>
    %106 = vector.shape_cast %105 : vector<1x8x16x32xbf16> to vector<8x16x32xbf16>
    %c0_96 = arith.constant 0 : index
    %c0_97 = arith.constant 0 : index
    %c0_98 = arith.constant 0 : index
    %107 = vector.load %arg16[%c0_96, %c0_97, %c0_98] : memref<8x16x32xf32, #tpu.memory_space<vmem>>, vector<8x16x32xf32>
    %c4 = arith.constant 4 : index
    %c0_99 = arith.constant 0 : index
    %c0_100 = arith.constant 0 : index
    %108 = vector.load %arg8[%c4, %c0_99, %c0_100] : memref<9x32x32xbf16, #tpu.memory_space<vmem>>, vector<1x32x32xbf16>
    %109 = vector.shape_cast %108 : vector<1x32x32xbf16> to vector<32x32xbf16>
    %cst_101 = arith.constant dense<0.000000e+00> : vector<8x16x32xf32>
    %110 = tpu.matmul %106, %109, %cst_101 {dimension_numbers = #tpu.dot_dimension_numbers<[2], [0], [0, 1], [1], [0, 0, 0, 1, 1, 1], [], []>} : vector<8x16x32xbf16>, vector<32x32xbf16>, vector<8x16x32xf32> -> vector<8x16x32xf32>
    %111 = arith.addf %107, %110 : vector<8x16x32xf32>
    %c0_102 = arith.constant 0 : index
    %c0_103 = arith.constant 0 : index
    %c0_104 = arith.constant 0 : index
    %112 = vector.load %arg16[%c0_102, %c0_103, %c0_104] : memref<8x16x32xf32, #tpu.memory_space<vmem>>, vector<8x16x32xf32>
    tpu.vector_store %arg16[%c0_102, %c0_103, %c0_104], %111 {strides = array<i32>} : memref<8x16x32xf32, #tpu.memory_space<vmem>>, vector<8x16x32xf32>,
    %c2_105 = arith.constant 2 : index
    %c1_106 = arith.constant 1 : index
    %c0_107 = arith.constant 0 : index
    %c0_108 = arith.constant 0 : index
    %113 = vector.load %arg15[%c2_105, %c1_106, %c0_107, %c0_108] : memref<3x10x16x32xbf16, #tpu.memory_space<vmem>>, vector<1x8x16x32xbf16>
    %114 = vector.shape_cast %113 : vector<1x8x16x32xbf16> to vector<8x16x32xbf16>
    %c0_109 = arith.constant 0 : index
    %c0_110 = arith.constant 0 : index
    %c0_111 = arith.constant 0 : index
    %115 = vector.load %arg16[%c0_109, %c0_110, %c0_111] : memref<8x16x32xf32, #tpu.memory_space<vmem>>, vector<8x16x32xf32>
    %c5 = arith.constant 5 : index
    %c0_112 = arith.constant 0 : index
    %c0_113 = arith.constant 0 : index
    %116 = vector.load %arg8[%c5, %c0_112, %c0_113] : memref<9x32x32xbf16, #tpu.memory_space<vmem>>, vector<1x32x32xbf16>
    %117 = vector.shape_cast %116 : vector<1x32x32xbf16> to vector<32x32xbf16>
    %cst_114 = arith.constant dense<0.000000e+00> : vector<8x16x32xf32>
    %118 = tpu.matmul %114, %117, %cst_114 {dimension_numbers = #tpu.dot_dimension_numbers<[2], [0], [0, 1], [1], [0, 0, 0, 1, 1, 1], [], []>} : vector<8x16x32xbf16>, vector<32x32xbf16>, vector<8x16x32xf32> -> vector<8x16x32xf32>
    %119 = arith.addf %115, %118 : vector<8x16x32xf32>
    %c0_115 = arith.constant 0 : index
    %c0_116 = arith.constant 0 : index
    %c0_117 = arith.constant 0 : index
    %120 = vector.load %arg16[%c0_115, %c0_116, %c0_117] : memref<8x16x32xf32, #tpu.memory_space<vmem>>, vector<8x16x32xf32>
    tpu.vector_store %arg16[%c0_115, %c0_116, %c0_117], %119 {strides = array<i32>} : memref<8x16x32xf32, #tpu.memory_space<vmem>>, vector<8x16x32xf32>,
    %c0_118 = arith.constant 0 : index
    %c2_119 = arith.constant 2 : index
    %c0_120 = arith.constant 0 : index
    %c0_121 = arith.constant 0 : index
    %121 = vector.load %arg15[%c0_118, %c2_119, %c0_120, %c0_121] : memref<3x10x16x32xbf16, #tpu.memory_space<vmem>>, vector<1x8x16x32xbf16>
    %122 = vector.shape_cast %121 : vector<1x8x16x32xbf16> to vector<8x16x32xbf16>
    %c0_122 = arith.constant 0 : index
    %c0_123 = arith.constant 0 : index
    %c0_124 = arith.constant 0 : index
    %123 = vector.load %arg16[%c0_122, %c0_123, %c0_124] : memref<8x16x32xf32, #tpu.memory_space<vmem>>, vector<8x16x32xf32>
    %c6 = arith.constant 6 : index
    %c0_125 = arith.constant 0 : index
    %c0_126 = arith.constant 0 : index
    %124 = vector.load %arg8[%c6, %c0_125, %c0_126] : memref<9x32x32xbf16, #tpu.memory_space<vmem>>, vector<1x32x32xbf16>
    %125 = vector.shape_cast %124 : vector<1x32x32xbf16> to vector<32x32xbf16>
    %cst_127 = arith.constant dense<0.000000e+00> : vector<8x16x32xf32>
    %126 = tpu.matmul %122, %125, %cst_127 {dimension_numbers = #tpu.dot_dimension_numbers<[2], [0], [0, 1], [1], [0, 0, 0, 1, 1, 1], [], []>} : vector<8x16x32xbf16>, vector<32x32xbf16>, vector<8x16x32xf32> -> vector<8x16x32xf32>
    %127 = arith.addf %123, %126 : vector<8x16x32xf32>
    %c0_128 = arith.constant 0 : index
    %c0_129 = arith.constant 0 : index
    %c0_130 = arith.constant 0 : index
    %128 = vector.load %arg16[%c0_128, %c0_129, %c0_130] : memref<8x16x32xf32, #tpu.memory_space<vmem>>, vector<8x16x32xf32>
    tpu.vector_store %arg16[%c0_128, %c0_129, %c0_130], %127 {strides = array<i32>} : memref<8x16x32xf32, #tpu.memory_space<vmem>>, vector<8x16x32xf32>,
    %c1_131 = arith.constant 1 : index
    %c2_132 = arith.constant 2 : index
    %c0_133 = arith.constant 0 : index
    %c0_134 = arith.constant 0 : index
    %129 = vector.load %arg15[%c1_131, %c2_132, %c0_133, %c0_134] : memref<3x10x16x32xbf16, #tpu.memory_space<vmem>>, vector<1x8x16x32xbf16>
    %130 = vector.shape_cast %129 : vector<1x8x16x32xbf16> to vector<8x16x32xbf16>
    %c0_135 = arith.constant 0 : index
    %c0_136 = arith.constant 0 : index
    %c0_137 = arith.constant 0 : index
    %131 = vector.load %arg16[%c0_135, %c0_136, %c0_137] : memref<8x16x32xf32, #tpu.memory_space<vmem>>, vector<8x16x32xf32>
    %c7 = arith.constant 7 : index
    %c0_138 = arith.constant 0 : index
    %c0_139 = arith.constant 0 : index
    %132 = vector.load %arg8[%c7, %c0_138, %c0_139] : memref<9x32x32xbf16, #tpu.memory_space<vmem>>, vector<1x32x32xbf16>
    %133 = vector.shape_cast %132 : vector<1x32x32xbf16> to vector<32x32xbf16>
    %cst_140 = arith.constant dense<0.000000e+00> : vector<8x16x32xf32>
    %134 = tpu.matmul %130, %133, %cst_140 {dimension_numbers = #tpu.dot_dimension_numbers<[2], [0], [0, 1], [1], [0, 0, 0, 1, 1, 1], [], []>} : vector<8x16x32xbf16>, vector<32x32xbf16>, vector<8x16x32xf32> -> vector<8x16x32xf32>
    %135 = arith.addf %131, %134 : vector<8x16x32xf32>
    %c0_141 = arith.constant 0 : index
    %c0_142 = arith.constant 0 : index
    %c0_143 = arith.constant 0 : index
    %136 = vector.load %arg16[%c0_141, %c0_142, %c0_143] : memref<8x16x32xf32, #tpu.memory_space<vmem>>, vector<8x16x32xf32>
    tpu.vector_store %arg16[%c0_141, %c0_142, %c0_143], %135 {strides = array<i32>} : memref<8x16x32xf32, #tpu.memory_space<vmem>>, vector<8x16x32xf32>,
    %c2_144 = arith.constant 2 : index
    %c2_145 = arith.constant 2 : index
    %c0_146 = arith.constant 0 : index
    %c0_147 = arith.constant 0 : index
    %137 = vector.load %arg15[%c2_144, %c2_145, %c0_146, %c0_147] : memref<3x10x16x32xbf16, #tpu.memory_space<vmem>>, vector<1x8x16x32xbf16>
    %138 = vector.shape_cast %137 : vector<1x8x16x32xbf16> to vector<8x16x32xbf16>
    %c0_148 = arith.constant 0 : index
    %c0_149 = arith.constant 0 : index
    %c0_150 = arith.constant 0 : index
    %139 = vector.load %arg16[%c0_148, %c0_149, %c0_150] : memref<8x16x32xf32, #tpu.memory_space<vmem>>, vector<8x16x32xf32>
    %c8 = arith.constant 8 : index
    %c0_151 = arith.constant 0 : index
    %c0_152 = arith.constant 0 : index
    %140 = vector.load %arg8[%c8, %c0_151, %c0_152] : memref<9x32x32xbf16, #tpu.memory_space<vmem>>, vector<1x32x32xbf16>
    %141 = vector.shape_cast %140 : vector<1x32x32xbf16> to vector<32x32xbf16>
    %cst_153 = arith.constant dense<0.000000e+00> : vector<8x16x32xf32>
    %142 = tpu.matmul %138, %141, %cst_153 {dimension_numbers = #tpu.dot_dimension_numbers<[2], [0], [0, 1], [1], [0, 0, 0, 1, 1, 1], [], []>} : vector<8x16x32xbf16>, vector<32x32xbf16>, vector<8x16x32xf32> -> vector<8x16x32xf32>
    %143 = arith.addf %139, %142 : vector<8x16x32xf32>
    %c0_154 = arith.constant 0 : index
    %c0_155 = arith.constant 0 : index
    %c0_156 = arith.constant 0 : index
    %144 = vector.load %arg16[%c0_154, %c0_155, %c0_156] : memref<8x16x32xf32, #tpu.memory_space<vmem>>, vector<8x16x32xf32>
    tpu.vector_store %arg16[%c0_154, %c0_155, %c0_156], %143 {strides = array<i32>} : memref<8x16x32xf32, #tpu.memory_space<vmem>>, vector<8x16x32xf32>,
    %c0_157 = arith.constant 0 : index
    %c0_158 = arith.constant 0 : index
    %c0_159 = arith.constant 0 : index
    %145 = vector.load %arg16[%c0_157, %c0_158, %c0_159] : memref<8x16x32xf32, #tpu.memory_space<vmem>>, vector<8x16x32xf32>
    %c0_160 = arith.constant 0 : index
    %c0_161 = arith.constant 0 : index
    %146 = vector.load %arg9[%c0_160, %c0_161] : memref<1x32xf32, #tpu.memory_space<vmem>>, vector<1x32xf32>
    %147 = vector.shape_cast %146 : vector<1x32xf32> to vector<32xf32>
    %148 = vector.shape_cast %147 : vector<32xf32> to vector<1x1x32xf32>
    %149 = vector.broadcast %148 : vector<1x1x32xf32> to vector<8x16x32xf32>
    %150 = arith.mulf %145, %149 : vector<8x16x32xf32>
    %c0_162 = arith.constant 0 : index
    %c0_163 = arith.constant 0 : index
    %151 = vector.load %arg10[%c0_162, %c0_163] : memref<1x32xf32, #tpu.memory_space<vmem>>, vector<1x32xf32>
    %152 = vector.shape_cast %151 : vector<1x32xf32> to vector<32xf32>
    %153 = vector.shape_cast %152 : vector<32xf32> to vector<1x1x32xf32>
    %154 = vector.broadcast %153 : vector<1x1x32xf32> to vector<8x16x32xf32>
    %155 = arith.addf %150, %154 : vector<8x16x32xf32>
    %cst_164 = arith.constant 0.000000e+00 : f32
    %156 = vector.broadcast %cst_164 : f32 to vector<8x16x32xf32>
    %157 = arith.maximumf %155, %156 : vector<8x16x32xf32>
    %158 = arith.truncf %157 : vector<8x16x32xf32> to vector<8x16x32xbf16>
    %c0_165 = arith.constant 0 : index
    %c0_166 = arith.constant 0 : index
    %159 = vector.load %arg11[%c0_165, %c0_166] : memref<32x128xbf16, #tpu.memory_space<vmem>>, vector<32x128xbf16>
    %cst_167 = arith.constant dense<0.000000e+00> : vector<8x16x128xf32>
    %160 = tpu.matmul %158, %159, %cst_167 {dimension_numbers = #tpu.dot_dimension_numbers<[2], [0], [0, 1], [1], [0, 0, 0, 1, 1, 1], [], []>} : vector<8x16x32xbf16>, vector<32x128xbf16>, vector<8x16x128xf32> -> vector<8x16x128xf32>
    %c0_168 = arith.constant 0 : index
    %c0_169 = arith.constant 0 : index
    %161 = vector.load %arg12[%c0_168, %c0_169] : memref<1x128xf32, #tpu.memory_space<vmem>>, vector<1x128xf32>
    %162 = vector.shape_cast %161 : vector<1x128xf32> to vector<128xf32>
    %163 = vector.shape_cast %162 : vector<128xf32> to vector<1x1x128xf32>
    %164 = vector.broadcast %163 : vector<1x1x128xf32> to vector<8x16x128xf32>
    %165 = arith.mulf %160, %164 : vector<8x16x128xf32>
    %c0_170 = arith.constant 0 : index
    %c0_171 = arith.constant 0 : index
    %166 = vector.load %arg13[%c0_170, %c0_171] : memref<1x128xf32, #tpu.memory_space<vmem>>, vector<1x128xf32>
    %167 = vector.shape_cast %166 : vector<1x128xf32> to vector<128xf32>
    %168 = vector.shape_cast %167 : vector<128xf32> to vector<1x1x128xf32>
    %169 = vector.broadcast %168 : vector<1x1x128xf32> to vector<8x16x128xf32>
    %170 = arith.addf %165, %169 : vector<8x16x128xf32>
    %171 = arith.addf %170, %6 : vector<8x16x128xf32>
    %cst_172 = arith.constant 0.000000e+00 : f32
    %172 = vector.broadcast %cst_172 : f32 to vector<8x16x128xf32>
    %173 = arith.maximumf %171, %172 : vector<8x16x128xf32>
    %c0_173 = arith.constant 0 : index
    %c0_174 = arith.constant 0 : index
    %c0_175 = arith.constant 0 : index
    %c0_176 = arith.constant 0 : index
    %174 = vector.load %arg14[%c0_173, %c0_174, %c0_175, %c0_176] : memref<1x8x16x128xf32, #tpu.memory_space<vmem>>, vector<1x8x16x128xf32>
    %175 = vector.shape_cast %174 : vector<1x8x16x128xf32> to vector<8x16x128xf32>
    %176 = vector.shape_cast %173 : vector<8x16x128xf32> to vector<1x8x16x128xf32>
    tpu.vector_store %arg14[%c0_173, %c0_174, %c0_175, %c0_176], %176 {strides = array<i32>} : memref<1x8x16x128xf32, #tpu.memory_space<vmem>>, vector<1x8x16x128xf32>,
    return
  }
  func.func @transform_0(%arg0: i32, %arg1: i32) -> (i32, i32, i32, i32) {
    %c0_i32 = arith.constant 0 : i32
    %c0_i32_0 = arith.constant 0 : i32
    %c0_i32_1 = arith.constant 0 : i32
    return %arg0, %arg1, %c0_i32, %c0_i32_0 : i32, i32, i32, i32
  }
  func.func @transform_1(%arg0: i32, %arg1: i32) -> (i32, i32, i32, i32) {
    %c8_i32 = arith.constant 8 : i32
    %0 = arith.muli %arg1, %c8_i32 : i32
    %c1_i32 = arith.constant 1 : i32
    %1 = arith.subi %0, %c1_i32 : i32
    %c0_i32 = arith.constant 0 : i32
    %2 = arith.maxsi %1, %c0_i32 : i32
    %c0_i32_0 = arith.constant 0 : i32
    %c0_i32_1 = arith.constant 0 : i32
    %c0_i32_2 = arith.constant 0 : i32
    return %arg0, %2, %c0_i32_0, %c0_i32_1 : i32, i32, i32, i32
  }
  func.func @transform_2(%arg0: i32, %arg1: i32) -> (i32, i32, i32, i32) {
    %c1_i32 = arith.constant 1 : i32
    %0 = arith.addi %arg1, %c1_i32 : i32
    %c8_i32 = arith.constant 8 : i32
    %1 = arith.muli %0, %c8_i32 : i32
    %c15_i32 = arith.constant 15 : i32
    %2 = arith.minsi %1, %c15_i32 : i32
    %c0_i32 = arith.constant 0 : i32
    %c0_i32_0 = arith.constant 0 : i32
    %c0_i32_1 = arith.constant 0 : i32
    return %arg0, %2, %c0_i32, %c0_i32_0 : i32, i32, i32, i32
  }
  func.func @transform_3(%arg0: i32, %arg1: i32) -> (i32, i32) {
    %c0_i32 = arith.constant 0 : i32
    %c0_i32_0 = arith.constant 0 : i32
    %c0_i32_1 = arith.constant 0 : i32
    return %c0_i32, %c0_i32_0 : i32, i32
  }
  func.func @transform_4(%arg0: i32, %arg1: i32) -> (i32, i32) {
    %c0_i32 = arith.constant 0 : i32
    %c0_i32_0 = arith.constant 0 : i32
    %c0_i32_1 = arith.constant 0 : i32
    return %c0_i32, %c0_i32_0 : i32, i32
  }
  func.func @transform_5(%arg0: i32, %arg1: i32) -> (i32, i32) {
    %c0_i32 = arith.constant 0 : i32
    %c0_i32_0 = arith.constant 0 : i32
    %c0_i32_1 = arith.constant 0 : i32
    return %c0_i32, %c0_i32_0 : i32, i32
  }
  func.func @transform_6(%arg0: i32, %arg1: i32) -> (i32, i32, i32) {
    %c0_i32 = arith.constant 0 : i32
    %c0_i32_0 = arith.constant 0 : i32
    %c0_i32_1 = arith.constant 0 : i32
    %c0_i32_2 = arith.constant 0 : i32
    return %c0_i32, %c0_i32_0, %c0_i32_1 : i32, i32, i32
  }
  func.func @transform_7(%arg0: i32, %arg1: i32) -> (i32, i32) {
    %c0_i32 = arith.constant 0 : i32
    %c0_i32_0 = arith.constant 0 : i32
    %c0_i32_1 = arith.constant 0 : i32
    return %c0_i32, %c0_i32_0 : i32, i32
  }
  func.func @transform_8(%arg0: i32, %arg1: i32) -> (i32, i32) {
    %c0_i32 = arith.constant 0 : i32
    %c0_i32_0 = arith.constant 0 : i32
    %c0_i32_1 = arith.constant 0 : i32
    return %c0_i32, %c0_i32_0 : i32, i32
  }
  func.func @transform_9(%arg0: i32, %arg1: i32) -> (i32, i32) {
    %c0_i32 = arith.constant 0 : i32
    %c0_i32_0 = arith.constant 0 : i32
    %c0_i32_1 = arith.constant 0 : i32
    return %c0_i32, %c0_i32_0 : i32, i32
  }
  func.func @transform_10(%arg0: i32, %arg1: i32) -> (i32, i32) {
    %c0_i32 = arith.constant 0 : i32
    %c0_i32_0 = arith.constant 0 : i32
    %c0_i32_1 = arith.constant 0 : i32
    return %c0_i32, %c0_i32_0 : i32, i32
  }
  func.func @transform_11(%arg0: i32, %arg1: i32) -> (i32, i32) {
    %c0_i32 = arith.constant 0 : i32
    %c0_i32_0 = arith.constant 0 : i32
    %c0_i32_1 = arith.constant 0 : i32
    return %c0_i32, %c0_i32_0 : i32, i32
  }
  func.func @transform_12(%arg0: i32, %arg1: i32) -> (i32, i32, i32, i32) {
    %c0_i32 = arith.constant 0 : i32
    %c0_i32_0 = arith.constant 0 : i32
    %c0_i32_1 = arith.constant 0 : i32
    return %arg0, %arg1, %c0_i32, %c0_i32_0 : i32, i32, i32, i32
  }
}

</mosaic_0001>

<bundles_post_ra>
// kernel: bottleneck_forward.1
= control target key start
LH: loop header
LB: loop body
LE: loop exit
PB: predicated region body
PF: predicated region fallthrough
CT: control target
= control target key end

     0   :  { %17 = vsyncpa [#allocation5], 0  ;;  %s5348_s0 = inlined_call_operand.vmem [shape: f32[2,16,16,128], index: 0, kind: input, shape index: {}, may-alias: {0,1,2}]   ;;  %s5349_s1 = inlined_call_operand.vmem [shape: f32[2,16,16,128], index: 1, kind: input, shape index: {}, may-alias: {0,1,2}]   ;;  %s5350_s2 = inlined_call_operand.vmem [shape: f32[2,16,16,128], index: 2, kind: input, shape index: {}, may-alias: {0,1,2}]   ;;  %s5351_s3 = inlined_call_operand.vmem [shape: bf16[128,32], index: 3, kind: input, shape index: {}]   ;;  %s5352_s4 = inlined_call_operand.vmem [shape: f32[1,32], index: 4, kind: input, shape index: {}]   ;;  %s5353_s5 = inlined_call_operand.vmem [shape: f32[1,32], index: 5, kind: input, shape index: {}]   ;;  %s5354_s6 = inlined_call_operand.vmem [shape: bf16[9,32,32], index: 6, kind: input, shape index: {}]   ;;  %s5355_s7 = inlined_call_operand.vmem [shape: f32[1,32], index: 7, kind: input, shape index: {}]   ;;  %s5356_s8 = inlined_call_operand.vmem [shape: f32[1,32], index: 8, kind: input, shape index: {}]   ;;  %s5357_s9 = inlined_call_operand.vmem [shape: bf16[32,128], index: 9, kind: input, shape index: {}]   ;;  %s5358_s10 = inlined_call_operand.vmem [shape: f32[1,128], index: 10, kind: input, shape index: {}]   ;;  %s5359_s11 = inlined_call_operand.vmem [shape: f32[1,128], index: 11, kind: input, shape index: {}]   ;;  %s5360_s12 = inlined_call_operand.hbm [shape: f32[2,16,16,128], index: 12, kind: output, shape index: {}]  }
   0x1   :  { %19 = vsyncpa [#allocation5 + $0x1], 0  ;;  %s4253_s21 = smov 0   ;;  %s4255_s22 = smov 0  }
   0x2   :  { %s4257_s23 = smov 0   ;;  %s4259_s24 = smov 0  }
   0x3   :  { %s4261_s25 = smov 0   ;;  %s4263_s26 = smov 0  }
   0x4   :  { %s4265_s27 = smov 0   ;;  %s4267_s28 = smov 0  }
   0x5 LB: > { %5367 = sst [smem:[#allocation7_spill]] %s4161_s23  ;;  %s3363_s29 = sadd.s32 4294967295, %s4181_s28   ;;  %s4181_s28 = sphi %s4267_s28, %s25_s28   ;;  %s4177_s27 = sphi %s4265_s27, %s5383_s27   ;;  %s4173_s26 = sphi %s4263_s26, %s5382_s26   ;;  %s4169_s25 = sphi %s4261_s25, %s5381_s25   ;;  %s4165_s24 = sphi %s4259_s24, %s5380_s24   ;;  %s4161_s23 = sphi %s4257_s23, %s5386_s23   ;;  %s4157_s22 = sphi %s4255_s22, %s5385_s22   ;;  %s4153_s21 = sphi %s4253_s21, %s5384_s21  }
   0x6   : > { %5368 = sst [smem:[#allocation8_spill]] %s4173_s26  ;;  %s3364_s30 = sadd.s32 4294967294, %s4181_s28  }
   0x7   : > { %5369 = sst [smem:[#allocation9_spill]] %s4177_s27  ;;  %s34_s13 = sadd.s32 1, %s4173_s26 }
   0x8   : > { %p35_p0 = scmp.ge.s32.totalorder %s34_s13, 2  ;;  %s37_s14 = sadd.s32 1, %s4177_s27 }
   0x9   : > { %p345_p1 = scmp.ne.s32.totalorder %s4161_s23, %s4157_s22  ;;  %p346_p2 = scmp.eq.s32.totalorder %s3363_s29, 3 }
   0xa   : > { %s5388_s13 = smov (%p35_p0, %s34_s13), 0  ;;  %s5390_s14 = smov (!%p35_p0, %s37_s14), %s4177_s27 }
   0xb   : > { %5370 = sst [smem:[#allocation10_spill]] %s5388_s13  ;;  %s331_s15 = ssub.s32 %s4173_s26, %s5388_s13 }
   0xc   : > { %p4304_p3 = por %p346_p2, %p345_p1  ;;  %p39_p4 = scmp.ge.s32.totalorder %s5390_s14, 2 }
   0xd   : > { %p351_p5 = scmp.ne.s32.totalorder %s4157_s22, %s4153_s21  ;;  %p352_p6 = scmp.eq.s32.totalorder %s3364_s30, 3 }
   0xe   : > { %p3373_p7 = scmp.ge.s32.totalorder %s4181_s28, 1  ;;  %s5392_s14 = smov (%p39_p4, %s5390_s14), 0 }
   0xf   : > { %5372 = sst [smem:[#allocation11_spill]] %s5392_s14  ;;  %p4313_p8 = por %p352_p6, %p351_p5 }
  0x10   : > { %p451_p9 = scmp.lt.s32.totalorder %s4181_s28, 5  ;;  %s330_s18 = ssub.s32 %s4177_s27, %s5392_s14 }
  0x11   : > { %s5373_s17 = scalar_select %p4313_p8, 1, 0 }
  0x12   : > { %s335_s19 = sadd.s32 1, %s4161_s23  ;;  %s332_s20 = sor.u32 %s331_s15, %s330_s18 }
  0x13   : > { %5374 = sst [smem:[#allocation12_spill]] %s5373_s17  ;;  %p452_p10 = pnand %p3373_p7, %p451_p9 }
  0x14   : > { %p333_p11 = scmp.eq.s32.totalorder %s332_s20, 0  ;;  %v4327_v0 = vld [vmem:[%s5351_s3] sm:$0xff] (!%p452_p10)   ;;  %v4183_v1 = vmov (!%p452_p10), 0.0   ;;  %v4333_v2 = vld [vmem:[%s5351_s3 + $0x8] sm:$0xff] (!%p452_p10)   ;;  %s4340_s26 = sshll.u32 (!%p452_p10), %s4165_s24, 3  ;;  %v4347_v3 = vld [vmem:[%s5351_s3 + $0x10] sm:$0xff] (!%p452_p10)  }
  0x15   : > { %455 = sbr.rel (%p452_p10) target bundleno = 936 (0x3a8), region = 68  ;;  %3724 = vmatprep.subr.bf16.mxu1 (!%p452_p10), %v4183_v1  ;;  %3692 = vmatprep.subr.bf16.mxu0 (!%p452_p10), %v4327_v0  ;;  %p525_p12 = scmp.lt.s32.totalorder (!%p452_p10), %s4169_s25, 1  ;;  %vm4184_vm0 = vmmov (!%p452_p10), 0   ;;  %v4363_v4 = vld [vmem:[%s5351_s3 + $0x18] sm:$0xff] (!%p452_p10)   ;;  %v4379_v5 = vld [vmem:[%s5351_s3 + $0x20] sm:$0xff] (!%p452_p10)   ;;  %v4390_v9 = vld [vmem:[%s5351_s3 + $0x28] sm:$0xff] (!%p452_p10)  }
  0x16   : > { %s4322_s29 = scalar_select %p333_p11, %s4161_s23, %s335_s19  }
  0x17   : > { %3725 = vmatpush3.bf16.msra.mxu1 (!%p452_p10), %v4327_v0  ;;  %3693 = vmatpush3.bf16.msra.mxu0 (!%p452_p10), %v4327_v0  ;;  %p527_p13 = scmp.lt.s32.totalorder (!%p452_p10), %s4340_s26, 15  ;;  %s3380_s14 = sadd.s32 (!%p452_p10), 4294967295, %s4340_s26  ;;  %v4400_v10 = vld [vmem:[%s5351_s3 + $0x30] sm:$0xff] (!%p452_p10)   ;;  %v4412_v11 = vld [vmem:[%s5351_s3 + $0x38] sm:$0xff] (!%p452_p10)   ;;  %vm941_vm1 = vcmask (!%p452_p10), 261120   ;;  %v4052_v40 = vld [vmem:[%s5354_s6] sm:$0xff] (!%p452_p10)  }
  0x18   : > { %5375 = sst [smem:[#allocation13_spill]] %s4322_s29  ;;  %3726 = vmatprep.subr.bf16.mxu1 (!%p452_p10), %v4183_v1  ;;  %3694 = vmatprep.subr.bf16.mxu0 (!%p452_p10), %v4333_v2  ;;  %p537_p0 = scmp.gt.s32.totalorder (!%p452_p10), %s3380_s14, 0  ;;  %1135 = vst.msk [vmem:[#allocation3] sm:$0xff] (!%p452_p10), %vm941_vm1, %v4183_v1  ;;  %1136 = vst.msk [vmem:[#allocation3 + $0x8] sm:$0xff] (!%p452_p10), %vm941_vm1, %v4183_v1  ;;  %v4500_v39 = vld [vmem:[%s5354_s6 + $0x10] sm:$0xff] (!%p452_p10)   ;;  %v4510_v41 = vld [vmem:[%s5354_s6 + $0x18] sm:$0xff] (!%p452_p10)  }
  0x19   : > { %3740 = vmatprep.mubr.msk.bf16.mxu1 (!%p452_p10), %vm4184_vm0, %v4183_v1  ;;  %p3381_p1 = scmp.lt.s32.totalorder (!%p452_p10), %s3380_s14, 15  ;;  %1137 = vst.msk [vmem:[#allocation3 + $0x10] sm:$0xff] (!%p452_p10), %vm941_vm1, %v4183_v1  ;;  %1138 = vst.msk [vmem:[#allocation3 + $0x18] sm:$0xff] (!%p452_p10), %vm941_vm1, %v4183_v1  ;;  %v4054_v42 = vld [vmem:[%s5354_s6 + $0x8] sm:$0xff] (!%p452_p10)   ;;  %v4521_v43 = vld [vmem:[%s5354_s6 + $0x30] sm:$0xff] (!%p452_p10)   ;;  %p918_p4 = scmp.gt.s32.totalorder (!%p452_p10), %s4165_s24, 0 }
  0x1a   : > { %1139 = vst.msk [vmem:[#allocation3 + $0x20] sm:$0xff] (!%p452_p10), %vm941_vm1, %v4183_v1  ;;  %1140 = vst.msk [vmem:[#allocation3 + $0x28] sm:$0xff] (!%p452_p10), %vm941_vm1, %v4183_v1  ;;  %v4528_v44 = vld [vmem:[%s5352_s4] ss:$0 sm:$0xff] (!%p452_p10)  ;;  %vm972_vm2 = vcmask (!%p452_p10), 1040384   ;;  %vm1053_vm3 = vcmask (!%p452_p10), 1046528  }
  0x1b   : > { %3727 = vmatpush3.bf16.msra.mxu1 (!%p452_p10), %v4333_v2  ;;  %3695 = vmatpush3.bf16.msra.mxu0 (!%p452_p10), %v4333_v2  ;;  %1141 = vst.msk [vmem:[#allocation3 + $0x30] sm:$0xff] (!%p452_p10), %vm941_vm1, %v4183_v1  ;;  %1142 = vst.msk [vmem:[#allocation3 + $0x38] sm:$0xff] (!%p452_p10), %vm941_vm1, %v4183_v1  ;;  %v4533_v45 = vld [vmem:[%s5353_s5] ss:$0 sm:$0xff] (!%p452_p10)  ;;  %p924_p5 = scmp.lt.s32.totalorder (!%p452_p10), %s4165_s24, 1 }
  0x1c   : > { %s526_s15 = scalar_select %p525_p12, %s4169_s25, 1  ;;  %3728 = vmatprep.subr.bf16.mxu1 %v4183_v1  ;;  %3696 = vmatprep.subr.bf16.mxu0 %v4347_v3  ;;  %1143 = vst.msk [vmem:[#allocation3 + $0x40] sm:$0xff] %vm941_vm1, %v4183_v1  ;;  %1144 = vst.msk [vmem:[#allocation3 + $0x48] sm:$0xff] %vm941_vm1, %v4183_v1 }
  0x1d   : > { %s528_s18 = scalar_select %p527_p13, %s4340_s26, 15  ;;  %1145 = vst.msk [vmem:[#allocation3 + $0x50] sm:$0xff] %vm941_vm1, %v4183_v1  ;;  %1146 = vst.msk [vmem:[#allocation3 + $0x58] sm:$0xff] %vm941_vm1, %v4183_v1 }
  0x1e   : > { %s4357_s19 = sshll.u32 %s526_s15, 5  ;;  %s5394_s14 = smov (!%p537_p0, %s3380_s14), 0  ;;  %1147 = vst.msk [vmem:[#allocation3 + $0x60] sm:$0xff] %vm941_vm1, %v4183_v1  ;;  %1148 = vst.msk [vmem:[#allocation3 + $0x68] sm:$0xff] %vm941_vm1, %v4183_v1 }
  0x1f   : > { %s3376_s13 = sshll.u32 %s528_s18, 1  ;;  %3729 = vmatpush3.bf16.msra.mxu1 %v4347_v3  ;;  %3697 = vmatpush3.bf16.msra.mxu0 %v4347_v3  ;;  %s5396_s14 = smov (!%p3381_p1, %s5394_s14), 15  ;;  %1149 = vst.msk [vmem:[#allocation3 + $0x70] sm:$0xff] %vm941_vm1, %v4183_v1  ;;  %1150 = vst.msk [vmem:[#allocation3 + $0x78] sm:$0xff] %vm941_vm1, %v4183_v1 }
  0x20   : > { %s531_s27 = sadd.s32 %s4357_s19, %s3376_s13  ;;  %3730 = vmatprep.subr.bf16.mxu1 %v4183_v1  ;;  %3698 = vmatprep.subr.bf16.mxu0 %v4363_v4 }
  0x21   : > { %s3378_s29 = sshll.u32 %s531_s27, 3  ;;  %s4185_s27 = smov [#allocation4]  }
  0x22   : > { %s4373_s17 = scalar_lea.vmem %s5348_s0, %s3378_s29  ;;  %s3386_s29 = sshll.u32 %s5396_s14, 1 }
  0x23   : > { %v589_v6 = vld [vmem:[%s4373_s17] sm:$0xff]  ;;  %v590_v7 = vld [vmem:[%s4373_s17 + $0x8] sm:$0xff]  ;;  %3731 = vmatpush3.bf16.msra.mxu1 %v4363_v4  ;;  %3699 = vmatpush3.bf16.msra.mxu0 %v4363_v4  ;;  %s545_s30 = sadd.s32 %s3386_s29, %s4357_s19  ;;  %v591_v12 = vld [vmem:[%s4373_s17 + $0x10] sm:$0xff] }
  0x24   : > { %v605_v8 = vpack.c.bf16 %v590_v7, %v589_v6  ;;  %3732 = vmatprep.subr.bf16.mxu1 %v4183_v1  ;;  %3700 = vmatprep.subr.bf16.mxu0 %v4379_v5  ;;  %s3388_s18 = sshll.u32 %s545_s30, 3  ;;  %v592_v13 = vld [vmem:[%s4373_s17 + $0x18] sm:$0xff]  ;;  %v593_v16 = vld [vmem:[%s4373_s17 + $0x20] sm:$0xff]  ;;  %v594_v17 = vld [vmem:[%s4373_s17 + $0x28] sm:$0xff]  ;;  %s3556_s30 = sadd.s32 8, %s4340_s26 }
  0x25   : > { %s547_s23 = scalar_lea.vmem %s5349_s1, %s3388_s18  ;;  %v606_v19 = vpack.c.bf16 %v592_v13, %v591_v12  ;;  %v607_v20 = vpack.c.bf16 %v594_v17, %v593_v16  ;;  %v595_v21 = vld [vmem:[%s4373_s17 + $0x30] sm:$0xff]  ;;  %v596_v22 = vld [vmem:[%s4373_s17 + $0x38] sm:$0xff]  ;;  %p4429_p2 = scmp.lt.s32.totalorder %s3556_s30, 15  ;;  %v597_v23 = vld [vmem:[%s4373_s17 + $0x40] sm:$0xff] }
  0x26   : > { %3708 = vmatprep.mubr.bf16.mxu0 %v605_v8  ;;  %v818_v14 = vld [vmem:[%s547_s23] sm:$0xff]  ;;  %v819_v15 = vld [vmem:[%s547_s23 + $0x8] sm:$0xff]  ;;  %v608_v25 = vpack.c.bf16 %v596_v22, %v595_v21  ;;  %v599_v27 = vld [vmem:[%s4373_s17 + $0x50] sm:$0xff] }
  0x27   : > { %3733 = vmatpush3.bf16.msra.mxu1 %v4379_v5  ;;  %3701 = vmatpush3.bf16.msra.mxu0 %v4379_v5  ;;  %v820_v18 = vpack.c.bf16 %v819_v15, %v818_v14  ;;  %v598_v24 = vld [vmem:[%s4373_s17 + $0x48] sm:$0xff]  ;;  %s5398_s30 = smov (!%p4429_p2, %s3556_s30), 15  ;;  %v600_v28 = vld [vmem:[%s4373_s17 + $0x58] sm:$0xff]  ;;  %v601_v29 = vld [vmem:[%s4373_s17 + $0x60] sm:$0xff] }
  0x28   : > { %3734 = vmatprep.subr.bf16.mxu1 %v4183_v1  ;;  %3702 = vmatprep.subr.bf16.mxu0 %v4390_v9  ;;  %v609_v26 = vpack.c.bf16 %v598_v24, %v597_v23  ;;  %s5400_s30 = smov (!%p4429_p2, %s5398_s30), 15  ;;  %v602_v30 = vld [vmem:[%s4373_s17 + $0x68] sm:$0xff]  ;;  %v610_v31 = vpack.c.bf16 %v600_v28, %v599_v27  ;;  %v603_v33 = vld [vmem:[%s4373_s17 + $0x70] sm:$0xff]  ;;  %v604_v34 = vld [vmem:[%s4373_s17 + $0x78] sm:$0xff] }
  0x29   : > { %v611_v32 = vpack.c.bf16 %v602_v30, %v601_v29  ;;  %s3393_s26 = sshll.u32 %s5400_s30, 1  ;;  %v612_v35 = vpack.c.bf16 %v604_v34, %v603_v33 }
  0x2a   : > { %s562_s15 = sadd.s32 %s3393_s26, %s4357_s19  ;;  %s3545_s26 = sshll.u32 %s4169_s25, 5 }
  0x2b   : > { %3735 = vmatpush3.bf16.msra.mxu1 %v4390_v9  ;;  %3703 = vmatpush3.bf16.msra.mxu0 %v4390_v9  ;;  %s3395_s18 = sshll.u32 %s562_s15, 3 }
  0x2c   : > { %3736 = vmatprep.subr.bf16.mxu1 %v4183_v1  ;;  %3704 = vmatprep.subr.bf16.mxu0 %v4400_v10  ;;  %s564_s23 = scalar_lea.vmem %s5350_s2, %s3395_s18 }
  0x2d   : > { %v868_v36 = vld [vmem:[%s564_s23] sm:$0xff]  ;;  %v869_v37 = vld [vmem:[%s564_s23 + $0x8] sm:$0xff]  ;;  %s919_s23 = scalar_select %p918_p4, 1, 0 }
  0x2e   : > { %v870_v38 = vpack.c.bf16 %v869_v37, %v868_v36  ;;  %s4659_s19 = scalar_select %p924_p5, 1, 0 }
  0x2f   : > { %3737 = vmatpush3.bf16.msra.mxu1 %v4400_v10  ;;  %3705 = vmatpush3.bf16.msra.mxu0 %v4400_v10  ;;  %s920_s13 = scvt.s32.f32 %s919_s23  ;;  %s521_s23 = sand.u32 1, %s4157_s22  }
  0x30   : > { %3738 = vmatprep.subr.bf16.mxu1 %v4183_v1  ;;  %3706 = vmatprep.subr.bf16.mxu0 %v4412_v11  ;;  %s926_s30 = scvt.s32.f32 %s4659_s19  ;;  %s3374_s29 = sshll.u32 %s521_s23, 7 }
  0x31   : > { %v921_v58 = vstv %s920_s13  ;;  %s3557_s13 = sshll.u32 %s4165_s24, 4  ;;  %s5296_s19 = scalar_lea.sflag [#allocation5], %s521_s23 }
  0x32   : > { %s3233_s24 = sadd.s32 %s3557_s13, %s3545_s26 }
  0x33   : > { %3739 = vmatpush3.bf16.msra.mxu1 %v4412_v11  ;;  %3707 = vmatpush3.bf16.msra.mxu0 %v4412_v11  ;;  %s3546_s25 = sshll.u32 %s3233_s24, 7 }
  0x34   : > { %3744 = vmatprep.subr.bf16.mxu0 %v4183_v1  ;;  %3764 = vmatprep.subr.bf16.mxu1 %v4052_v40  ;;  %s5287_s20 = scalar_lea.hbm %s5360_s12, %s3546_s25 }
  0x36   : > { %3741 = vmatmul.mubr.bf16.vlgmr.msra.gmra.mrb[0].mxu1 %v820_v18  ;;  %3709 = vmatmul.mubr.bf16.vlgmr.msra.gmra.mrb[0].mxu0 %v606_v19 }
  0x37   : > { %3712 = vmatprep.mubr.bf16.mxu0 %v607_v20  ;;  %3745 = vmatpush3.bf16.msra.mxu0 %v4327_v0 }
  0x38   : > { %3746 = vmatprep.subr.bf16.mxu0 %v4183_v1  ;;  %3765 = vmatpush3.bf16.msra.mxu1 %v4052_v40 }
  0x39   : > { %3766 = vmatprep.subr.bf16.mxu1 %v4054_v42 }
  0x3b   : > { %3747 = vmatpush3.bf16.msra.mxu0 %v4333_v2 }
  0x3c   : > { %3748 = vmatprep.subr.bf16.mxu0 %v4183_v1  ;;  %3767 = vmatpush3.bf16.msra.mxu1 %v4054_v42 }
  0x3d   : > { %3964 = vmatprep.subr.bf16.mxu1 %v4500_v39 }
  0x3e   : > { %3713 = vmatmul.mubr.bf16.gmra.mrb[4].mxu0 %v608_v25 }
  0x3f   : > { %3716 = vmatprep.mubr.bf16.mxu0 %v609_v26  ;;  %3749 = vmatpush3.bf16.msra.mxu0 %v4347_v3 }
  0x40   : > { %3750 = vmatprep.subr.bf16.mxu0 %v4183_v1 }
  0x43   : > { %3751 = vmatpush3.bf16.msra.mxu0 %v4363_v4 }
  0x44   : > { %3752 = vmatprep.subr.bf16.mxu0 %v4183_v1 }
  0x46   : > { %3717 = vmatmul.mubr.bf16.gmra.mrb[8].mxu0 %v610_v31 }
  0x47   : > { %3720 = vmatprep.mubr.bf16.mxu0 %v611_v32  ;;  %3753 = vmatpush3.bf16.msra.mxu0 %v4379_v5 }
  0x48   : > { %3754 = vmatprep.subr.bf16.mxu0 %v4183_v1 }
  0x4b   : > { %3755 = vmatpush3.bf16.msra.mxu0 %v4390_v9 }
  0x4c   : > { %3756 = vmatprep.subr.bf16.mxu0 %v4183_v1 }
  0x4e   : > { %3721 = vmatmul.mubr.bf16.gmra.mrb[12].mxu0 %v612_v35 }
  0x4f   : > { %3757 = vmatpush3.bf16.msra.mxu0 %v4400_v10  ;;  %3760 = vmatprep.mubr.msk.bf16.mxu0 %vm4184_vm0, %v4183_v1 }
  0x50   : > { %3758 = vmatprep.subr.bf16.mxu0 %v4183_v1 }
  0x53   : > { %3759 = vmatpush3.bf16.msra.mxu0 %v4412_v11 }
  0x54   : > { %3784 = vmatprep.subr.bf16.mxu0 %v4500_v39 }
  0x56   : > { %3761 = vmatmul.mubr.bf16.vlgmr.msra.gmra.mrb[16].mxu0 %v870_v38 }
  0x57   : > { %3785 = vmatpush3.bf16.msra.mxu0 %v4500_v39 }
  0x58   : > { %3786 = vmatprep.subr.bf16.mxu0 %v4510_v41 }
  0x5b   : > { %3787 = vmatpush3.bf16.msra.mxu0 %v4510_v41 }
  0x5c   : > { %3824 = vmatprep.subr.bf16.mxu0 %v4521_v43 }
 0x109   : > { %v855_v46 = vpop.f32.mrb[0].mxu1  ;;  %v3710_v48 = vpop.f32.mrb[0].mxu0 }
 0x10a   : > { %v862_v47 = vmul.f32 %v4528_v44, %v855_v46  ;;  %v3742_v49 = vpop.f32.mrb[1].mxu1  ;;  %v766_v50 = vmul.f32 %v3710_v48, %v4528_v44  ;;  %v695_v51 = vpop.f32.mrb[1].mxu0 }
 0x10b   : > { %v858_v52 = vpop.f32.mrb[2].mxu1  ;;  %v764_v54 = vmul.f32 %v4528_v44, %v695_v51  ;;  %v3711_v56 = vpop.f32.mrb[2].mxu0 }
 0x10c   : > { %v864_v53 = vadd.f32 %v4533_v45, %v862_v47  ;;  %v863_v55 = vmul.f32 %v4528_v44, %v858_v52  ;;  %v3743_v57 = vpop.f32.mrb[3].mxu1  ;;  %v788_v59 = vadd.f32 %v4533_v45, %v766_v50  ;;  %v767_v60 = vmul.f32 %v3711_v56, %v4528_v44  ;;  %v698_v61 = vpop.f32.mrb[3].mxu0 }
 0x10d   : > { %v786_v63 = vadd.f32 %v4533_v45, %v764_v54  ;;  %v765_v1 = vmul.f32 %v4528_v44, %v698_v61 }
 0x10e   : > { %v866_v62 = vmax.f32 %v864_v53, 0.0  ;;  %v865_v0 = vadd.f32 %v4533_v45, %v863_v55  ;;  %v804_v2 = vmax.f32 %v788_v59, 0.0  ;;  %v789_v3 = vadd.f32 %v4533_v45, %v767_v60 }
 0x10f   : > { %v802_v5 = vmax.f32 %v786_v63, 0.0  ;;  %v787_v7 = vadd.f32 %v4533_v45, %v765_v1 }
 0x110   : > { %v922_v4 = vmul.f32 %v921_v58, %v866_v62  ;;  %v867_v6 = vmax.f32 %v865_v0, 0.0  ;;  %v979_v8 = vrot.slane %v804_v2, 7  ;;  %v805_v9 = vmax.f32 %v789_v3, 0.0 }
 0x111   : > { %v1060_v12 = vrot.slane %v804_v2, 1  ;;  %v976_v13 = vrot.slane %v802_v5, 7  ;;  %v3714_v14 = vpop.f32.mrb[4].mxu0  ;;  %v1057_v21 = vrot.slane %v802_v5, 1  ;;  %v803_v23 = vmax.f32 %v787_v7, 0.0 }
 0x112   : > { %v973_v10 = vrot.slane %v922_v4, 7  ;;  %v1054_v11 = vrot.slane %v922_v4, 1  ;;  %v1025_v15 = vsel %vm972_vm2, 0.0, %v979_v8  ;;  %v923_v16 = vmul.f32 %v921_v58, %v867_v6  ;;  %v711_v19 = vpop.f32.mrb[5].mxu0 }
 0x113   : > { %v932_v17 = vpack.c.bf16 %v805_v9, %v804_v2  ;;  %v980_v18 = vrot.slane %v805_v9, 7  ;;  %v1061_v22 = vrot.slane %v805_v9, 1  ;;  %v3715_v24 = vpop.f32.mrb[6].mxu0  ;;  %v931_v33 = vpack.c.bf16 %v803_v23, %v802_v5 }
 0x114   : > { %v1023_v20 = vsel %vm972_vm2, 0.0, %v973_v10  ;;  %v930_v25 = vpack.c.bf16 %v923_v16, %v922_v4  ;;  %v974_v26 = vrot.slane %v923_v16, 7  ;;  %v1055_v27 = vrot.slane %v923_v16, 1  ;;  %v714_v29 = vpop.f32.mrb[7].mxu0 }
 0x115   : > { %944 = vst.msk [vmem:[#allocation2 + $0x60] sm:$0xff] %vm941_vm1, %v932_v17  ;;  %v981_v28 = vsel %vm972_vm2, %v979_v8, %v980_v18  ;;  %v1062_v31 = vsel %vm1053_vm3, %v1060_v12, %v1061_v22  ;;  %v1106_v32 = vsel %vm1053_vm3, %v1061_v22, 0.0  ;;  %943 = vst.msk [vmem:[#allocation2 + $0x58] sm:$0xff] %vm941_vm1, %v931_v33  ;;  %v977_v42 = vrot.slane %v803_v23, 7 }
 0x116   : > { %v1035_v30 = vpack.c.bf16 %v981_v28, %v1025_v15  ;;  %942 = vst.msk [vmem:[#allocation2 + $0x50] sm:$0xff] %vm941_vm1, %v930_v25  ;;  %v975_v34 = vsel %vm972_vm2, %v973_v10, %v974_v26  ;;  %v1056_v35 = vsel %vm1053_vm3, %v1054_v11, %v1055_v27  ;;  %v1104_v36 = vsel %vm1053_vm3, %v1055_v27, 0.0  ;;  %v4056_v11 = vld [vmem:[%s5354_s6 + $0x38] sm:$0xff]  }
 0x117   : > { %v1116_v37 = vpack.c.bf16 %v1106_v32, %v1062_v31  ;;  %v1033_v38 = vpack.c.bf16 %v975_v34, %v1023_v20  ;;  %v1114_v40 = vpack.c.bf16 %v1104_v36, %v1056_v35  ;;  %v1058_v46 = vrot.slane %v803_v23, 1  ;;  %v4607_v36 = vld [vmem:[%s5354_s6 + $0x50] sm:$0xff]  }
 0x118   : > { %1045 = vst.msk [vmem:[#allocation2 + $0x10] sm:$0xff] %vm941_vm1, %v1035_v30  ;;  %v770_v47 = vmul.f32 %v3714_v14, %v4528_v44  ;;  %v768_v48 = vmul.f32 %v4528_v44, %v711_v19  ;;  %v771_v49 = vmul.f32 %v3715_v24, %v4528_v44  ;;  %v769_v50 = vmul.f32 %v4528_v44, %v714_v29 }
 0x119   : > { %1127 = vst.msk [vmem:[#allocation2 + $0xb0] sm:$0xff] %vm941_vm1, %v1116_v37  ;;  %v1024_v51 = vsel %vm972_vm2, 0.0, %v976_v13  ;;  %1043 = vst.msk [vmem:[#allocation2] sm:$0xff] %vm941_vm1, %v1033_v38  ;;  %v978_v52 = vsel %vm972_vm2, %v976_v13, %v977_v42  ;;  %v1059_v53 = vsel %vm1053_vm3, %v1057_v21, %v1058_v46  ;;  %v1105_v54 = vsel %vm1053_vm3, %v1058_v46, 0.0  ;;  %v3718_v55 = vpop.f32.mrb[8].mxu0 }
 0x11a   : > { %1125 = vst.msk [vmem:[#allocation2 + $0xa0] sm:$0xff] %vm941_vm1, %v1114_v40  ;;  %v1034_v56 = vpack.c.bf16 %v978_v52, %v1024_v51  ;;  %v1115_v57 = vpack.c.bf16 %v1105_v54, %v1059_v53  ;;  %v792_v58 = vadd.f32 %v4533_v45, %v770_v47  ;;  %v790_v59 = vadd.f32 %v4533_v45, %v768_v48  ;;  %v727_v60 = vpop.f32.mrb[9].mxu0 }
 0x11b   : > { %v793_v61 = vadd.f32 %v4533_v45, %v771_v49  ;;  %v791_v62 = vadd.f32 %v4533_v45, %v769_v50  ;;  %v774_v63 = vmul.f32 %v3718_v55, %v4528_v44  ;;  %v772_v0 = vmul.f32 %v4528_v44, %v727_v60  ;;  %v3719_v1 = vpop.f32.mrb[10].mxu0 }
 0x11c   : > { %1044 = vst.msk [vmem:[#allocation2 + $0x8] sm:$0xff] %vm941_vm1, %v1034_v56  ;;  %1126 = vst.msk [vmem:[#allocation2 + $0xa8] sm:$0xff] %vm941_vm1, %v1115_v57  ;;  %v808_v2 = vmax.f32 %v792_v58, 0.0  ;;  %v806_v3 = vmax.f32 %v790_v59, 0.0  ;;  %v775_v4 = vmul.f32 %v3719_v1, %v4528_v44  ;;  %v730_v5 = vpop.f32.mrb[11].mxu0  ;;  %v4585_v16 = vld [vmem:[#allocation2 + $0x58] sm:$0xff] }
 0x11d   : > { %v809_v6 = vmax.f32 %v793_v61, 0.0  ;;  %v807_v7 = vmax.f32 %v791_v62, 0.0  ;;  %v796_v8 = vadd.f32 %v4533_v45, %v774_v63  ;;  %v794_v9 = vadd.f32 %v4533_v45, %v772_v0  ;;  %v1344_v10 = vld [vmem:[#allocation2 + $0x50] sm:$0xff]  ;;  %v4589_v21 = vld [vmem:[#allocation2 + $0x60] sm:$0xff] }
 0x11e   : > { %v985_v12 = vrot.slane %v808_v2, 7  ;;  %v1066_v13 = vrot.slane %v808_v2, 1  ;;  %v982_v14 = vrot.slane %v806_v3, 7  ;;  %v1063_v15 = vrot.slane %v806_v3, 1  ;;  %3788 = vmatprep.mubr.msk.bf16.mxu0 %vm941_vm1, %v1344_v10 }
 0x11f   : > { %v934_v17 = vpack.c.bf16 %v809_v6, %v808_v2  ;;  %v986_v18 = vrot.slane %v809_v6, 7  ;;  %v1067_v19 = vrot.slane %v809_v6, 1  ;;  %v933_v20 = vpack.c.bf16 %v807_v7, %v806_v3  ;;  %3789 = vmatmul.mubr.msk.bf16.vlgmr.msra.gmra.mrb[20].mxu0 %vm941_vm1, %v4585_v16  ;;  %v4617_v51 = vld [vmem:[#allocation2 + $0x10] sm:$0xff] }
 0x120   : > { %v1027_v22 = vsel %vm972_vm2, 0.0, %v985_v12  ;;  %v1026_v23 = vsel %vm972_vm2, 0.0, %v982_v14  ;;  %v983_v24 = vrot.slane %v807_v7, 7  ;;  %v1064_v25 = vrot.slane %v807_v7, 1  ;;  %3792 = vmatprep.mubr.msk.bf16.mxu0 %vm941_vm1, %v4589_v21  ;;  %v1151_v26 = vld [vmem:[#allocation2] sm:$0xff]  ;;  %3825 = vmatpush3.bf16.msra.mxu0 %v4521_v43 }
 0x121   : > { %946 = vst.msk [vmem:[#allocation2 + $0x70] sm:$0xff] %vm941_vm1, %v934_v17  ;;  %v987_v27 = vsel %vm972_vm2, %v985_v12, %v986_v18  ;;  %v1068_v28 = vsel %vm1053_vm3, %v1066_v13, %v1067_v19  ;;  %v1108_v29 = vsel %vm1053_vm3, %v1067_v19, 0.0  ;;  %945 = vst.msk [vmem:[#allocation2 + $0x68] sm:$0xff] %vm941_vm1, %v933_v20  ;;  %v812_v30 = vmax.f32 %v796_v8, 0.0  ;;  %3768 = vmatprep.mubr.msk.bf16.mxu1 %vm941_vm1, %v1151_v26  ;;  %v3722_v31 = vpop.f32.mrb[12].mxu0 }
 0x122   : > { %3826 = vmatprep.subr.bf16.mxu0 %v4056_v11  ;;  %v1037_v32 = vpack.c.bf16 %v987_v27, %v1027_v22  ;;  %v1118_v33 = vpack.c.bf16 %v1108_v29, %v1068_v28  ;;  %v984_v34 = vsel %vm972_vm2, %v982_v14, %v983_v24  ;;  %v1065_v43 = vsel %vm1053_vm3, %v1063_v15, %v1064_v25  ;;  %v743_v35 = vpop.f32.mrb[13].mxu0 }
 0x123   : > { %v1036_v37 = vpack.c.bf16 %v984_v34, %v1026_v23  ;;  %v1107_v38 = vsel %vm1053_vm3, %v1064_v25, 0.0  ;;  %v991_v40 = vrot.slane %v812_v30, 7  ;;  %v1152_v42 = vld [vmem:[#allocation2 + $0x8] sm:$0xff]  ;;  %v3723_v46 = vpop.f32.mrb[14].mxu0  ;;  %v4612_v48 = vmax.f32 %v794_v9, 0.0 }
 0x124   : > { %1047 = vst.msk [vmem:[#allocation2 + $0x20] sm:$0xff] %vm941_vm1, %v1037_v32  ;;  %1129 = vst.msk [vmem:[#allocation2 + $0xc0] sm:$0xff] %vm941_vm1, %v1118_v33  ;;  %v1117_v47 = vpack.c.bf16 %v1107_v38, %v1065_v43  ;;  %v797_v49 = vadd.f32 %v4533_v45, %v775_v4  ;;  %v773_v50 = vmul.f32 %v4528_v44, %v730_v5  ;;  %3769 = vmatmul.mubr.msk.bf16.vlgmr.msra.gmra.mrb[4].mxu1 %vm941_vm1, %v1152_v42  ;;  %v746_v52 = vpop.f32.mrb[15].mxu0 }
 0x125   : > { %3827 = vmatpush3.bf16.msra.mxu0 %v4056_v11  ;;  %1046 = vst.msk [vmem:[#allocation2 + $0x18] sm:$0xff] %vm941_vm1, %v1036_v37  ;;  %v778_v53 = vmul.f32 %v3722_v31, %v4528_v44  ;;  %3966 = vmatpush3.bf16.msra.mxu1 %v4500_v39  ;;  %v776_v54 = vmul.f32 %v4528_v44, %v743_v35  ;;  %v1029_v56 = vsel %vm972_vm2, 0.0, %v991_v40  ;;  %v1072_v57 = vrot.slane %v812_v30, 1  ;;  %v4633_v39 = vld [vmem:[%s5354_s6 + $0x20] sm:$0xff]  }
 0x126   : > { %3772 = vmatprep.mubr.msk.bf16.mxu1 %vm941_vm1, %v4617_v51  ;;  %v779_v55 = vmul.f32 %v3723_v46, %v4528_v44  ;;  %1128 = vst.msk [vmem:[#allocation2 + $0xb8] sm:$0xff] %vm941_vm1, %v1117_v47  ;;  %v813_v58 = vmax.f32 %v797_v49, 0.0  ;;  %v795_v59 = vadd.f32 %v4533_v45, %v773_v50  ;;  %3965 = vmatprep.subr.bf16.mxu1 %v4510_v41  ;;  %v988_v60 = vrot.slane %v4612_v48, 7 }
 0x127   : > { %3864 = vmatprep.subr.bf16.mxu0 %v4607_v36  ;;  %v800_v61 = vadd.f32 %v4533_v45, %v778_v53  ;;  %v798_v62 = vadd.f32 %v4533_v45, %v776_v54  ;;  %v777_v3 = vmul.f32 %v4528_v44, %v746_v52  ;;  %v1069_v5 = vrot.slane %v4612_v48, 1 }
 0x128   : > { %v801_v63 = vadd.f32 %v4533_v45, %v779_v55  ;;  %v936_v0 = vpack.c.bf16 %v813_v58, %v812_v30  ;;  %v992_v1 = vrot.slane %v813_v58, 7  ;;  %v1073_v2 = vrot.slane %v813_v58, 1  ;;  %v4642_v4 = vld [vmem:[#allocation2 + $0x68] sm:$0xff] }
 0x129   : > { %v811_v6 = vmax.f32 %v795_v59, 0.0  ;;  %v816_v7 = vmax.f32 %v800_v61, 0.0  ;;  %3793 = vmatmul.mubr.msk.bf16.gmra.mrb[24].mxu0 %vm941_vm1, %v4642_v4  ;;  %3967 = vmatpush3.bf16.msra.mxu1 %v4510_v41  ;;  %v905_v9 = vpop.f32.mrb[16].mxu0  ;;  %v4652_v13 = vmax.f32 %v798_v62, 0.0  ;;  %v1028_v20 = vsel %vm972_vm2, 0.0, %v988_v60 }
 0x12a   : > { %v817_v8 = vmax.f32 %v801_v63, 0.0  ;;  %948 = vst.msk [vmem:[#allocation2 + $0x80] sm:$0xff] %vm941_vm1, %v936_v0  ;;  %v993_v10 = vsel %vm972_vm2, %v991_v40, %v992_v1  ;;  %v1074_v11 = vsel %vm1053_vm3, %v1072_v57, %v1073_v2  ;;  %v1110_v12 = vsel %vm1053_vm3, %v1073_v2, 0.0  ;;  %3828 = vmatprep.mubr.msk.bf16.mxu0 %vm941_vm1, %v1152_v42  ;;  %3804 = vmatprep.subr.bf16.mxu1 %v4633_v39  ;;  %v3762_v14 = vpop.f32.mrb[17].mxu0  ;;  %v4060_v42 = vld [vmem:[%s5354_s6 + $0x58] sm:$0xff]  }
 0x12b   : > { %v1039_v15 = vpack.c.bf16 %v993_v10, %v1029_v56  ;;  %v1120_v17 = vpack.c.bf16 %v1110_v12, %v1074_v11  ;;  %v935_v41 = vpack.c.bf16 %v811_v6, %v4612_v48  ;;  %v989_v18 = vrot.slane %v811_v6, 7  ;;  %v908_v19 = vpop.f32.mrb[18].mxu0  ;;  %v4671_v31 = vld [vmem:[#allocation2 + $0x20] sm:$0xff] }
 0x12c   : > { %v1070_v22 = vrot.slane %v811_v6, 1  ;;  %v997_v23 = vrot.slane %v816_v7, 7  ;;  %v799_v24 = vadd.f32 %v4533_v45, %v777_v3  ;;  %v4663_v25 = vld [vmem:[#allocation2 + $0x18] sm:$0xff]  ;;  %v3763_v26 = vpop.f32.mrb[19].mxu0  ;;  %v1078_v28 = vrot.slane %v816_v7, 1 }
 0x12d   : > { %1049 = vst.msk [vmem:[#allocation2 + $0x30] sm:$0xff] %vm941_vm1, %v1039_v15  ;;  %1131 = vst.msk [vmem:[#allocation2 + $0xd0] sm:$0xff] %vm941_vm1, %v1120_v17  ;;  %v990_v27 = vsel %vm972_vm2, %v988_v60, %v989_v18  ;;  %v938_v29 = vpack.c.bf16 %v817_v8, %v816_v7  ;;  %v998_v30 = vrot.slane %v817_v8, 7  ;;  %3773 = vmatmul.mubr.msk.bf16.gmra.mrb[8].mxu1 %vm941_vm1, %v4663_v25  ;;  %v994_v37 = vrot.slane %v4652_v13, 7 }
 0x12e   : > { %947 = vst.msk [vmem:[#allocation2 + $0x78] sm:$0xff] %vm941_vm1, %v935_v41  ;;  %v1038_v32 = vpack.c.bf16 %v990_v27, %v1028_v20  ;;  %v1071_v33 = vsel %vm1053_vm3, %v1069_v5, %v1070_v22  ;;  %v1109_v34 = vsel %vm1053_vm3, %v1070_v22, 0.0  ;;  %v1031_v43 = vsel %vm972_vm2, 0.0, %v997_v23  ;;  %3776 = vmatprep.mubr.msk.bf16.mxu1 %vm941_vm1, %v4671_v31  ;;  %v4738_v20 = vld [vmem:[#allocation2 + $0x70] sm:$0xff]  ;;  %v4059_v22 = vld [vmem:[%s5354_s6 + $0x28] sm:$0xff]  }
 0x12f   : > { %v1119_v35 = vpack.c.bf16 %v1109_v34, %v1071_v33  ;;  %950 = vst.msk [vmem:[#allocation2 + $0x90] sm:$0xff] %vm941_vm1, %v938_v29  ;;  %v999_v38 = vsel %vm972_vm2, %v997_v23, %v998_v30  ;;  %v1079_v40 = vrot.slane %v817_v8, 1  ;;  %v815_v47 = vmax.f32 %v799_v24, 0.0  ;;  %v2123_v27 = vld [vmem:[#allocation2 + $0xa8] sm:$0xff]  ;;  %v4064_v30 = vld [vmem:[%s5354_s6 + $0x78] sm:$0xff]  }
 0x130   : > { %1048 = vst.msk [vmem:[#allocation2 + $0x28] sm:$0xff] %vm941_vm1, %v1038_v32  ;;  %v1041_v46 = vpack.c.bf16 %v999_v38, %v1031_v43  ;;  %v912_v48 = vmul.f32 %v4528_v44, %v905_v9  ;;  %v913_v49 = vmul.f32 %v4528_v44, %v908_v19  ;;  %v1075_v50 = vrot.slane %v4652_v13, 1  ;;  %v4702_v44 = vld [vmem:[%s5354_s6 + $0x70] sm:$0xff]   ;;  %v4775_v33 = vld [vmem:[#allocation2 + $0xb8] sm:$0xff]  ;;  %v4062_v34 = vld [vmem:[%s5354_s6 + $0x48] sm:$0xff]  }
 0x131   : > { %1130 = vst.msk [vmem:[#allocation2 + $0xc8] sm:$0xff] %vm941_vm1, %v1119_v35  ;;  %v1080_v52 = vsel %vm1053_vm3, %v1078_v28, %v1079_v40  ;;  %v1112_v53 = vsel %vm1053_vm3, %v1079_v40, 0.0  ;;  %3829 = vmatmul.mubr.msk.bf16.vlgmr.msra.gmra.mrb[28].mxu0 %vm941_vm1, %v4617_v51  ;;  %v937_v55 = vpack.c.bf16 %v815_v47, %v4652_v13  ;;  %v995_v56 = vrot.slane %v815_v47, 7  ;;  %v4753_v24 = vld [vmem:[#allocation2 + $0x80] sm:$0xff]  ;;  %v4771_v32 = vld [vmem:[#allocation2 + $0xb0] sm:$0xff] }
 0x132   : > { %1051 = vst.msk [vmem:[#allocation2 + $0x40] sm:$0xff] %vm941_vm1, %v1041_v46  ;;  %v1122_v54 = vpack.c.bf16 %v1112_v53, %v1080_v52  ;;  %v1076_v57 = vrot.slane %v815_v47, 1  ;;  %3832 = vmatprep.mubr.msk.bf16.mxu0 %vm941_vm1, %v4663_v25  ;;  %3865 = vmatpush3.bf16.msra.mxu0 %v4607_v36  ;;  %v914_v58 = vadd.f32 %v4533_v45, %v912_v48  ;;  %v927_v59 = vstv %s926_s30  ;;  %v4061_v28 = vld [vmem:[%s5354_s6 + $0x40] sm:$0xff]   ;;  %v4066_v46 = vld [vmem:[%s5354_s6 + $0x68] sm:$0xff]   ;;  %v1159_v53 = vld [vmem:[#allocation3] sm:$0xff]  ;;  %s5230_s30 = scalar_lea.vmem [#allocation4], %s3374_s29 }
 0x133   : > { %3866 = vmatprep.subr.bf16.mxu0 %v4060_v42  ;;  %v915_v60 = vadd.f32 %v4533_v45, %v913_v49  ;;  %v1030_v61 = vsel %vm972_vm2, 0.0, %v994_v37  ;;  %949 = vst.msk [vmem:[#allocation2 + $0x88] sm:$0xff] %vm941_vm1, %v937_v55  ;;  %v996_v62 = vsel %vm972_vm2, %v994_v37, %v995_v56  ;;  %v2126_v43 = vld [vmem:[#allocation2 + $0xc0] sm:$0xff]  ;;  %v4068_v47 = vld [vmem:[%s5354_s6 + $0x88] sm:$0xff]   ;;  %s3236_s15 = sshll.u32 %s5230_s30, 4  ;;  %s4091_s29 = sshll.u32 %s4185_s27, 4  ;;  %s5289_s15 = int_to_ptr.vmem [resolvable:$true] %s3236_s15  ;;  %s4092_s29 = int_to_ptr.vmem [resolvable:$false] %s4091_s29 }
 0x134   : > { %1133 = vst.msk [vmem:[#allocation2 + $0xe0] sm:$0xff] %vm941_vm1, %v1122_v54  ;;  %v1077_v36 = vsel %vm1053_vm3, %v1075_v50, %v1076_v57  ;;  %v1111_v63 = vsel %vm1053_vm3, %v1076_v57, 0.0  ;;  %v1040_v0 = vpack.c.bf16 %v996_v62, %v1030_v61  ;;  %v916_v2 = vmax.f32 %v914_v58, 0.0  ;;  %v4719_v7 = vld [vmem:[#allocation2 + $0x30] sm:$0xff]  ;;  %v4065_v37 = vld [vmem:[%s5354_s6 + $0x60] sm:$0xff]   ;;  %v1162_v55 = vld [vmem:[#allocation3 + $0x18] sm:$0xff]  ;;  %p4094_p10 = scmp.lt.s32.totalorder %s5289_s15, %s4092_s29 }
 0x135   : > { %v1121_v1 = vpack.c.bf16 %v1111_v63, %v1077_v36  ;;  %v917_v3 = vmax.f32 %v915_v60, 0.0  ;;  %v4749_v23 = vld [vmem:[#allocation2 + $0x78] sm:$0xff]  ;;  %v2128_v38 = vld [vmem:[#allocation2 + $0xd0] sm:$0xff]  ;;  %v1161_v50 = vld [vmem:[#allocation3 + $0x10] sm:$0xff]  ;;  %s4093_s13 = scalar_lea.vmem %s4092_s29, 4096 }
 0x136   : > { %3867 = vmatpush3.bf16.msra.mxu0 %v4060_v42  ;;  %1050 = vst.msk [vmem:[#allocation2 + $0x38] sm:$0xff] %vm941_vm1, %v1040_v0  ;;  %v928_v5 = vmul.f32 %v927_v59, %v916_v2 }
 0x137   : > { %1132 = vst.msk [vmem:[#allocation2 + $0xd8] sm:$0xff] %vm941_vm1, %v1121_v1  ;;  %v4714_v45 = vld [vmem:[#allocation2 + $0x28] sm:$0xff]  ;;  %3904 = vmatprep.subr.bf16.mxu0 %v4702_v44  ;;  %v929_v6 = vmul.f32 %v927_v59, %v917_v3  ;;  %v1165_v1 = vld [vmem:[#allocation3 + $0x30] sm:$0xff]  ;;  %v1163_v3 = vld [vmem:[#allocation3 + $0x20] sm:$0xff] }
 0x138   : > { %3777 = vmatmul.mubr.msk.bf16.gmra.mrb[12].mxu1 %vm941_vm1, %v4714_v45  ;;  %v1000_v8 = vrot.slane %v928_v5, 7  ;;  %v1081_v9 = vrot.slane %v928_v5, 1  ;;  %v2127_v35 = vld [vmem:[#allocation2 + $0xc8] sm:$0xff] }
 0x139   : > { %3780 = vmatprep.mubr.msk.bf16.mxu1 %vm941_vm1, %v4719_v7  ;;  %3833 = vmatmul.mubr.msk.bf16.gmra.mrb[32].mxu0 %vm941_vm1, %v4671_v31  ;;  %v939_v10 = vpack.c.bf16 %v929_v6, %v928_v5  ;;  %v1001_v11 = vrot.slane %v929_v6, 7  ;;  %v1082_v12 = vrot.slane %v929_v6, 1  ;;  %v4758_v26 = vld [vmem:[#allocation2 + $0x40] sm:$0xff]  ;;  %v1166_v5 = vld [vmem:[#allocation3 + $0x38] sm:$0xff] }
 0x13a   : > { %3836 = vmatprep.mubr.msk.bf16.mxu0 %vm941_vm1, %v4714_v45  ;;  %v1032_v13 = vsel %vm972_vm2, 0.0, %v1000_v8  ;;  %v1351_v29 = vld [vmem:[#allocation2 + $0x88] sm:$0xff] }
 0x13b   : > { %951 = vst.msk [vmem:[#allocation2 + $0x98] sm:$0xff] %vm941_vm1, %v939_v10  ;;  %v1002_v14 = vsel %vm972_vm2, %v1000_v8, %v1001_v11  ;;  %v1083_v17 = vsel %vm1053_vm3, %v1081_v9, %v1082_v12  ;;  %v1113_v41 = vsel %vm1053_vm3, %v1082_v12, 0.0  ;;  %v2130_v42 = vld [vmem:[#allocation2 + $0xe0] sm:$0xff]  ;;  %v1164_v8 = vld [vmem:[#allocation3 + $0x28] sm:$0xff] }
 0x13c   : > { %v1042_v15 = vpack.c.bf16 %v1002_v14, %v1032_v13  ;;  %v1123_v18 = vpack.c.bf16 %v1113_v41, %v1083_v17  ;;  %v4069_v10 = vld [vmem:[%s5357_s9] sm:$0xff]  }
 0x13d   : > { %v4732_v19 = vld [vmem:[#allocation2 + $0x38] sm:$0xff] }
 0x13e   : > { %1052 = vst.msk [vmem:[#allocation2 + $0x48] sm:$0xff] %vm941_vm1, %v1042_v15  ;;  %1134 = vst.msk [vmem:[#allocation2 + $0xe8] sm:$0xff] %vm941_vm1, %v1123_v18  ;;  %v2129_v40 = vld [vmem:[#allocation2 + $0xd8] sm:$0xff] }
 0x140   : > { %3781 = vmatmul.mubr.msk.bf16.gmra.mrb[16].mxu1 %vm941_vm1, %v4732_v19 }
 0x141   : > { %3796 = vmatprep.mubr.msk.bf16.mxu1 %vm941_vm1, %v4738_v20  ;;  %3837 = vmatmul.mubr.msk.bf16.gmra.mrb[36].mxu0 %vm941_vm1, %v4719_v7 }
 0x142   : > { %3840 = vmatprep.mubr.msk.bf16.mxu0 %vm941_vm1, %v4732_v19 }
 0x148   : > { %3797 = vmatmul.mubr.msk.bf16.vlgmr.msra.gmra.mrb[20].mxu1 %vm941_vm1, %v4749_v23 }
 0x149   : > { %3805 = vmatpush3.bf16.msra.mxu1 %v4633_v39  ;;  %3800 = vmatprep.mubr.msk.bf16.mxu1 %vm941_vm1, %v4753_v24  ;;  %v1538_v39 = vld [vmem:[#allocation2 + $0xa0] sm:$0xff] }
 0x14a   : > { %3841 = vmatmul.mubr.msk.bf16.gmra.mrb[40].mxu0 %vm941_vm1, %v4758_v26  ;;  %3806 = vmatprep.subr.bf16.mxu1 %v4059_v22 }
 0x14b   : > { %3868 = vmatprep.mubr.msk.bf16.mxu0 %vm941_vm1, %v2123_v27 }
 0x14d   : > { %3807 = vmatpush3.bf16.msra.mxu1 %v4059_v22 }
 0x14e   : > { %3844 = vmatprep.subr.bf16.mxu1 %v4061_v28 }
 0x150   : > { %3801 = vmatmul.mubr.msk.bf16.gmra.mrb[24].mxu1 %vm941_vm1, %v1351_v29 }
 0x151   : > { %3808 = vmatprep.mubr.msk.bf16.mxu1 %vm941_vm1, %v1538_v39  ;;  %v1167_v39 = vld [vmem:[#allocation3 + $0x40] sm:$0xff] }
 0x152   : > { %3869 = vmatmul.mubr.msk.bf16.vlgmr.msra.gmra.mrb[44].mxu0 %vm941_vm1, %v4771_v32 }
 0x153   : > { %3872 = vmatprep.mubr.msk.bf16.mxu0 %vm941_vm1, %v4775_v33  ;;  %3905 = vmatpush3.bf16.msra.mxu0 %v4702_v44  ;;  %v1160_v44 = vld [vmem:[#allocation3 + $0x8] sm:$0xff] }
 0x154   : > { %3906 = vmatprep.subr.bf16.mxu0 %v4064_v30 }
 0x157   : > { %3907 = vmatpush3.bf16.msra.mxu0 %v4064_v30 }
 0x158   : > { %3809 = vmatmul.mubr.msk.bf16.vlgmr.msra.gmra.mrb[28].mxu1 %vm941_vm1, %v2123_v27  ;;  %3944 = vmatprep.subr.bf16.mxu0 %v4069_v10 }
 0x159   : > { %3845 = vmatpush3.bf16.msra.mxu1 %v4061_v28  ;;  %3812 = vmatprep.mubr.msk.bf16.mxu1 %vm941_vm1, %v4771_v32 }
 0x15a   : > { %3873 = vmatmul.mubr.msk.bf16.gmra.mrb[48].mxu0 %vm941_vm1, %v2126_v43  ;;  %3846 = vmatprep.subr.bf16.mxu1 %v4062_v34 }
 0x15b   : > { %3876 = vmatprep.mubr.msk.bf16.mxu0 %vm941_vm1, %v2127_v35 }
 0x15d   : > { %3847 = vmatpush3.bf16.msra.mxu1 %v4062_v34 }
 0x15e   : > { %3884 = vmatprep.subr.bf16.mxu1 %v4065_v37 }
 0x160   : > { %3813 = vmatmul.mubr.msk.bf16.gmra.mrb[32].mxu1 %vm941_vm1, %v4775_v33 }
 0x161   : > { %3816 = vmatprep.mubr.msk.bf16.mxu1 %vm941_vm1, %v2126_v43 }
 0x162   : > { %3877 = vmatmul.mubr.msk.bf16.gmra.mrb[52].mxu0 %vm941_vm1, %v2128_v38 }
 0x163   : > { %3880 = vmatprep.mubr.msk.bf16.mxu0 %vm941_vm1, %v2129_v40 }
 0x168   : > { %3817 = vmatmul.mubr.msk.bf16.gmra.mrb[36].mxu1 %vm941_vm1, %v2127_v35 }
 0x169   : > { %3820 = vmatprep.mubr.msk.bf16.mxu1 %vm941_vm1, %v2128_v38 }
 0x16a   : > { %3881 = vmatmul.mubr.msk.bf16.gmra.mrb[56].mxu0 %vm941_vm1, %v2130_v42 }
 0x16b   : > { %3908 = vmatprep.mubr.msk.bf16.mxu0 %vm941_vm1, %v4589_v21 }
 0x170   : > { %3821 = vmatmul.mubr.msk.bf16.gmra.mrb[40].mxu1 %vm941_vm1, %v2129_v40 }
 0x171   : > { %3848 = vmatprep.mubr.msk.bf16.mxu1 %vm941_vm1, %v4585_v16  ;;  %v4067_v16 = vld [vmem:[%s5354_s6 + $0x80] sm:$0xff]  }
 0x172   : > { %3909 = vmatmul.mubr.msk.bf16.vlgmr.msra.gmra.mrb[60].mxu0 %vm941_vm1, %v4642_v4 }
 0x173   : > { %3912 = vmatprep.mubr.msk.bf16.mxu0 %vm941_vm1, %v4738_v20  ;;  %3945 = vmatpush3.bf16.msra.mxu0 %v4069_v10 }
 0x178   : > { %3849 = vmatmul.mubr.msk.bf16.vlgmr.msra.gmra.mrb[44].mxu1 %vm941_vm1, %v4589_v21  ;;  %v2519_v21 = vld [vmem:[#allocation2 + $0x90] sm:$0xff] }
 0x179   : > { %3885 = vmatpush3.bf16.msra.mxu1 %v4065_v37  ;;  %3852 = vmatprep.mubr.msk.bf16.mxu1 %vm941_vm1, %v4642_v4  ;;  %v2520_v4 = vld [vmem:[#allocation2 + $0x98] sm:$0xff] }
 0x17a   : > { %3913 = vmatmul.mubr.msk.bf16.gmra.mrb[64].mxu0 %vm941_vm1, %v4749_v23  ;;  %3886 = vmatprep.subr.bf16.mxu1 %v4066_v46 }
 0x17b   : > { %3916 = vmatprep.mubr.msk.bf16.mxu0 %vm941_vm1, %v4753_v24 }
 0x17d   : > { %3887 = vmatpush3.bf16.msra.mxu1 %v4066_v46 }
 0x17e   : > { %3924 = vmatprep.subr.bf16.mxu1 %v4067_v16 }
 0x180   : > { %3853 = vmatmul.mubr.msk.bf16.gmra.mrb[48].mxu1 %vm941_vm1, %v4738_v20 }
 0x181   : > { %3856 = vmatprep.mubr.msk.bf16.mxu1 %vm941_vm1, %v4749_v23 }
 0x182   : > { %3917 = vmatmul.mubr.msk.bf16.gmra.mrb[68].mxu0 %vm941_vm1, %v1351_v29 }
 0x183   : > { %3920 = vmatprep.mubr.msk.bf16.mxu0 %vm941_vm1, %v2519_v21 }
 0x188   : > { %3857 = vmatmul.mubr.msk.bf16.gmra.mrb[52].mxu1 %vm941_vm1, %v4753_v24 }
 0x189   : > { %3860 = vmatprep.mubr.msk.bf16.mxu1 %vm941_vm1, %v1351_v29  ;;  %v1169_v29 = vld [vmem:[#allocation3 + $0x50] sm:$0xff] }
 0x18a   : > { %3921 = vmatmul.mubr.msk.bf16.gmra.mrb[72].mxu0 %vm941_vm1, %v2520_v4 }
 0x190   : > { %3861 = vmatmul.mubr.msk.bf16.gmra.mrb[56].mxu1 %vm941_vm1, %v2519_v21 }
 0x191   : > { %3888 = vmatprep.mubr.msk.bf16.mxu1 %vm941_vm1, %v4617_v51  ;;  %v2325_v51 = vld [vmem:[#allocation2 + $0x48] sm:$0xff] }
 0x198   : > { %3889 = vmatmul.mubr.msk.bf16.vlgmr.msra.gmra.mrb[60].mxu1 %vm941_vm1, %v4663_v25  ;;  %v2715_v25 = vld [vmem:[#allocation2 + $0xe8] sm:$0xff] }
 0x199   : > { %3925 = vmatpush3.bf16.msra.mxu1 %v4067_v16  ;;  %3892 = vmatprep.mubr.msk.bf16.mxu1 %vm941_vm1, %v4671_v31 }
 0x19a   : > { %3926 = vmatprep.subr.bf16.mxu1 %v4068_v47 }
 0x19d   : > { %3927 = vmatpush3.bf16.msra.mxu1 %v4068_v47 }
 0x1a0   : > { %3893 = vmatmul.mubr.msk.bf16.gmra.mrb[64].mxu1 %vm941_vm1, %v4714_v45 }
 0x1a1   : > { %3896 = vmatprep.mubr.msk.bf16.mxu1 %vm941_vm1, %v4719_v7 }
 0x1a8   : > { %3897 = vmatmul.mubr.msk.bf16.gmra.mrb[68].mxu1 %vm941_vm1, %v4732_v19 }
 0x1a9   : > { %3900 = vmatprep.mubr.msk.bf16.mxu1 %vm941_vm1, %v4758_v26 }
 0x1b0   : > { %3901 = vmatmul.mubr.msk.bf16.gmra.mrb[72].mxu1 %vm941_vm1, %v2325_v51 }
 0x1b1   : > { %3928 = vmatprep.mubr.msk.bf16.mxu1 %vm941_vm1, %v4771_v32 }
 0x1b8   : > { %3929 = vmatmul.mubr.msk.bf16.vlgmr.msra.gmra.mrb[76].mxu1 %vm941_vm1, %v4775_v33  ;;  %v1170_v33 = vld [vmem:[#allocation3 + $0x58] sm:$0xff] }
 0x1b9   : > { %3932 = vmatprep.mubr.msk.bf16.mxu1 %vm941_vm1, %v2126_v43 }
 0x1c0   : > { %3933 = vmatmul.mubr.msk.bf16.gmra.mrb[80].mxu1 %vm941_vm1, %v2127_v35 }
 0x1c1   : > { %3936 = vmatprep.mubr.msk.bf16.mxu1 %vm941_vm1, %v2128_v38  ;;  %v1168_v38 = vld [vmem:[#allocation3 + $0x48] sm:$0xff] }
 0x1c8   : > { %3937 = vmatmul.mubr.msk.bf16.gmra.mrb[84].mxu1 %vm941_vm1, %v2129_v40 }
 0x1c9   : > { %3940 = vmatprep.mubr.msk.bf16.mxu1 %vm941_vm1, %v2130_v42 }
 0x1d0   : > { %3941 = vmatmul.mubr.msk.bf16.gmra.mrb[88].mxu1 %vm941_vm1, %v2715_v25 }
 0x1f2   : > { %v3790_v31 = vpop.f32.mrb[20].mxu0 }
 0x1f3   : > { %v1443_v48 = vpop.f32.mrb[21].mxu0 }
 0x1f4   : > { %v3791_v49 = vpop.f32.mrb[22].mxu0 }
 0x1f5   : > { %v1446_v52 = vpop.f32.mrb[23].mxu0 }
 0x1f7   : > { %v3770_v54 = vpop.f32.mrb[4].mxu1 }
 0x1f8   : > { %v1314_v56 = vadd.f32 %v3770_v54, %v1161_v50  ;;  %v1249_v57 = vpop.f32.mrb[5].mxu1  ;;  %v4070_v54 = vld [vmem:[%s5357_s9 + $0x8] sm:$0xff]  }
 0x1f9   : > { %v1312_v58 = vadd.f32 %v1249_v57, %v1159_v53  ;;  %v3771_v59 = vpop.f32.mrb[6].mxu1  ;;  %v1173_v53 = vld [vmem:[#allocation3 + $0x70] sm:$0xff]  ;;  %v1174_v57 = vld [vmem:[#allocation3 + $0x78] sm:$0xff]  ;;  %3946 = vmatprep.subr.bf16.mxu0 %v4070_v54 }
 0x1fa   : > { %1330 = vst.msk [vmem:[#allocation3 + $0x10] sm:$0xff] %vm941_vm1, %v1314_v56  ;;  %v1315_v60 = vadd.f32 %v3771_v59, %v1162_v55  ;;  %v1252_v61 = vpop.f32.mrb[7].mxu1  ;;  %v1171_v55 = vld [vmem:[#allocation3 + $0x60] sm:$0xff]  ;;  %v1172_v59 = vld [vmem:[#allocation3 + $0x68] sm:$0xff]  ;;  %3947 = vmatpush3.bf16.msra.mxu0 %v4070_v54 }
 0x1fb   : > { %1328 = vst.msk [vmem:[#allocation3] sm:$0xff] %vm941_vm1, %v1312_v58  ;;  %v1313_v62 = vadd.f32 %v1252_v61, %v1160_v44 }
 0x1fc   : > { %1331 = vst.msk [vmem:[#allocation3 + $0x18] sm:$0xff] %vm941_vm1, %v1315_v60  ;;  %v3794_v36 = vpop.f32.mrb[24].mxu0 }
 0x1fd   : > { %1329 = vst.msk [vmem:[#allocation3 + $0x8] sm:$0xff] %vm941_vm1, %v1313_v62  ;;  %v1459_v63 = vpop.f32.mrb[25].mxu0 }
 0x1fe   : > { %v3795_v0 = vpop.f32.mrb[26].mxu0 }
 0x1ff   : > { %v1462_v2 = vpop.f32.mrb[27].mxu0 }
 0x200   : > { %v3774_v45 = vpop.f32.mrb[8].mxu1 }
 0x201   : > { %v1318_v6 = vadd.f32 %v3774_v45, %v1165_v1  ;;  %v1265_v7 = vpop.f32.mrb[9].mxu1  ;;  %v1354_v9 = vld [vmem:[#allocation3 + $0x10] sm:$0xff] }
 0x202   : > { %v1316_v11 = vadd.f32 %v1265_v7, %v1163_v3  ;;  %v3775_v12 = vpop.f32.mrb[10].mxu1  ;;  %v1508_v13 = vadd.f32 %v3790_v31, %v1354_v9  ;;  %v1352_v14 = vld [vmem:[#allocation3] sm:$0xff] }
 0x203   : > { %1334 = vst.msk [vmem:[#allocation3 + $0x30] sm:$0xff] %vm941_vm1, %v1318_v6  ;;  %v1319_v15 = vadd.f32 %v3775_v12, %v1166_v5  ;;  %v1268_v17 = vpop.f32.mrb[11].mxu1  ;;  %v1506_v41 = vadd.f32 %v1443_v48, %v1352_v14  ;;  %v1355_v18 = vld [vmem:[#allocation3 + $0x18] sm:$0xff] }
 0x204   : > { %1332 = vst.msk [vmem:[#allocation3 + $0x20] sm:$0xff] %vm941_vm1, %v1316_v11  ;;  %v1317_v19 = vadd.f32 %v1268_v17, %v1164_v8  ;;  %v4870_v20 = vpop.f32.mrb[28].mxu0  ;;  %1524 = vst.msk [vmem:[#allocation3 + $0x10] sm:$0xff] %vm941_vm1, %v1508_v13  ;;  %v1509_v22 = vadd.f32 %v3791_v49, %v1355_v18  ;;  %v1353_v23 = vld [vmem:[#allocation3 + $0x8] sm:$0xff] }
 0x205   : > { %1335 = vst.msk [vmem:[#allocation3 + $0x38] sm:$0xff] %vm941_vm1, %v1319_v15  ;;  %v4874_v24 = vpop.f32.mrb[29].mxu0  ;;  %1522 = vst.msk [vmem:[#allocation3] sm:$0xff] %vm941_vm1, %v1506_v41  ;;  %v1507_v26 = vadd.f32 %v1446_v52, %v1353_v23 }
 0x206   : > { %1333 = vst.msk [vmem:[#allocation3 + $0x28] sm:$0xff] %vm941_vm1, %v1317_v19  ;;  %v4878_v27 = vpop.f32.mrb[30].mxu0  ;;  %1525 = vst.msk [vmem:[#allocation3 + $0x18] sm:$0xff] %vm941_vm1, %v1509_v22 }
 0x207   : > { %v4881_v28 = vpop.f32.mrb[31].mxu0  ;;  %1523 = vst.msk [vmem:[#allocation3 + $0x8] sm:$0xff] %vm941_vm1, %v1507_v26 }
 0x20a   : > { %v1358_v30 = vld [vmem:[#allocation3 + $0x30] sm:$0xff] }
 0x20b   : > { %v3778_v32 = vpop.f32.mrb[12].mxu1  ;;  %v1512_v34 = vadd.f32 %v3794_v36, %v1358_v30  ;;  %v1356_v43 = vld [vmem:[#allocation3 + $0x20] sm:$0xff] }
 0x20c   : > { %v1322_v35 = vadd.f32 %v3778_v32, %v1169_v29  ;;  %v1281_v37 = vpop.f32.mrb[13].mxu1  ;;  %v4884_v40 = vpop.f32.mrb[32].mxu0  ;;  %v1510_v42 = vadd.f32 %v1459_v63, %v1356_v43  ;;  %v1359_v46 = vld [vmem:[#allocation3 + $0x38] sm:$0xff] }
 0x20d   : > { %v1320_v16 = vadd.f32 %v1281_v37, %v1167_v39  ;;  %v3779_v21 = vpop.f32.mrb[14].mxu1  ;;  %v4886_v4 = vpop.f32.mrb[33].mxu0  ;;  %1528 = vst.msk [vmem:[#allocation3 + $0x30] sm:$0xff] %vm941_vm1, %v1512_v34  ;;  %v1513_v47 = vadd.f32 %v3795_v0, %v1359_v46  ;;  %v1357_v51 = vld [vmem:[#allocation3 + $0x28] sm:$0xff] }
 0x20e   : > { %1338 = vst.msk [vmem:[#allocation3 + $0x50] sm:$0xff] %vm941_vm1, %v1322_v35  ;;  %v1323_v25 = vadd.f32 %v3779_v21, %v1170_v33  ;;  %v1284_v31 = vpop.f32.mrb[15].mxu1  ;;  %v4890_v48 = vpop.f32.mrb[34].mxu0  ;;  %1526 = vst.msk [vmem:[#allocation3 + $0x20] sm:$0xff] %vm941_vm1, %v1510_v42  ;;  %v1511_v49 = vadd.f32 %v1462_v2, %v1357_v51  ;;  %v1548_v21 = vld [vmem:[#allocation3 + $0x10] sm:$0xff] }
 0x20f   : > { %1336 = vst.msk [vmem:[#allocation3 + $0x40] sm:$0xff] %vm941_vm1, %v1320_v16  ;;  %v1321_v50 = vadd.f32 %v1284_v31, %v1168_v38  ;;  %v4894_v52 = vpop.f32.mrb[35].mxu0  ;;  %1529 = vst.msk [vmem:[#allocation3 + $0x38] sm:$0xff] %vm941_vm1, %v1513_v47 }
 0x210   : > { %1339 = vst.msk [vmem:[#allocation3 + $0x58] sm:$0xff] %vm941_vm1, %v1323_v25  ;;  %1527 = vst.msk [vmem:[#allocation3 + $0x28] sm:$0xff] %vm941_vm1, %v1511_v49  ;;  %v1546_v25 = vld [vmem:[#allocation3] sm:$0xff] }
 0x211   : > { %1337 = vst.msk [vmem:[#allocation3 + $0x48] sm:$0xff] %vm941_vm1, %v1321_v50  ;;  %v1549_v50 = vld [vmem:[#allocation3 + $0x18] sm:$0xff] }
 0x213   : > { %v3782_v56 = vpop.f32.mrb[16].mxu1 }
 0x214   : > { %v1326_v44 = vadd.f32 %v3782_v56, %v1173_v53  ;;  %v1297_v58 = vpop.f32.mrb[17].mxu1  ;;  %v4903_v60 = vpop.f32.mrb[36].mxu0  ;;  %v1547_v56 = vld [vmem:[#allocation3 + $0x8] sm:$0xff] }
 0x215   : > { %v1324_v61 = vadd.f32 %v1297_v58, %v1171_v55  ;;  %v3783_v62 = vpop.f32.mrb[18].mxu1  ;;  %v4905_v36 = vpop.f32.mrb[37].mxu0  ;;  %v1362_v45 = vld [vmem:[#allocation3 + $0x50] sm:$0xff] }
 0x216   : > { %1342 = vst.msk [vmem:[#allocation3 + $0x70] sm:$0xff] %vm941_vm1, %v1326_v44  ;;  %v1327_v63 = vadd.f32 %v3783_v62, %v1174_v57  ;;  %v1300_v0 = vpop.f32.mrb[19].mxu1  ;;  %v4908_v1 = vpop.f32.mrb[38].mxu0  ;;  %v1360_v7 = vld [vmem:[#allocation3 + $0x40] sm:$0xff]  ;;  %v1552_v62 = vld [vmem:[#allocation3 + $0x30] sm:$0xff] }
 0x217   : > { %1340 = vst.msk [vmem:[#allocation3 + $0x60] sm:$0xff] %vm941_vm1, %v1324_v61  ;;  %v1325_v2 = vadd.f32 %v1300_v0, %v1172_v59  ;;  %v4911_v3 = vpop.f32.mrb[39].mxu0  ;;  %v1363_v10 = vld [vmem:[#allocation3 + $0x58] sm:$0xff] }
 0x218   : > { %1343 = vst.msk [vmem:[#allocation3 + $0x78] sm:$0xff] %vm941_vm1, %v1327_v63  ;;  %v1361_v14 = vld [vmem:[#allocation3 + $0x48] sm:$0xff] }
 0x219   : > { %1341 = vst.msk [vmem:[#allocation3 + $0x68] sm:$0xff] %vm941_vm1, %v1325_v2  ;;  %v1550_v2 = vld [vmem:[#allocation3 + $0x20] sm:$0xff] }
 0x21b   : > { %v3798_v5 = vpop.f32.mrb[20].mxu1 }
 0x21c   : > { %v1516_v6 = vadd.f32 %v3798_v5, %v1362_v45  ;;  %v1475_v8 = vpop.f32.mrb[21].mxu1 }
 0x21d   : > { %v1514_v9 = vadd.f32 %v1475_v8, %v1360_v7  ;;  %v3799_v11 = vpop.f32.mrb[22].mxu1  ;;  %v4915_v12 = vpop.f32.mrb[40].mxu0  ;;  %v1366_v22 = vld [vmem:[#allocation3 + $0x70] sm:$0xff] }
 0x21e   : > { %1532 = vst.msk [vmem:[#allocation3 + $0x50] sm:$0xff] %vm941_vm1, %v1516_v6  ;;  %v1517_v13 = vadd.f32 %v3799_v11, %v1363_v10  ;;  %v1478_v15 = vpop.f32.mrb[23].mxu1  ;;  %v4918_v17 = vpop.f32.mrb[41].mxu0  ;;  %v1364_v29 = vld [vmem:[#allocation3 + $0x60] sm:$0xff]  ;;  %v1553_v6 = vld [vmem:[#allocation3 + $0x38] sm:$0xff]  ;;  %v1551_v11 = vld [vmem:[#allocation3 + $0x28] sm:$0xff] }
 0x21f   : > { %1530 = vst.msk [vmem:[#allocation3 + $0x40] sm:$0xff] %vm941_vm1, %v1514_v9  ;;  %v1515_v41 = vadd.f32 %v1478_v15, %v1361_v14  ;;  %v4921_v18 = vpop.f32.mrb[42].mxu0  ;;  %v1367_v32 = vld [vmem:[#allocation3 + $0x78] sm:$0xff] }
 0x220   : > { %1533 = vst.msk [vmem:[#allocation3 + $0x58] sm:$0xff] %vm941_vm1, %v1517_v13  ;;  %v4924_v19 = vpop.f32.mrb[43].mxu0  ;;  %v1365_v35 = vld [vmem:[#allocation3 + $0x68] sm:$0xff] }
 0x221   : > { %1531 = vst.msk [vmem:[#allocation3 + $0x48] sm:$0xff] %vm941_vm1, %v1515_v41 }
 0x223   : > { %v3802_v23 = vpop.f32.mrb[24].mxu1 }
 0x224   : > { %v1520_v26 = vadd.f32 %v3802_v23, %v1366_v22  ;;  %v1491_v39 = vpop.f32.mrb[25].mxu1 }
 0x225   : > { %v1518_v30 = vadd.f32 %v1491_v39, %v1364_v29  ;;  %v3803_v33 = vpop.f32.mrb[26].mxu1  ;;  %v4927_v34 = vpop.f32.mrb[44].mxu0 }
 0x226   : > { %1536 = vst.msk [vmem:[#allocation3 + $0x70] sm:$0xff] %vm941_vm1, %v1520_v26  ;;  %v1521_v43 = vadd.f32 %v3803_v33, %v1367_v32  ;;  %v1494_v37 = vpop.f32.mrb[27].mxu1  ;;  %v4930_v38 = vpop.f32.mrb[45].mxu0  ;;  %v1556_v33 = vld [vmem:[#allocation3 + $0x50] sm:$0xff] }
 0x227   : > { %1534 = vst.msk [vmem:[#allocation3 + $0x60] sm:$0xff] %vm941_vm1, %v1518_v30  ;;  %v1519_v42 = vadd.f32 %v1494_v37, %v1365_v35  ;;  %v4933_v46 = vpop.f32.mrb[46].mxu0  ;;  %v1554_v35 = vld [vmem:[#allocation3 + $0x40] sm:$0xff] }
 0x228   : > { %1537 = vst.msk [vmem:[#allocation3 + $0x78] sm:$0xff] %vm941_vm1, %v1521_v43  ;;  %v4936_v16 = vpop.f32.mrb[47].mxu0 }
 0x229   : > { %1535 = vst.msk [vmem:[#allocation3 + $0x68] sm:$0xff] %vm941_vm1, %v1519_v42 }
 0x22b   : > { %v3810_v47 = vpop.f32.mrb[28].mxu1 }
 0x22c   : > { %v1702_v51 = vadd.f32 %v3810_v47, %v1548_v21  ;;  %v1637_v31 = vpop.f32.mrb[29].mxu1  ;;  %v1557_v21 = vld [vmem:[#allocation3 + $0x58] sm:$0xff] }
 0x22d   : > { %v1700_v49 = vadd.f32 %v1637_v31, %v1546_v25  ;;  %v3811_v53 = vpop.f32.mrb[30].mxu1  ;;  %v4939_v54 = vpop.f32.mrb[48].mxu0  ;;  %v1555_v31 = vld [vmem:[#allocation3 + $0x48] sm:$0xff] }
 0x22e   : > { %1718 = vst.msk [vmem:[#allocation3 + $0x10] sm:$0xff] %vm941_vm1, %v1702_v51  ;;  %v1703_v55 = vadd.f32 %v3811_v53, %v1549_v50  ;;  %v1640_v57 = vpop.f32.mrb[31].mxu1  ;;  %v4942_v44 = vpop.f32.mrb[49].mxu0 }
 0x22f   : > { %1716 = vst.msk [vmem:[#allocation3] sm:$0xff] %vm941_vm1, %v1700_v49  ;;  %v1701_v58 = vadd.f32 %v1640_v57, %v1547_v56  ;;  %v4945_v59 = vpop.f32.mrb[50].mxu0 }
 0x230   : > { %1719 = vst.msk [vmem:[#allocation3 + $0x18] sm:$0xff] %vm941_vm1, %v1703_v55  ;;  %v4948_v61 = vpop.f32.mrb[51].mxu0 }
 0x231   : > { %1717 = vst.msk [vmem:[#allocation3 + $0x8] sm:$0xff] %vm941_vm1, %v1701_v58 }
 0x233   : > { %v3814_v63 = vpop.f32.mrb[32].mxu1 }
 0x234   : > { %v1706_v0 = vadd.f32 %v3814_v63, %v1552_v62  ;;  %v1653_v45 = vpop.f32.mrb[33].mxu1 }
 0x235   : > { %v1704_v5 = vadd.f32 %v1653_v45, %v1550_v2  ;;  %v3815_v7 = vpop.f32.mrb[34].mxu1  ;;  %v4951_v8 = vpop.f32.mrb[52].mxu0  ;;  %v1743_v9 = vld [vmem:[#allocation3 + $0x10] sm:$0xff] }
 0x236   : > { %1722 = vst.msk [vmem:[#allocation3 + $0x30] sm:$0xff] %vm941_vm1, %v1706_v0  ;;  %v1707_v10 = vadd.f32 %v3815_v7, %v1553_v6  ;;  %v1656_v13 = vpop.f32.mrb[35].mxu1  ;;  %v4954_v14 = vpop.f32.mrb[53].mxu0  ;;  %v1897_v15 = vadd.f32 %v4870_v20, %v1743_v9  ;;  %v1741_v41 = vld [vmem:[#allocation3] sm:$0xff]  ;;  %v1560_v2 = vld [vmem:[#allocation3 + $0x70] sm:$0xff]  ;;  %v1561_v9 = vld [vmem:[#allocation3 + $0x78] sm:$0xff] }
 0x237   : > { %1720 = vst.msk [vmem:[#allocation3 + $0x20] sm:$0xff] %vm941_vm1, %v1704_v5  ;;  %v1705_v22 = vadd.f32 %v1656_v13, %v1551_v11  ;;  %v4958_v23 = vpop.f32.mrb[54].mxu0  ;;  %v1895_v26 = vadd.f32 %v4874_v24, %v1741_v41  ;;  %v1744_v29 = vld [vmem:[#allocation3 + $0x18] sm:$0xff]  ;;  %v1558_v5 = vld [vmem:[#allocation3 + $0x60] sm:$0xff] }
 0x238   : > { %1723 = vst.msk [vmem:[#allocation3 + $0x38] sm:$0xff] %vm941_vm1, %v1707_v10  ;;  %v4962_v39 = vpop.f32.mrb[55].mxu0  ;;  %1913 = vst.msk [vmem:[#allocation3 + $0x10] sm:$0xff] %vm941_vm1, %v1897_v15  ;;  %v1898_v30 = vadd.f32 %v4878_v27, %v1744_v29  ;;  %v1742_v32 = vld [vmem:[#allocation3 + $0x8] sm:$0xff] }
 0x239   : > { %1721 = vst.msk [vmem:[#allocation3 + $0x28] sm:$0xff] %vm941_vm1, %v1705_v22  ;;  %1911 = vst.msk [vmem:[#allocation3] sm:$0xff] %vm941_vm1, %v1895_v26  ;;  %v1896_v20 = vadd.f32 %v4881_v28, %v1742_v32  ;;  %v1559_v15 = vld [vmem:[#allocation3 + $0x68] sm:$0xff] }
 0x23a   : > { %1914 = vst.msk [vmem:[#allocation3 + $0x18] sm:$0xff] %vm941_vm1, %v1898_v30 }
 0x23b   : > { %v3818_v24 = vpop.f32.mrb[36].mxu1  ;;  %1912 = vst.msk [vmem:[#allocation3 + $0x8] sm:$0xff] %vm941_vm1, %v1896_v20 }
 0x23c   : > { %v1710_v43 = vadd.f32 %v3818_v24, %v1556_v33  ;;  %v1669_v37 = vpop.f32.mrb[37].mxu1 }
 0x23d   : > { %v1708_v42 = vadd.f32 %v1669_v37, %v1554_v35  ;;  %v3819_v47 = vpop.f32.mrb[38].mxu1  ;;  %v4971_v27 = vpop.f32.mrb[56].mxu0  ;;  %v1747_v51 = vld [vmem:[#allocation3 + $0x30] sm:$0xff] }
 0x23e   : > { %1726 = vst.msk [vmem:[#allocation3 + $0x50] sm:$0xff] %vm941_vm1, %v1710_v43  ;;  %v1711_v25 = vadd.f32 %v3819_v47, %v1557_v21  ;;  %v1672_v28 = vpop.f32.mrb[39].mxu1  ;;  %v4974_v49 = vpop.f32.mrb[57].mxu0  ;;  %v1901_v50 = vadd.f32 %v4884_v40, %v1747_v51  ;;  %v1745_v53 = vld [vmem:[#allocation3 + $0x20] sm:$0xff] }
 0x23f   : > { %1724 = vst.msk [vmem:[#allocation3 + $0x40] sm:$0xff] %vm941_vm1, %v1708_v42  ;;  %v1709_v55 = vadd.f32 %v1672_v28, %v1555_v31  ;;  %v4978_v56 = vpop.f32.mrb[58].mxu0  ;;  %v1899_v57 = vadd.f32 %v4886_v4, %v1745_v53  ;;  %v1748_v58 = vld [vmem:[#allocation3 + $0x38] sm:$0xff]  ;;  %v1938_v35 = vld [vmem:[#allocation3 + $0x10] sm:$0xff] }
 0x240   : > { %1727 = vst.msk [vmem:[#allocation3 + $0x58] sm:$0xff] %vm941_vm1, %v1711_v25  ;;  %v4982_v62 = vpop.f32.mrb[59].mxu0  ;;  %1917 = vst.msk [vmem:[#allocation3 + $0x30] sm:$0xff] %vm941_vm1, %v1901_v50  ;;  %v1902_v63 = vadd.f32 %v4890_v48, %v1748_v58  ;;  %v1746_v0 = vld [vmem:[#allocation3 + $0x28] sm:$0xff]  ;;  %v1936_v42 = vld [vmem:[#allocation3] sm:$0xff] }
 0x241   : > { %1725 = vst.msk [vmem:[#allocation3 + $0x48] sm:$0xff] %vm941_vm1, %v1709_v55  ;;  %1915 = vst.msk [vmem:[#allocation3 + $0x20] sm:$0xff] %vm941_vm1, %v1899_v57  ;;  %v1900_v40 = vadd.f32 %v4894_v52, %v1746_v0  ;;  %v1939_v51 = vld [vmem:[#allocation3 + $0x18] sm:$0xff] }
 0x242   : > { %1918 = vst.msk [vmem:[#allocation3 + $0x38] sm:$0xff] %vm941_vm1, %v1902_v63  ;;  %v1937_v50 = vld [vmem:[#allocation3 + $0x8] sm:$0xff] }
 0x243   : > { %v3822_v4 = vpop.f32.mrb[40].mxu1  ;;  %1916 = vst.msk [vmem:[#allocation3 + $0x28] sm:$0xff] %vm941_vm1, %v1900_v40 }
 0x244   : > { %v1714_v45 = vadd.f32 %v3822_v4, %v1560_v2  ;;  %v1685_v6 = vpop.f32.mrb[41].mxu1 }
 0x245   : > { %v1712_v7 = vadd.f32 %v1685_v6, %v1558_v5  ;;  %v3823_v10 = vpop.f32.mrb[42].mxu1  ;;  %v4991_v48 = vpop.f32.mrb[60].mxu0  ;;  %v1751_v11 = vld [vmem:[#allocation3 + $0x50] sm:$0xff] }
 0x246   : > { %1730 = vst.msk [vmem:[#allocation3 + $0x70] sm:$0xff] %vm941_vm1, %v1714_v45  ;;  %v1715_v13 = vadd.f32 %v3823_v10, %v1561_v9  ;;  %v1688_v52 = vpop.f32.mrb[43].mxu1  ;;  %v4994_v41 = vpop.f32.mrb[61].mxu0  ;;  %v1905_v22 = vadd.f32 %v4903_v60, %v1751_v11  ;;  %v1749_v26 = vld [vmem:[#allocation3 + $0x40] sm:$0xff] }
 0x247   : > { %1728 = vst.msk [vmem:[#allocation3 + $0x60] sm:$0xff] %vm941_vm1, %v1712_v7  ;;  %v1713_v29 = vadd.f32 %v1688_v52, %v1559_v15  ;;  %v4998_v30 = vpop.f32.mrb[62].mxu0  ;;  %v1903_v32 = vadd.f32 %v4905_v36, %v1749_v26  ;;  %v1752_v20 = vld [vmem:[#allocation3 + $0x58] sm:$0xff]  ;;  %v1942_v5 = vld [vmem:[#allocation3 + $0x30] sm:$0xff] }
 0x248   : > { %1731 = vst.msk [vmem:[#allocation3 + $0x78] sm:$0xff] %vm941_vm1, %v1715_v13  ;;  %v5002_v33 = vpop.f32.mrb[63].mxu0  ;;  %1921 = vst.msk [vmem:[#allocation3 + $0x50] sm:$0xff] %vm941_vm1, %v1905_v22  ;;  %v1906_v24 = vadd.f32 %v4908_v1, %v1752_v20  ;;  %v1750_v43 = vld [vmem:[#allocation3 + $0x48] sm:$0xff]  ;;  %v1940_v7 = vld [vmem:[#allocation3 + $0x20] sm:$0xff] }
 0x249   : > { %1729 = vst.msk [vmem:[#allocation3 + $0x68] sm:$0xff] %vm941_vm1, %v1713_v29  ;;  %1919 = vst.msk [vmem:[#allocation3 + $0x40] sm:$0xff] %vm941_vm1, %v1903_v32  ;;  %v1904_v60 = vadd.f32 %v4911_v3, %v1750_v43  ;;  %v1943_v11 = vld [vmem:[#allocation3 + $0x38] sm:$0xff] }
 0x24a   : > { %1922 = vst.msk [vmem:[#allocation3 + $0x58] sm:$0xff] %vm941_vm1, %v1906_v24  ;;  %v1941_v22 = vld [vmem:[#allocation3 + $0x28] sm:$0xff] }
 0x24b   : > { %v3850_v36 = vpop.f32.mrb[44].mxu1  ;;  %1920 = vst.msk [vmem:[#allocation3 + $0x48] sm:$0xff] %vm941_vm1, %v1904_v60 }
 0x24c   : > { %v2092_v37 = vadd.f32 %v3850_v36, %v1938_v35  ;;  %v2027_v21 = vpop.f32.mrb[45].mxu1 }
 0x24d   : > { %v2090_v47 = vadd.f32 %v2027_v21, %v1936_v42  ;;  %v3851_v25 = vpop.f32.mrb[46].mxu1  ;;  %v5011_v1 = vpop.f32.mrb[64].mxu0  ;;  %v1755_v31 = vld [vmem:[#allocation3 + $0x70] sm:$0xff] }
 0x24e   : > { %2108 = vst.msk [vmem:[#allocation3 + $0x10] sm:$0xff] %vm941_vm1, %v2092_v37  ;;  %v2093_v28 = vadd.f32 %v3851_v25, %v1939_v51  ;;  %v2030_v3 = vpop.f32.mrb[47].mxu1  ;;  %v5014_v53 = vpop.f32.mrb[65].mxu0  ;;  %v1909_v55 = vadd.f32 %v4915_v12, %v1755_v31  ;;  %v1753_v57 = vld [vmem:[#allocation3 + $0x60] sm:$0xff] }
 0x24f   : > { %2106 = vst.msk [vmem:[#allocation3] sm:$0xff] %vm941_vm1, %v2090_v47  ;;  %v2091_v58 = vadd.f32 %v2030_v3, %v1937_v50  ;;  %v5018_v63 = vpop.f32.mrb[66].mxu0  ;;  %v1907_v0 = vadd.f32 %v4918_v17, %v1753_v57  ;;  %v1756_v40 = vld [vmem:[#allocation3 + $0x78] sm:$0xff]  ;;  %v1946_v42 = vld [vmem:[#allocation3 + $0x50] sm:$0xff] }
 0x250   : > { %2109 = vst.msk [vmem:[#allocation3 + $0x18] sm:$0xff] %vm941_vm1, %v2093_v28  ;;  %v5022_v2 = vpop.f32.mrb[67].mxu0  ;;  %1925 = vst.msk [vmem:[#allocation3 + $0x70] sm:$0xff] %vm941_vm1, %v1909_v55  ;;  %v1910_v4 = vadd.f32 %v4921_v18, %v1756_v40  ;;  %v1754_v45 = vld [vmem:[#allocation3 + $0x68] sm:$0xff]  ;;  %v1944_v47 = vld [vmem:[#allocation3 + $0x40] sm:$0xff] }
 0x251   : > { %2107 = vst.msk [vmem:[#allocation3 + $0x8] sm:$0xff] %vm941_vm1, %v2091_v58  ;;  %1923 = vst.msk [vmem:[#allocation3 + $0x60] sm:$0xff] %vm941_vm1, %v1907_v0  ;;  %v1908_v12 = vadd.f32 %v4924_v19, %v1754_v45  ;;  %v1947_v31 = vld [vmem:[#allocation3 + $0x58] sm:$0xff] }
 0x252   : > { %1926 = vst.msk [vmem:[#allocation3 + $0x78] sm:$0xff] %vm941_vm1, %v1910_v4  ;;  %v1945_v55 = vld [vmem:[#allocation3 + $0x48] sm:$0xff] }
 0x253   : > { %v3854_v17 = vpop.f32.mrb[48].mxu1  ;;  %1924 = vst.msk [vmem:[#allocation3 + $0x68] sm:$0xff] %vm941_vm1, %v1908_v12 }
 0x254   : > { %v2096_v6 = vadd.f32 %v3854_v17, %v1942_v5  ;;  %v2043_v9 = vpop.f32.mrb[49].mxu1 }
 0x255   : > { %v2094_v10 = vadd.f32 %v2043_v9, %v1940_v7  ;;  %v3855_v13 = vpop.f32.mrb[50].mxu1  ;;  %v5031_v18 = vpop.f32.mrb[68].mxu0  ;;  %v2133_v15 = vld [vmem:[#allocation3 + $0x10] sm:$0xff] }
 0x256   : > { %2112 = vst.msk [vmem:[#allocation3 + $0x30] sm:$0xff] %vm941_vm1, %v2096_v6  ;;  %v2097_v52 = vadd.f32 %v3855_v13, %v1943_v11  ;;  %v2046_v19 = vpop.f32.mrb[51].mxu1  ;;  %v5034_v26 = vpop.f32.mrb[69].mxu0  ;;  %v2287_v29 = vadd.f32 %v4927_v34, %v2133_v15  ;;  %v2131_v32 = vld [vmem:[#allocation3] sm:$0xff] }
 0x257   : > { %2110 = vst.msk [vmem:[#allocation3 + $0x20] sm:$0xff] %vm941_vm1, %v2094_v10  ;;  %v2095_v20 = vadd.f32 %v2046_v19, %v1941_v22  ;;  %v5038_v24 = vpop.f32.mrb[70].mxu0  ;;  %v2285_v43 = vadd.f32 %v4930_v38, %v2131_v32  ;;  %v2134_v60 = vld [vmem:[#allocation3 + $0x18] sm:$0xff] }
 0x258   : > { %2113 = vst.msk [vmem:[#allocation3 + $0x38] sm:$0xff] %vm941_vm1, %v2097_v52  ;;  %v5042_v35 = vpop.f32.mrb[71].mxu0  ;;  %2303 = vst.msk [vmem:[#allocation3 + $0x10] sm:$0xff] %vm941_vm1, %v2287_v29  ;;  %v2288_v36 = vadd.f32 %v4933_v46, %v2134_v60  ;;  %v2132_v37 = vld [vmem:[#allocation3 + $0x8] sm:$0xff]  ;;  %v1948_v10 = vld [vmem:[#allocation3 + $0x60] sm:$0xff] }
 0x259   : > { %2111 = vst.msk [vmem:[#allocation3 + $0x28] sm:$0xff] %vm941_vm1, %v2095_v20  ;;  %2301 = vst.msk [vmem:[#allocation3] sm:$0xff] %vm941_vm1, %v2285_v43  ;;  %v2286_v34 = vadd.f32 %v4936_v16, %v2132_v37 }
 0x25a   : > { %2304 = vst.msk [vmem:[#allocation3 + $0x18] sm:$0xff] %vm941_vm1, %v2288_v36  ;;  %v1949_v19 = vld [vmem:[#allocation3 + $0x68] sm:$0xff] }
 0x25b   : > { %v3858_v38 = vpop.f32.mrb[52].mxu1  ;;  %2302 = vst.msk [vmem:[#allocation3 + $0x8] sm:$0xff] %vm941_vm1, %v2286_v34 }
 0x25c   : > { %v2100_v21 = vadd.f32 %v3858_v38, %v1946_v42  ;;  %v2059_v51 = vpop.f32.mrb[53].mxu1 }
 0x25d   : > { %v2098_v25 = vadd.f32 %v2059_v51, %v1944_v47  ;;  %v3859_v28 = vpop.f32.mrb[54].mxu1  ;;  %v2137_v46 = vld [vmem:[#allocation3 + $0x30] sm:$0xff]  ;;  %v5051_v50 = vpop.f32.mrb[72].mxu0 }
 0x25e   : > { %2116 = vst.msk [vmem:[#allocation3 + $0x50] sm:$0xff] %vm941_vm1, %v2100_v21  ;;  %v2101_v3 = vadd.f32 %v3859_v28, %v1947_v31  ;;  %v2062_v16 = vpop.f32.mrb[55].mxu1  ;;  %v2291_v57 = vadd.f32 %v4939_v54, %v2137_v46  ;;  %v2135_v58 = vld [vmem:[#allocation3 + $0x20] sm:$0xff]  ;;  %v5055_v0 = vpop.f32.mrb[73].mxu0 }
 0x25f   : > { %2114 = vst.msk [vmem:[#allocation3 + $0x40] sm:$0xff] %vm941_vm1, %v2098_v25  ;;  %v2099_v40 = vadd.f32 %v2062_v16, %v1945_v55  ;;  %v2289_v4 = vadd.f32 %v4942_v44, %v2135_v58  ;;  %v2138_v45 = vld [vmem:[#allocation3 + $0x38] sm:$0xff]  ;;  %v5059_v12 = vpop.f32.mrb[74].mxu0  ;;  %v1950_v44 = vld [vmem:[#allocation3 + $0x70] sm:$0xff] }
 0x260   : > { %2117 = vst.msk [vmem:[#allocation3 + $0x58] sm:$0xff] %vm941_vm1, %v2101_v3  ;;  %2307 = vst.msk [vmem:[#allocation3 + $0x30] sm:$0xff] %vm941_vm1, %v2291_v57  ;;  %v2292_v5 = vadd.f32 %v4945_v59, %v2138_v45  ;;  %v2136_v17 = vld [vmem:[#allocation3 + $0x28] sm:$0xff]  ;;  %v5064_v6 = vpop.f32.mrb[75].mxu0  ;;  %v1951_v59 = vld [vmem:[#allocation3 + $0x78] sm:$0xff] }
 0x261   : > { %2115 = vst.msk [vmem:[#allocation3 + $0x48] sm:$0xff] %vm941_vm1, %v2099_v40  ;;  %2305 = vst.msk [vmem:[#allocation3 + $0x20] sm:$0xff] %vm941_vm1, %v2289_v4  ;;  %v2290_v54 = vadd.f32 %v4948_v61, %v2136_v17  ;;  %v2328_v34 = vld [vmem:[#allocation3 + $0x10] sm:$0xff]  ;;  %v2326_v38 = vld [vmem:[#allocation3] sm:$0xff] }
 0x262   : > { %2308 = vst.msk [vmem:[#allocation3 + $0x38] sm:$0xff] %vm941_vm1, %v2292_v5  ;;  %v2329_v51 = vld [vmem:[#allocation3 + $0x18] sm:$0xff]  ;;  %v2327_v28 = vld [vmem:[#allocation3 + $0x8] sm:$0xff] }
 0x263   : > { %v3862_v7 = vpop.f32.mrb[56].mxu1  ;;  %2306 = vst.msk [vmem:[#allocation3 + $0x28] sm:$0xff] %vm941_vm1, %v2290_v54 }
 0x264   : > { %v2104_v9 = vadd.f32 %v3862_v7, %v1950_v44  ;;  %v2075_v11 = vpop.f32.mrb[57].mxu1 }
 0x265   : > { %v2102_v13 = vadd.f32 %v2075_v11, %v1948_v10  ;;  %v3863_v15 = vpop.f32.mrb[58].mxu1  ;;  %v2141_v52 = vld [vmem:[#allocation3 + $0x50] sm:$0xff] }
 0x266   : > { %2120 = vst.msk [vmem:[#allocation3 + $0x70] sm:$0xff] %vm941_vm1, %v2104_v9  ;;  %v2105_v22 = vadd.f32 %v3863_v15, %v1951_v59  ;;  %v2078_v29 = vpop.f32.mrb[59].mxu1  ;;  %v2295_v61 = vadd.f32 %v4951_v8, %v2141_v52  ;;  %v2139_v32 = vld [vmem:[#allocation3 + $0x40] sm:$0xff] }
 0x267   : > { %2118 = vst.msk [vmem:[#allocation3 + $0x60] sm:$0xff] %vm941_vm1, %v2102_v13  ;;  %v2103_v20 = vadd.f32 %v2078_v29, %v1949_v19  ;;  %v2293_v43 = vadd.f32 %v4954_v14, %v2139_v32  ;;  %v2142_v60 = vld [vmem:[#allocation3 + $0x58] sm:$0xff]  ;;  %v2332_v4 = vld [vmem:[#allocation3 + $0x30] sm:$0xff] }
 0x268   : > { %2121 = vst.msk [vmem:[#allocation3 + $0x78] sm:$0xff] %vm941_vm1, %v2105_v22  ;;  %2311 = vst.msk [vmem:[#allocation3 + $0x50] sm:$0xff] %vm941_vm1, %v2295_v61  ;;  %v2296_v36 = vadd.f32 %v4958_v23, %v2142_v60  ;;  %v2140_v37 = vld [vmem:[#allocation3 + $0x48] sm:$0xff]  ;;  %v2330_v5 = vld [vmem:[#allocation3 + $0x20] sm:$0xff] }
 0x269   : > { %2119 = vst.msk [vmem:[#allocation3 + $0x68] sm:$0xff] %vm941_vm1, %v2103_v20  ;;  %2309 = vst.msk [vmem:[#allocation3 + $0x40] sm:$0xff] %vm941_vm1, %v2293_v43  ;;  %v2294_v8 = vadd.f32 %v4962_v39, %v2140_v37  ;;  %v2333_v44 = vld [vmem:[#allocation3 + $0x38] sm:$0xff] }
 0x26a   : > { %2312 = vst.msk [vmem:[#allocation3 + $0x58] sm:$0xff] %vm941_vm1, %v2296_v36  ;;  %v2331_v10 = vld [vmem:[#allocation3 + $0x28] sm:$0xff] }
 0x26b   : > { %v3890_v42 = vpop.f32.mrb[60].mxu1  ;;  %2310 = vst.msk [vmem:[#allocation3 + $0x48] sm:$0xff] %vm941_vm1, %v2294_v8 }
 0x26c   : > { %v2482_v14 = vadd.f32 %v3890_v42, %v2328_v34  ;;  %v2417_v21 = vpop.f32.mrb[61].mxu1 }
 0x26d   : > { %v2480_v47 = vadd.f32 %v2417_v21, %v2326_v38  ;;  %v3891_v25 = vpop.f32.mrb[62].mxu1  ;;  %v2145_v23 = vld [vmem:[#allocation3 + $0x70] sm:$0xff] }
 0x26e   : > { %2498 = vst.msk [vmem:[#allocation3 + $0x10] sm:$0xff] %vm941_vm1, %v2482_v14  ;;  %v2483_v31 = vadd.f32 %v3891_v25, %v2329_v51  ;;  %v2420_v46 = vpop.f32.mrb[63].mxu1  ;;  %v2299_v39 = vadd.f32 %v4971_v27, %v2145_v23  ;;  %v2143_v3 = vld [vmem:[#allocation3 + $0x60] sm:$0xff] }
 0x26f   : > { %2496 = vst.msk [vmem:[#allocation3] sm:$0xff] %vm941_vm1, %v2480_v47  ;;  %v2481_v55 = vadd.f32 %v2420_v46, %v2327_v28  ;;  %v2297_v16 = vadd.f32 %v4974_v49, %v2143_v3  ;;  %v2146_v57 = vld [vmem:[#allocation3 + $0x78] sm:$0xff]  ;;  %v2336_v29 = vld [vmem:[#allocation3 + $0x50] sm:$0xff] }
 0x270   : > { %2499 = vst.msk [vmem:[#allocation3 + $0x18] sm:$0xff] %vm941_vm1, %v2483_v31  ;;  %2315 = vst.msk [vmem:[#allocation3 + $0x70] sm:$0xff] %vm941_vm1, %v2299_v39  ;;  %v2300_v58 = vadd.f32 %v4978_v56, %v2146_v57  ;;  %v2144_v40 = vld [vmem:[#allocation3 + $0x68] sm:$0xff]  ;;  %v2334_v32 = vld [vmem:[#allocation3 + $0x40] sm:$0xff] }
 0x271   : > { %2497 = vst.msk [vmem:[#allocation3 + $0x8] sm:$0xff] %vm941_vm1, %v2481_v55  ;;  %2313 = vst.msk [vmem:[#allocation3 + $0x60] sm:$0xff] %vm941_vm1, %v2297_v16  ;;  %v2298_v27 = vadd.f32 %v4982_v62, %v2144_v40  ;;  %v2337_v60 = vld [vmem:[#allocation3 + $0x58] sm:$0xff] }
 0x272   : > { %2316 = vst.msk [vmem:[#allocation3 + $0x78] sm:$0xff] %vm941_vm1, %v2300_v58  ;;  %v2335_v8 = vld [vmem:[#allocation3 + $0x48] sm:$0xff] }
 0x273   : > { %v3894_v45 = vpop.f32.mrb[64].mxu1  ;;  %2314 = vst.msk [vmem:[#allocation3 + $0x68] sm:$0xff] %vm941_vm1, %v2298_v27 }
 0x274   : > { %v2486_v49 = vadd.f32 %v3894_v45, %v2332_v4  ;;  %v2433_v17 = vpop.f32.mrb[65].mxu1 }
 0x275   : > { %v2484_v54 = vadd.f32 %v2433_v17, %v2330_v5  ;;  %v3895_v7 = vpop.f32.mrb[66].mxu1  ;;  %v2523_v56 = vld [vmem:[#allocation3 + $0x10] sm:$0xff] }
 0x276   : > { %2502 = vst.msk [vmem:[#allocation3 + $0x30] sm:$0xff] %vm941_vm1, %v2486_v49  ;;  %v2487_v9 = vadd.f32 %v3895_v7, %v2333_v44  ;;  %v2436_v11 = vpop.f32.mrb[67].mxu1  ;;  %v2677_v62 = vadd.f32 %v4991_v48, %v2523_v56  ;;  %v2521_v13 = vld [vmem:[#allocation3] sm:$0xff] }
 0x277   : > { %2500 = vst.msk [vmem:[#allocation3 + $0x20] sm:$0xff] %vm941_vm1, %v2484_v54  ;;  %v2485_v59 = vadd.f32 %v2436_v11, %v2331_v10  ;;  %v2675_v15 = vadd.f32 %v4994_v41, %v2521_v13  ;;  %v2524_v52 = vld [vmem:[#allocation3 + $0x18] sm:$0xff]  ;;  %v2340_v25 = vld [vmem:[#allocation3 + $0x70] sm:$0xff] }
 0x278   : > { %2503 = vst.msk [vmem:[#allocation3 + $0x38] sm:$0xff] %vm941_vm1, %v2487_v9  ;;  %2693 = vst.msk [vmem:[#allocation3 + $0x10] sm:$0xff] %vm941_vm1, %v2677_v62  ;;  %v2678_v22 = vadd.f32 %v4998_v30, %v2524_v52  ;;  %v2522_v19 = vld [vmem:[#allocation3 + $0x8] sm:$0xff]  ;;  %v2338_v31 = vld [vmem:[#allocation3 + $0x60] sm:$0xff] }
 0x279   : > { %2501 = vst.msk [vmem:[#allocation3 + $0x28] sm:$0xff] %vm941_vm1, %v2485_v59  ;;  %2691 = vst.msk [vmem:[#allocation3] sm:$0xff] %vm941_vm1, %v2675_v15  ;;  %v2676_v48 = vadd.f32 %v5002_v33, %v2522_v19  ;;  %v2341_v39 = vld [vmem:[#allocation3 + $0x78] sm:$0xff] }
 0x27a   : > { %2694 = vst.msk [vmem:[#allocation3 + $0x18] sm:$0xff] %vm941_vm1, %v2678_v22  ;;  %v2339_v16 = vld [vmem:[#allocation3 + $0x68] sm:$0xff] }
 0x27b   : > { %v3898_v61 = vpop.f32.mrb[68].mxu1  ;;  %2692 = vst.msk [vmem:[#allocation3 + $0x8] sm:$0xff] %vm941_vm1, %v2676_v48 }
 0x27c   : > { %v2490_v41 = vadd.f32 %v3898_v61, %v2336_v29  ;;  %v2449_v20 = vpop.f32.mrb[69].mxu1 }
 0x27d   : > { %v2488_v43 = vadd.f32 %v2449_v20, %v2334_v32  ;;  %v3899_v36 = vpop.f32.mrb[70].mxu1  ;;  %v2527_v30 = vld [vmem:[#allocation3 + $0x30] sm:$0xff] }
 0x27e   : > { %2506 = vst.msk [vmem:[#allocation3 + $0x50] sm:$0xff] %vm941_vm1, %v2490_v41  ;;  %v2491_v37 = vadd.f32 %v3899_v36, %v2337_v60  ;;  %v2452_v34 = vpop.f32.mrb[71].mxu1  ;;  %v2681_v33 = vadd.f32 %v5011_v1, %v2527_v30  ;;  %v2525_v42 = vld [vmem:[#allocation3 + $0x20] sm:$0xff] }
 0x27f   : > { %2504 = vst.msk [vmem:[#allocation3 + $0x40] sm:$0xff] %vm941_vm1, %v2488_v43  ;;  %v2489_v14 = vadd.f32 %v2452_v34, %v2335_v8  ;;  %v2679_v38 = vadd.f32 %v5014_v53, %v2525_v42  ;;  %v2528_v21 = vld [vmem:[#allocation3 + $0x38] sm:$0xff]  ;;  %v2718_v5 = vld [vmem:[#allocation3 + $0x10] sm:$0xff] }
 0x280   : > { %2507 = vst.msk [vmem:[#allocation3 + $0x58] sm:$0xff] %vm941_vm1, %v2491_v37  ;;  %2697 = vst.msk [vmem:[#allocation3 + $0x30] sm:$0xff] %vm941_vm1, %v2681_v33  ;;  %v2682_v47 = vadd.f32 %v5018_v63, %v2528_v21  ;;  %v2526_v51 = vld [vmem:[#allocation3 + $0x28] sm:$0xff]  ;;  %v2716_v54 = vld [vmem:[#allocation3] sm:$0xff] }
 0x281   : > { %2505 = vst.msk [vmem:[#allocation3 + $0x48] sm:$0xff] %vm941_vm1, %v2489_v14  ;;  %2695 = vst.msk [vmem:[#allocation3 + $0x20] sm:$0xff] %vm941_vm1, %v2679_v38  ;;  %v2680_v1 = vadd.f32 %v5022_v2, %v2526_v51  ;;  %v2719_v56 = vld [vmem:[#allocation3 + $0x18] sm:$0xff]  ;;  %v5152_v8 = vld [vmem:[%s5356_s8] ss:$0 sm:$0xff] }
 0x282   : > { %2698 = vst.msk [vmem:[#allocation3 + $0x38] sm:$0xff] %vm941_vm1, %v2682_v47  ;;  %v2717_v11 = vld [vmem:[#allocation3 + $0x8] sm:$0xff] }
 0x283   : > { %v3902_v23 = vpop.f32.mrb[72].mxu1  ;;  %2696 = vst.msk [vmem:[#allocation3 + $0x28] sm:$0xff] %vm941_vm1, %v2680_v1 }
 0x284   : > { %v2494_v53 = vadd.f32 %v3902_v23, %v2340_v25  ;;  %v2465_v28 = vpop.f32.mrb[73].mxu1 }
 0x285   : > { %v2492_v46 = vadd.f32 %v2465_v28, %v2338_v31  ;;  %v3903_v3 = vpop.f32.mrb[74].mxu1  ;;  %v2531_v63 = vld [vmem:[#allocation3 + $0x50] sm:$0xff] }
 0x286   : > { %2510 = vst.msk [vmem:[#allocation3 + $0x70] sm:$0xff] %vm941_vm1, %v2494_v53  ;;  %v2495_v55 = vadd.f32 %v3903_v3, %v2341_v39  ;;  %v2468_v57 = vpop.f32.mrb[75].mxu1  ;;  %v2685_v2 = vadd.f32 %v5031_v18, %v2531_v63  ;;  %v2529_v58 = vld [vmem:[#allocation3 + $0x40] sm:$0xff] }
 0x287   : > { %2508 = vst.msk [vmem:[#allocation3 + $0x60] sm:$0xff] %vm941_vm1, %v2492_v46  ;;  %v2493_v40 = vadd.f32 %v2468_v57, %v2339_v16  ;;  %v2683_v27 = vadd.f32 %v5034_v26, %v2529_v58  ;;  %v2532_v4 = vld [vmem:[#allocation3 + $0x58] sm:$0xff]  ;;  %v2722_v48 = vld [vmem:[#allocation3 + $0x30] sm:$0xff] }
 0x288   : > { %2511 = vst.msk [vmem:[#allocation3 + $0x78] sm:$0xff] %vm941_vm1, %v2495_v55  ;;  %2701 = vst.msk [vmem:[#allocation3 + $0x50] sm:$0xff] %vm941_vm1, %v2685_v2  ;;  %v2686_v45 = vadd.f32 %v5038_v24, %v2532_v4  ;;  %v2530_v49 = vld [vmem:[#allocation3 + $0x48] sm:$0xff] }
 0x289   : > { %2509 = vst.msk [vmem:[#allocation3 + $0x68] sm:$0xff] %vm941_vm1, %v2493_v40  ;;  %2699 = vst.msk [vmem:[#allocation3 + $0x40] sm:$0xff] %vm941_vm1, %v2683_v27  ;;  %v2684_v18 = vadd.f32 %v5042_v35, %v2530_v49  ;;  %v2723_v20 = vld [vmem:[#allocation3 + $0x38] sm:$0xff] }
 0x28a   : > { %2702 = vst.msk [vmem:[#allocation3 + $0x58] sm:$0xff] %vm941_vm1, %v2686_v45  ;;  %v2721_v36 = vld [vmem:[#allocation3 + $0x28] sm:$0xff] }
 0x28b   : > { %v3930_v17 = vpop.f32.mrb[76].mxu1  ;;  %2700 = vst.msk [vmem:[#allocation3 + $0x48] sm:$0xff] %vm941_vm1, %v2684_v18 }
 0x28c   : > { %v2872_v26 = vadd.f32 %v3930_v17, %v2718_v5  ;;  %v2807_v44 = vpop.f32.mrb[77].mxu1 }
 0x28d   : > { %v2870_v7 = vadd.f32 %v2807_v44, %v2716_v54  ;;  %v3931_v9 = vpop.f32.mrb[78].mxu1  ;;  %v2535_v24 = vld [vmem:[#allocation3 + $0x70] sm:$0xff] }
 0x28e   : > { %2888 = vst.msk [vmem:[#allocation3 + $0x10] sm:$0xff] %vm941_vm1, %v2872_v26  ;;  %v2873_v10 = vadd.f32 %v3931_v9, %v2719_v56  ;;  %v2810_v62 = vpop.f32.mrb[79].mxu1  ;;  %v2689_v35 = vadd.f32 %v5051_v50, %v2535_v24  ;;  %v2533_v13 = vld [vmem:[#allocation3 + $0x60] sm:$0xff] }
 0x28f   : > { %2886 = vst.msk [vmem:[#allocation3] sm:$0xff] %vm941_vm1, %v2870_v7  ;;  %v2871_v59 = vadd.f32 %v2810_v62, %v2717_v11  ;;  %v2687_v15 = vadd.f32 %v5055_v0, %v2533_v13  ;;  %v2536_v52 = vld [vmem:[#allocation3 + $0x78] sm:$0xff]  ;;  %v5145_v0 = vld [vmem:[%s5355_s7] ss:$0 sm:$0xff] }
 0x290   : > { %2889 = vst.msk [vmem:[#allocation3 + $0x18] sm:$0xff] %vm941_vm1, %v2873_v10  ;;  %2705 = vst.msk [vmem:[#allocation3 + $0x70] sm:$0xff] %vm941_vm1, %v2689_v35  ;;  %v2690_v22 = vadd.f32 %v5059_v12, %v2536_v52  ;;  %v2534_v19 = vld [vmem:[#allocation3 + $0x68] sm:$0xff]  ;;  %v2720_v12 = vld [vmem:[#allocation3 + $0x20] sm:$0xff] }
 0x291   : > { %2887 = vst.msk [vmem:[#allocation3 + $0x8] sm:$0xff] %vm941_vm1, %v2871_v59  ;;  %2703 = vst.msk [vmem:[#allocation3 + $0x60] sm:$0xff] %vm941_vm1, %v2687_v15  ;;  %v2688_v50 = vadd.f32 %v5064_v6, %v2534_v19  ;;  %v2726_v23 = vld [vmem:[#allocation3 + $0x50] sm:$0xff]  ;;  %v2724_v46 = vld [vmem:[#allocation3 + $0x40] sm:$0xff] }
 0x292   : > { %2706 = vst.msk [vmem:[#allocation3 + $0x78] sm:$0xff] %vm941_vm1, %v2690_v22  ;;  %v2727_v55 = vld [vmem:[#allocation3 + $0x58] sm:$0xff]  ;;  %v2725_v27 = vld [vmem:[#allocation3 + $0x48] sm:$0xff] }
 0x293   : > { %v3934_v29 = vpop.f32.mrb[80].mxu1  ;;  %2704 = vst.msk [vmem:[#allocation3 + $0x68] sm:$0xff] %vm941_vm1, %v2688_v50 }
 0x294   : > { %v2876_v61 = vadd.f32 %v3934_v29, %v2722_v48  ;;  %v2823_v41 = vpop.f32.mrb[81].mxu1 }
 0x295   : > { %v2874_v32 = vadd.f32 %v2823_v41, %v2720_v12  ;;  %v3935_v43 = vpop.f32.mrb[82].mxu1  ;;  %v2904_v60 = vld [vmem:[#allocation3 + $0x10] sm:$0xff] }
 0x296   : > { %2892 = vst.msk [vmem:[#allocation3 + $0x30] sm:$0xff] %vm941_vm1, %v2876_v61  ;;  %v2877_v6 = vadd.f32 %v3935_v43, %v2723_v20  ;;  %v2826_v30 = vpop.f32.mrb[83].mxu1  ;;  %v2902_v37 = vld [vmem:[#allocation3] sm:$0xff]  ;;  %v2927_v34 = vmul.f32 %v5145_v0, %v2904_v60 }
 0x297   : > { %2890 = vst.msk [vmem:[#allocation3 + $0x20] sm:$0xff] %vm941_vm1, %v2874_v32  ;;  %v2875_v33 = vadd.f32 %v2826_v30, %v2721_v36  ;;  %v2925_v42 = vmul.f32 %v5145_v0, %v2902_v37  ;;  %v2905_v14 = vld [vmem:[#allocation3 + $0x18] sm:$0xff]  ;;  %v2730_v62 = vld [vmem:[#allocation3 + $0x70] sm:$0xff] }
 0x298   : > { %2893 = vst.msk [vmem:[#allocation3 + $0x38] sm:$0xff] %vm941_vm1, %v2877_v6  ;;  %v2903_v38 = vld [vmem:[#allocation3 + $0x8] sm:$0xff]  ;;  %v2928_v21 = vmul.f32 %v5145_v0, %v2905_v14  ;;  %v2950_v1 = vadd.f32 %v5152_v8, %v2927_v34  ;;  %v2728_v15 = vld [vmem:[#allocation3 + $0x60] sm:$0xff] }
 0x299   : > { %2891 = vst.msk [vmem:[#allocation3 + $0x28] sm:$0xff] %vm941_vm1, %v2875_v33  ;;  %v2926_v47 = vmul.f32 %v5145_v0, %v2903_v38  ;;  %v2948_v51 = vadd.f32 %v5152_v8, %v2925_v42  ;;  %v2731_v50 = vld [vmem:[#allocation3 + $0x78] sm:$0xff] }
 0x29a   : > { %v2951_v25 = vadd.f32 %v5152_v8, %v2928_v21  ;;  %v2966_v45 = vmax.f32 %v2950_v1, 0.0  ;;  %v2729_v32 = vld [vmem:[#allocation3 + $0x68] sm:$0xff] }
 0x29b   : > { %v3938_v53 = vpop.f32.mrb[84].mxu1  ;;  %v2949_v31 = vadd.f32 %v5152_v8, %v2926_v47  ;;  %v2964_v57 = vmax.f32 %v2948_v51, 0.0 }
 0x29c   : > { %v2880_v28 = vadd.f32 %v3938_v53, %v2726_v23  ;;  %v2839_v39 = vpop.f32.mrb[85].mxu1  ;;  %v2967_v3 = vmax.f32 %v2951_v25, 0.0 }
 0x29d   : > { %v2878_v63 = vadd.f32 %v2839_v39, %v2724_v46  ;;  %v3939_v16 = vpop.f32.mrb[86].mxu1  ;;  %v2965_v2 = vmax.f32 %v2949_v31, 0.0  ;;  %v2908_v58 = vld [vmem:[#allocation3 + $0x30] sm:$0xff] }
 0x29e   : > { %2896 = vst.msk [vmem:[#allocation3 + $0x50] sm:$0xff] %vm941_vm1, %v2880_v28  ;;  %v2881_v40 = vadd.f32 %v3939_v16, %v2727_v55  ;;  %v2842_v4 = vpop.f32.mrb[87].mxu1  ;;  %v2906_v49 = vld [vmem:[#allocation3 + $0x20] sm:$0xff]  ;;  %v2931_v18 = vmul.f32 %v5145_v0, %v2908_v58  ;;  %v2981_v44 = vpack.c.bf16 %v2967_v3, %v2966_v45 }
 0x29f   : > { %2894 = vst.msk [vmem:[#allocation3 + $0x40] sm:$0xff] %vm941_vm1, %v2878_v63  ;;  %v2879_v5 = vadd.f32 %v2842_v4, %v2725_v27  ;;  %v2980_v17 = vpack.c.bf16 %v2965_v2, %v2964_v57  ;;  %v2929_v26 = vmul.f32 %v5145_v0, %v2906_v49  ;;  %v2909_v54 = vld [vmem:[#allocation3 + $0x38] sm:$0xff] }
 0x2a0   : > { %2897 = vst.msk [vmem:[#allocation3 + $0x58] sm:$0xff] %vm941_vm1, %v2881_v40  ;;  %v2907_v7 = vld [vmem:[#allocation3 + $0x28] sm:$0xff]  ;;  %v2932_v56 = vmul.f32 %v5145_v0, %v2909_v54  ;;  %v2954_v10 = vadd.f32 %v5152_v8, %v2931_v18 }
 0x2a1   : > { %2895 = vst.msk [vmem:[#allocation3 + $0x48] sm:$0xff] %vm941_vm1, %v2879_v5  ;;  %3948 = vmatprep.mubr.msk.bf16.mxu0 %vm941_vm1, %v2980_v17  ;;  %v2930_v9 = vmul.f32 %v5145_v0, %v2907_v7  ;;  %v2952_v24 = vadd.f32 %v5152_v8, %v2929_v26 }
 0x2a2   : > { %3949 = vmatmul.mubr.msk.bf16.vlgmr.msra.gmra.mrb[76].mxu0 %vm941_vm1, %v2981_v44  ;;  %v2955_v11 = vadd.f32 %v5152_v8, %v2932_v56  ;;  %v2970_v43 = vmax.f32 %v2954_v10, 0.0  ;;  %v5214_v44 = vld [vmem:[%s5359_s11] ss:$0 sm:$0xff] }
 0x2a3   : > { %v3942_v35 = vpop.f32.mrb[88].mxu1  ;;  %v2953_v13 = vadd.f32 %v5152_v8, %v2930_v9  ;;  %v2968_v29 = vmax.f32 %v2952_v24, 0.0 }
 0x2a4   : > { %v2884_v59 = vadd.f32 %v3942_v35, %v2730_v62  ;;  %v2855_v52 = vpop.f32.mrb[89].mxu1  ;;  %v2971_v22 = vmax.f32 %v2955_v11, 0.0 }
 0x2a5   : > { %v2882_v19 = vadd.f32 %v2855_v52, %v2728_v15  ;;  %v3943_v48 = vpop.f32.mrb[90].mxu1  ;;  %v2969_v61 = vmax.f32 %v2953_v13, 0.0  ;;  %v2912_v12 = vld [vmem:[#allocation3 + $0x50] sm:$0xff] }
 0x2a6   : > { %2900 = vst.msk [vmem:[#allocation3 + $0x70] sm:$0xff] %vm941_vm1, %v2884_v59  ;;  %v2885_v41 = vadd.f32 %v3943_v48, %v2731_v50  ;;  %v2858_v20 = vpop.f32.mrb[91].mxu1  ;;  %v2910_v60 = vld [vmem:[#allocation3 + $0x40] sm:$0xff]  ;;  %v2935_v6 = vmul.f32 %v5145_v0, %v2912_v12  ;;  %v2983_v33 = vpack.c.bf16 %v2971_v22, %v2970_v43  ;;  %v4072_v22 = vld [vmem:[%s4373_s17] sm:$0xff] }
 0x2a7   : > { %2898 = vst.msk [vmem:[#allocation3 + $0x60] sm:$0xff] %vm941_vm1, %v2882_v19  ;;  %v2883_v36 = vadd.f32 %v2858_v20, %v2729_v32  ;;  %v2982_v30 = vpack.c.bf16 %v2969_v61, %v2968_v29  ;;  %v2933_v37 = vmul.f32 %v5145_v0, %v2910_v60  ;;  %v2913_v34 = vld [vmem:[#allocation3 + $0x58] sm:$0xff]  ;;  %v4071_v59 = vld [vmem:[%s4373_s17 + $0x10] sm:$0xff]  ;;  %v4073_v29 = vld [vmem:[%s4373_s17 + $0x18] sm:$0xff] }
 0x2a8   : > { %2901 = vst.msk [vmem:[#allocation3 + $0x78] sm:$0xff] %vm941_vm1, %v2885_v41  ;;  %v2911_v42 = vld [vmem:[#allocation3 + $0x48] sm:$0xff]  ;;  %v2936_v14 = vmul.f32 %v5145_v0, %v2913_v34  ;;  %v2958_v47 = vadd.f32 %v5152_v8, %v2935_v6  ;;  %v4074_v41 = vld [vmem:[%s4373_s17 + $0x8] sm:$0xff] }
 0x2a9   : > { %2899 = vst.msk [vmem:[#allocation3 + $0x68] sm:$0xff] %vm941_vm1, %v2883_v36  ;;  %3952 = vmatprep.mubr.msk.bf16.mxu0 %vm941_vm1, %v2982_v30  ;;  %v2934_v38 = vmul.f32 %v5145_v0, %v2911_v42  ;;  %v2956_v21 = vadd.f32 %v5152_v8, %v2933_v37 }
 0x2aa   : > { %3953 = vmatmul.mubr.msk.bf16.gmra.mrb[80].mxu0 %vm941_vm1, %v2983_v33  ;;  %v2959_v51 = vadd.f32 %v5152_v8, %v2936_v14  ;;  %v2974_v28 = vmax.f32 %v2958_v47, 0.0 }
 0x2ab   : > { %v2957_v1 = vadd.f32 %v5152_v8, %v2934_v38  ;;  %v2972_v23 = vmax.f32 %v2956_v21, 0.0  ;;  %v4075_v21 = vld [vmem:[%s4373_s17 + $0x30] sm:$0xff] }
 0x2ac   : > { %v2975_v25 = vmax.f32 %v2959_v51, 0.0 }
 0x2ad   : > { %v2973_v53 = vmax.f32 %v2957_v1, 0.0  ;;  %v2916_v31 = vld [vmem:[#allocation3 + $0x70] sm:$0xff] }
 0x2ae   : > { %v2914_v46 = vld [vmem:[#allocation3 + $0x60] sm:$0xff]  ;;  %v2939_v39 = vmul.f32 %v5145_v0, %v2916_v31  ;;  %v2985_v16 = vpack.c.bf16 %v2975_v25, %v2974_v28  ;;  %v4076_v1 = vld [vmem:[%s4373_s17 + $0x20] sm:$0xff]  ;;  %v4077_v31 = vld [vmem:[%s4373_s17 + $0x38] sm:$0xff] }
 0x2af   : > { %v2984_v3 = vpack.c.bf16 %v2973_v53, %v2972_v23  ;;  %v2937_v63 = vmul.f32 %v5145_v0, %v2914_v46  ;;  %v2917_v55 = vld [vmem:[#allocation3 + $0x78] sm:$0xff] }
 0x2b0   : > { %v2915_v57 = vld [vmem:[#allocation3 + $0x68] sm:$0xff]  ;;  %v2940_v2 = vmul.f32 %v5145_v0, %v2917_v55  ;;  %v2962_v27 = vadd.f32 %v5152_v8, %v2939_v39  ;;  %v4078_v39 = vld [vmem:[%s4373_s17 + $0x28] sm:$0xff] }
 0x2b1   : > { %3956 = vmatprep.mubr.msk.bf16.mxu0 %vm941_vm1, %v2984_v3  ;;  %v2938_v58 = vmul.f32 %v5145_v0, %v2915_v57  ;;  %v2960_v40 = vadd.f32 %v5152_v8, %v2937_v63  ;;  %v5208_v0 = vld [vmem:[%s5358_s10] ss:$0 sm:$0xff] }
 0x2b2   : > { %3957 = vmatmul.mubr.msk.bf16.gmra.mrb[84].mxu0 %vm941_vm1, %v2985_v16  ;;  %v2963_v4 = vadd.f32 %v5152_v8, %v2940_v2  ;;  %v2978_v17 = vmax.f32 %v2962_v27, 0.0 }
 0x2b3   : > { %v2961_v45 = vadd.f32 %v5152_v8, %v2938_v58  ;;  %v2976_v18 = vmax.f32 %v2960_v40, 0.0 }
 0x2b4   : > { %v2979_v49 = vmax.f32 %v2963_v4, 0.0 }
 0x2b5   : > { %v2977_v5 = vmax.f32 %v2961_v45, 0.0 }
 0x2b6   : > { %v2987_v54 = vpack.c.bf16 %v2979_v49, %v2978_v17 }
 0x2b7   : > { %v2986_v26 = vpack.c.bf16 %v2977_v5, %v2976_v18  ;;  %v4079_v5 = vld [vmem:[%s4373_s17 + $0x50] sm:$0xff] }
 0x2b9   : > { %3960 = vmatprep.mubr.msk.bf16.mxu0 %vm941_vm1, %v2986_v26 }
 0x2ba   : > { %3961 = vmatmul.mubr.msk.bf16.gmra.mrb[88].mxu0 %vm941_vm1, %v2987_v54  ;;  %v4080_v54 = vld [vmem:[%s4373_s17 + $0x40] sm:$0xff] }
 0x375   : > { %v3950_v8 = vpop.f32.mrb[76].mxu0 }
 0x376   : > { %v3134_v7 = vmul.f32 %v3950_v8, %v5208_v0  ;;  %v3062_v56 = vpop.f32.mrb[77].mxu0 }
 0x377   : > { %v3132_v9 = vmul.f32 %v5208_v0, %v3062_v56  ;;  %v3951_v24 = vpop.f32.mrb[78].mxu0 }
 0x378   : > { %v3157_v10 = vadd.f32 %v5214_v44, %v3134_v7  ;;  %v3135_v11 = vmul.f32 %v3951_v24, %v5208_v0  ;;  %v3065_v62 = vpop.f32.mrb[79].mxu0 }
 0x379   : > { %v3155_v35 = vadd.f32 %v5214_v44, %v3132_v9  ;;  %v3133_v13 = vmul.f32 %v5208_v0, %v3065_v62  ;;  %v4081_v9 = vld [vmem:[%s4373_s17 + $0x58] sm:$0xff] }
 0x37a   : > { %v3173_v15 = vadd.f32 %v4071_v59, %v3157_v10  ;;  %v3158_v52 = vadd.f32 %v5214_v44, %v3135_v11  ;;  %v4082_v11 = vld [vmem:[%s4373_s17 + $0x48] sm:$0xff] }
 0x37b   : > { %v3171_v19 = vadd.f32 %v4072_v22, %v3155_v35  ;;  %v3156_v50 = vadd.f32 %v5214_v44, %v3133_v13 }
 0x37c   : > { %v3189_v48 = vmax.f32 %v3173_v15, 0.0  ;;  %v3174_v61 = vadd.f32 %v4073_v29, %v3158_v52 }
 0x37d   : > { %v3187_v12 = vmax.f32 %v3171_v19, 0.0  ;;  %v3172_v32 = vadd.f32 %v4074_v41, %v3156_v50  ;;  %v3954_v20 = vpop.f32.mrb[80].mxu0  ;;  %v4083_v41 = vld [vmem:[%s4373_s17 + $0x70] sm:$0xff] }
 0x37e   : > { %3205 = vst [vmem:[%s5230_s30 + $0x10] sm:$0xff] %v3189_v48  ;;  %v3190_v43 = vmax.f32 %v3174_v61, 0.0  ;;  %v3138_v60 = vmul.f32 %v3954_v20, %v5208_v0  ;;  %v3078_v6 = vpop.f32.mrb[81].mxu0 }
 0x37f   : > { %3203 = vst [vmem:[%s5230_s30] sm:$0xff] %v3187_v12  ;;  %v3188_v36 = vmax.f32 %v3172_v32, 0.0  ;;  %v3136_v30 = vmul.f32 %v5208_v0, %v3078_v6  ;;  %v3955_v37 = vpop.f32.mrb[82].mxu0 }
 0x380   : > { %3206 = vst [vmem:[%s5230_s30 + $0x18] sm:$0xff] %v3190_v43  ;;  %v3161_v34 = vadd.f32 %v5214_v44, %v3138_v60  ;;  %v3139_v33 = vmul.f32 %v3955_v37, %v5208_v0  ;;  %v3081_v42 = vpop.f32.mrb[83].mxu0  ;;  %v4084_v43 = vld [vmem:[%s4373_s17 + $0x60] sm:$0xff] }
 0x381   : > { %3204 = vst [vmem:[%s5230_s30 + $0x8] sm:$0xff] %v3188_v36  ;;  %v3159_v14 = vadd.f32 %v5214_v44, %v3136_v30  ;;  %v3137_v38 = vmul.f32 %v5208_v0, %v3081_v42  ;;  %v4085_v30 = vld [vmem:[%s4373_s17 + $0x78] sm:$0xff] }
 0x382   : > { %v3177_v47 = vadd.f32 %v4075_v21, %v3161_v34  ;;  %v3162_v51 = vadd.f32 %v5214_v44, %v3139_v33 }
 0x383   : > { %v3175_v25 = vadd.f32 %v4076_v1, %v3159_v14  ;;  %v3160_v23 = vadd.f32 %v5214_v44, %v3137_v38 }
 0x384   : > { %v3193_v53 = vmax.f32 %v3177_v47, 0.0  ;;  %v3178_v28 = vadd.f32 %v4077_v31, %v3162_v51 }
 0x385   : > { %v3191_v46 = vmax.f32 %v3175_v25, 0.0  ;;  %v3176_v3 = vadd.f32 %v4078_v39, %v3160_v23  ;;  %v3958_v63 = vpop.f32.mrb[84].mxu0 }
 0x386   : > { %3209 = vst [vmem:[%s5230_s30 + $0x30] sm:$0xff] %v3193_v53  ;;  %v3194_v55 = vmax.f32 %v3178_v28, 0.0  ;;  %v3142_v16 = vmul.f32 %v3958_v63, %v5208_v0  ;;  %v3094_v57 = vpop.f32.mrb[85].mxu0 }
 0x387   : > { %3207 = vst [vmem:[%s5230_s30 + $0x20] sm:$0xff] %v3191_v46  ;;  %v3192_v2 = vmax.f32 %v3176_v3, 0.0  ;;  %v3140_v58 = vmul.f32 %v5208_v0, %v3094_v57  ;;  %v3959_v40 = vpop.f32.mrb[86].mxu0 }
 0x388   : > { %3210 = vst [vmem:[%s5230_s30 + $0x38] sm:$0xff] %v3194_v55  ;;  %v3165_v27 = vadd.f32 %v5214_v44, %v3142_v16  ;;  %v3143_v4 = vmul.f32 %v3959_v40, %v5208_v0  ;;  %v3097_v45 = vpop.f32.mrb[87].mxu0 }
 0x389   : > { %3208 = vst [vmem:[%s5230_s30 + $0x28] sm:$0xff] %v3192_v2  ;;  %v3163_v49 = vadd.f32 %v5214_v44, %v3140_v58  ;;  %v3141_v18 = vmul.f32 %v5208_v0, %v3097_v45 }
 0x38a   : > { %v3181_v17 = vadd.f32 %v4079_v5, %v3165_v27  ;;  %v3166_v26 = vadd.f32 %v5214_v44, %v3143_v4 }
 0x38b   : > { %v3179_v8 = vadd.f32 %v4080_v54, %v3163_v49  ;;  %v3164_v7 = vadd.f32 %v5214_v44, %v3141_v18 }
 0x38c   : > { %v3197_v56 = vmax.f32 %v3181_v17, 0.0  ;;  %v3182_v24 = vadd.f32 %v4081_v9, %v3166_v26 }
 0x38d   : > { %v3195_v10 = vmax.f32 %v3179_v8, 0.0  ;;  %v3180_v62 = vadd.f32 %v4082_v11, %v3164_v7  ;;  %v3962_v35 = vpop.f32.mrb[88].mxu0 }
 0x38e   : > { %3213 = vst [vmem:[%s5230_s30 + $0x50] sm:$0xff] %v3197_v56  ;;  %v3198_v13 = vmax.f32 %v3182_v24, 0.0  ;;  %v3146_v59 = vmul.f32 %v3962_v35, %v5208_v0  ;;  %v3110_v15 = vpop.f32.mrb[89].mxu0 }
 0x38f   : > { %3211 = vst [vmem:[%s5230_s30 + $0x40] sm:$0xff] %v3195_v10  ;;  %v3196_v52 = vmax.f32 %v3180_v62, 0.0  ;;  %v3144_v22 = vmul.f32 %v5208_v0, %v3110_v15  ;;  %v3963_v19 = vpop.f32.mrb[90].mxu0 }
 0x390   : > { %3214 = vst [vmem:[%s5230_s30 + $0x58] sm:$0xff] %v3198_v13  ;;  %v3169_v50 = vadd.f32 %v5214_v44, %v3146_v59  ;;  %v3147_v48 = vmul.f32 %v3963_v19, %v5208_v0  ;;  %v3113_v29 = vpop.f32.mrb[91].mxu0 }
 0x391   : > { %3212 = vst [vmem:[%s5230_s30 + $0x48] sm:$0xff] %v3196_v52  ;;  %v3167_v61 = vadd.f32 %v5214_v44, %v3144_v22  ;;  %v3145_v12 = vmul.f32 %v5208_v0, %v3113_v29  ;;  %v4086_v0 = vld [vmem:[%s4373_s17 + $0x68] sm:$0xff]  ;;  %s4087_s17 = scalar_lea.vmem %s5289_s15, 2048 }
 0x392   : > { %v3185_v32 = vadd.f32 %v4083_v41, %v3169_v50  ;;  %v3170_v20 = vadd.f32 %v5214_v44, %v3147_v48  ;;  %p4088_p6 = scmp.ne.s32.totalorder %s5289_s15, %s4087_s17  ;;  %p4095_p11 = scmp.lt.s32.totalorder %s4093_s13, %s4087_s17 }
 0x393   : > { %v3183_v60 = vadd.f32 %v4084_v43, %v3167_v61  ;;  %v3168_v6 = vadd.f32 %v5214_v44, %v3145_v12 }
 0x394   : > { %v3201_v36 = vmax.f32 %v3185_v32, 0.0  ;;  %v3186_v37 = vadd.f32 %v4085_v30, %v3170_v20  ;;  %p4089_p7 = pnand %p4088_p6, %p4304_p3  ;;  %p4096_p12 = por %p4095_p11, %p4094_p10 }
 0x395   : > { %v3199_v34 = vmax.f32 %v3183_v60, 0.0  ;;  %v3184_v33 = vadd.f32 %v4086_v0, %v3168_v6 }
 0x396   : > { %3217 = vst [vmem:[%s5230_s30 + $0x70] sm:$0xff] %v3201_v36  ;;  %v3202_v42 = vmax.f32 %v3186_v37, 0.0  ;;  %p4090_p9 = pneg %p4089_p7 }
 0x397   : > { %3215 = vst [vmem:[%s5230_s30 + $0x60] sm:$0xff] %v3199_v34  ;;  %v3200_v44 = vmax.f32 %v3184_v33, 0.0 }
 0x398   : > { %3218 = vst [vmem:[%s5230_s30 + $0x78] sm:$0xff] %v3202_v42  ;;  %p4097_p13 = pnand %p4096_p12, %p4090_p9 }
 0x399   : > { %3216 = vst [vmem:[%s5230_s30 + $0x68] sm:$0xff] %v3200_v44 }
 0x39a   : > { %4100 = shalt.err (!%p4097_p13)
}
 0x39b   : > { %s4101_s23 = scalar_lea.hbm %s5287_s20, 2048  ;;  %s4105_s24 = scalar_lea.hbm %s5360_s12, 8192 }
 0x39c   : > { %p4102_p0 = scmp.ne.s32.totalorder %s5287_s20, %s4101_s23  ;;  %p4106_p4 = scmp.lt.u32.totalorder %s5287_s20, %s5360_s12 }
 0x39d   : > { %p4107_p5 = scmp.lt.u32.totalorder %s4105_s24, %s4101_s23  ;;  %p4109_p7 = scmp.lt.u32.totalorder %s4101_s23, %s5287_s20 }
 0x39e   : > { %p4103_p1 = pnand %p4102_p0, %p4304_p3 }
 0x39f   : > { %p4108_p6 = por %p4107_p5, %p4106_p4 }
 0x3a0   : > { %p4104_p2 = pneg %p4103_p1 }
 0x3a1   : > { %p4110_p9 = por %p4109_p7, %p4108_p6 }
 0x3a3   : > { %p4111_p10 = pnand %p4110_p9, %p4104_p2 }
 0x3a5   : > { %4114 = shalt.err (!%p4111_p10)
}
 0x3a6   : > { %s4186_s14 = smov 128   ;;  %s4187_s17 = smov 8  }
 0x3a7   : > { %3968 = dma.vmem_to_hbm [thread:$0]  (%p4304_p3), %s5289_s15, 2048, %s5287_s20, %s5296_s19, %s4186_s14, %s4186_s14, %s4187_s17  }
 0x3a8 PF: > { %p3974_p11 = scmp.ge.s32.totalorder %s4181_s28, 2  ;;  %s3251_s29 = sand.u32 1, %s4153_s21  }
 0x3a9   : > { %s3252_s13 = scalar_lea.sflag [#allocation5], %s3251_s29 }
 0x3aa   : > { %p3971_p12 = pnand %p3974_p11, %p4313_p8 }
 0x3ac   : > { %4148 = dma.done.wait (!%p3971_p12), %s3252_s13, 2048  }
 0x3ad   : > { %4150 = vsyncadd (!%p3971_p12), %s3252_s13, 4294965248  ;;  %s25_s28 = sadd.s32 1, %s4181_s28   ;;  %s5378_s23 = sld [smem:[#allocation7_spill]] }
 0x3ae   : > { %p22_p13 = scmp.ge.s32.totalorder %s25_s28, 6   ;;  %s5379_s30 = sld [smem:[#allocation13_spill]] }
 0x3af   : > { %s5380_s24 = sld [smem:[#allocation8_spill]]  ;;  %s5381_s25 = sld [smem:[#allocation9_spill]] }
 0x3b0   : > { %s5382_s26 = sld [smem:[#allocation10_spill]]  ;;  %s5383_s27 = sld [smem:[#allocation11_spill]] }
 0x3b1   : > { %s5384_s21 = smov %s4157_s22  ;;  %24 = sbr.rel (!%p22_p13) target bundleno = 5 (0x5), region = 125 }
 0x3b3   : > { %s5385_s22 = smov %s5378_s23 }
 0x3b4   : > { %s5386_s23 = smov %s5379_s30 }
 0x3b8   :  { %3257 = vsyncpa [#allocation5], 1 }
 0x3b9   :  { %3259 = vsyncpa [#allocation5 + $0x1], 1 }

</bundles_post_ra>
